<compile_context>
chip_gen: v7x
topology: tpu7x:2x2x1
jax: 0.10.0
libtpu: 0.0.40
codegen_flags: <defaults>
</compile_context>

<pallas_src>
import functools

import jax
import jax.numpy as jnp
from jax.experimental import pallas as pl
from jax.experimental.pallas import tpu as pltpu


OUT_PAD = 128  # lane-dense projection width (sliced back to out_var in the wrapper)


# ----------------------------------------------------------------------------
# Fused kernel: all GRU layers (wavefront) + Linear + Sigmoid, single invocation.
# ----------------------------------------------------------------------------
def _fused_gru_kernel(*refs, num_layers, enc_len, out_len):
    """refs = (x_tm, w_ih0, [w_ih_rest], w_hh, b_i, b_hn, w_proj, b_proj, out).

    x_tm      : (L*B, D)              time-major encoder input, f32
    w_ih0     : (D, 3H)               layer-0 packed input weights [r|z|n], bf16
    w_ih_rest : (num_layers-1, H, 3H) packed input weights of layers >= 1, bf16
    w_hh      : (num_layers, H, 3H)   packed hidden weights [r|z|n], bf16
    b_i       : (num_layers, 3H)      input-path bias (r/z fused with the hidden
                                      bias, n keeps only b_in), f32
    b_hn      : (num_layers, H)       hidden bias of the n gate, f32
    w_proj    : (H, 128)              lane-dense padded projection weights, f32
    b_proj    : (1, 128)              lane-dense padded projection bias, f32
    out       : (out_len*B, 128)      time-major lane-dense sigmoid output, f32
    """
    f32, bf16 = jnp.float32, jnp.bfloat16

    x_ref = refs[0]
    idx = 1
    w_ih0_ref = refs[idx]
    idx += 1
    w_ih_rest_ref = None
    if num_layers > 1:
        w_ih_rest_ref = refs[idx]
        idx += 1
    w_hh_ref, b_i_ref, b_hn_ref, w_proj_ref, b_proj_ref, out_ref = refs[idx:idx + 6]

    LBt = x_ref.shape[0]
    Bt = LBt // enc_len
    H = w_hh_ref.shape[1]
    T = enc_len + out_len

    # -------- resident weights & hoisted bias broadcasts (outside the step loop)
    w_hh = [w_hh_ref[l] for l in range(num_layers)]                  # (H, 3H) bf16
    w_ih_rest = ([w_ih_rest_ref[l] for l in range(num_layers - 1)]
                 if num_layers > 1 else [])
    b_i_all = b_i_ref[...]                                           # (num_layers, 3H)
    b_hn_all = b_hn_ref[...]                                         # (num_layers, H)
    b_i = [jnp.broadcast_to(b_i_all[l:l + 1, :], (Bt, 3 * H))
           for l in range(num_layers)]
    b_hn = [jnp.broadcast_to(b_hn_all[l:l + 1, :], (Bt, H))
            for l in range(num_layers)]

    # -------- layer-0 input projection hoisted over the encoder, time-major
    x_bf = x_ref[...].astype(bf16)                                   # (L*Bt, D)
    gi0_all = jnp.dot(x_bf, w_ih0_ref[...], preferred_element_type=f32)
    gi0_all = gi0_all + b_i_all[0:1, :]                              # (L*Bt, 3H)
    gi0_pad = b_i[0]          # decoder steps: x_t == 0 -> projection == bias

    def cell(gi, h, hb, u, b_hn_l):
        """Packed GRU cell.  gi: (Bt,3H) f32, h: (Bt,H) f32, hb: bf16 copy of h,
        u: (H,3H) bf16 packed hidden weights, b_hn_l: (Bt,H) f32."""
        gh = jnp.dot(hb, u, preferred_element_type=f32)              # 1 MXU pass
        r = jax.nn.sigmoid(gi[:, :H] + gh[:, :H])
        z = jax.nn.sigmoid(gi[:, H:2 * H] + gh[:, H:2 * H])
        n = jnp.tanh(gi[:, 2 * H:] + r * (gh[:, 2 * H:] + b_hn_l))
        return n + z * (h - n)                                       # == (1-z)*n + z*h

    # -------- wavefront recurrence: every layer advances at every time step
    h = [jnp.zeros((Bt, H), f32) for _ in range(num_layers)]
    hb = [jnp.zeros((Bt, H), bf16) for _ in range(num_layers)]
    tail = []
    for t in range(T):
        gi = gi0_all[t * Bt:(t + 1) * Bt, :] if t < enc_len else gi0_pad
        h[0] = cell(gi, h[0], hb[0], w_hh[0], b_hn[0])
        hb[0] = h[0].astype(bf16)
        for l in range(1, num_layers):
            gi_l = jnp.dot(hb[l - 1], w_ih_rest[l - 1],
                           preferred_element_type=f32) + b_i[l]
            h[l] = cell(gi_l, h[l], hb[l], w_hh[l], b_hn[l])
            hb[l] = h[l].astype(bf16)
        if t >= T - out_len:
            tail.append(h[num_layers - 1])

    # -------- projection + sigmoid on the last out_len steps (time-major)
    tail_tm = jnp.concatenate(tail, axis=0)                          # (out_len*Bt, H)
    y = jnp.dot(tail_tm, w_proj_ref[...], preferred_element_type=f32) + b_proj_ref[...]
    out_ref[...] = jax.nn.sigmoid(y).astype(out_ref.dtype)


def fused_forward(x_enc, kp, output_len):
    B, L, D = x_enc.shape
    num_layers = kp["w_hh"].shape[0]
    # Time-major input (mirrors the PyTorch transpose); one tiny host-side op.
    x_tm = jnp.transpose(x_enc, (1, 0, 2)).reshape(L * B, D)

    inputs = [x_tm, kp["w_ih0"]]
    if num_layers > 1:
        inputs.append(kp["w_ih_rest"])
    inputs += [kp["w_hh"], kp["b_i"], kp["b_hn"], kp["w_proj_pad"], kp["b_proj_pad"]]

    kernel = functools.partial(_fused_gru_kernel, num_layers=num_layers,
                               enc_len=L, out_len=output_len)
    return pl.pallas_call(
        kernel,
        out_shape=jax.ShapeDtypeStruct((output_len * B, OUT_PAD), jnp.float32),
        in_specs=[pl.BlockSpec(memory_space=pltpu.MemorySpace.VMEM)
                  for _ in inputs],
        out_specs=pl.BlockSpec(memory_space=pltpu.MemorySpace.VMEM),
    )(*inputs)


# ----------------------------------------------------------------------------
# Forward pass (mirror of BaselineGruModel.forward, eval semantics).
# ----------------------------------------------------------------------------
@functools.partial(jax.jit, static_argnames=("output_len", "out_var"))
def baseline_gru_forward(x_enc, kparams, output_len, out_var):
    B = x_enc.shape[0]
    out_tm = fused_forward(x_enc, kparams, output_len)               # (out_len*B, 128)
    out = out_tm.reshape(output_len, B, OUT_PAD)                     # time-major
    return jnp.transpose(out, (1, 0, 2))[:, :, :out_var]             # (B, out_len, out)


# ----------------------------------------------------------------------------
# Parameter init (PyTorch layout) and conversion to the packed kernel layout.
# ----------------------------------------------------------------------------
def init_params(key, in_var, hidden_dim, out_var, num_layers):
    """Raw parameters in PyTorch nn.GRU / nn.Linear layout."""
    bound = 1.0 / jnp.sqrt(hidden_dim)
    gru = []
    for layer in range(num_layers):
        d_in = in_var if layer == 0 else hidden_dim
        key, k1, k2, k3, k4 = jax.random.split(key, 5)
        w_ih = jax.random.uniform(k1, (3 * hidden_dim, d_in), jnp.float32, -bound, bound)
        w_hh = jax.random.uniform(k2, (3 * hidden_dim, hidden_dim), jnp.float32, -bound, bound)
        b_ih = jax.random.uniform(k3, (3 * hidden_dim,), jnp.float32, -bound, bound)
        b_hh = jax.random.uniform(k4, (3 * hidden_dim,), jnp.float32, -bound, bound)
        gru.append((w_ih, w_hh, b_ih, b_hh))
    key, k5, k6 = jax.random.split(key, 3)
    w_proj = jax.random.uniform(k5, (out_var, hidden_dim), jnp.float32, -bound, bound)
    b_proj = jax.random.uniform(k6, (out_var,), jnp.float32, -bound, bound)
    return {"gru": gru, "w_proj": w_proj, "b_proj": b_proj}


def prepare_kernel_params(raw, hidden_dim, out_var):
    """One-time host-side re-layout: packed [r|z|n] bf16 weight slabs, stacked
    per-layer biases (r/z fused), lane-dense (128-padded) f32 projection."""
    H = hidden_dim
    bf16 = jnp.bfloat16
    w_ih_l, w_hh_l, b_i_l, b_hn_l = [], [], [], []
    for (w_ih, w_hh, b_ih, b_hh) in raw["gru"]:
        w_ih_l.append(w_ih.T)                                        # (D_in, 3H)
        w_hh_l.append(w_hh.T)                                        # (H, 3H)
        b_i_l.append(jnp.concatenate([b_ih[:2 * H] + b_hh[:2 * H], b_ih[2 * H:]]))
        b_hn_l.append(b_hh[2 * H:])
    kp = {
        "w_ih0": w_ih_l[0].astype(bf16),                             # (D, 3H)
        "w_hh": jnp.stack(w_hh_l, 0).astype(bf16),                   # (nl, H, 3H)
        "b_i": jnp.stack(b_i_l, 0).astype(jnp.float32),              # (nl, 3H)
        "b_hn": jnp.stack(b_hn_l, 0).astype(jnp.float32),            # (nl, H)
        "w_proj_pad": jnp.zeros((H, OUT_PAD), jnp.float32).at[:, :out_var].set(
            raw["w_proj"].T),
        "b_proj_pad": jnp.zeros((1, OUT_PAD), jnp.float32).at[:, :out_var].set(
            raw["b_proj"][None, :]),
    }
    if len(w_ih_l) > 1:
        kp["w_ih_rest"] = jnp.stack(w_ih_l[1:], 0).astype(bf16)      # (nl-1, H, 3H)
    return kp


# ----------------------------------------------------------------------------
# Pure-JAX f32 reference (correctness check) using the raw PyTorch layout.
# ----------------------------------------------------------------------------
def reference_forward(x_enc, raw, output_len, out_var):
    B, L, D = x_enc.shape
    pad = jnp.zeros((B, output_len, D), x_enc.dtype)
    x = jnp.transpose(jnp.concatenate([x_enc, pad], axis=1), (1, 0, 2))  # (T,B,D)
    h_seq = x
    for (w_ih, w_hh, b_ih, b_hh) in raw["gru"]:
        H = w_hh.shape[1]

        def step(h, x_t, w_ih=w_ih, w_hh=w_hh, b_ih=b_ih, b_hh=b_hh, H=H):
            gi = x_t @ w_ih.T + b_ih
            gh = h @ w_hh.T + b_hh
            r = jax.nn.sigmoid(gi[:, :H] + gh[:, :H])
            z = jax.nn.sigmoid(gi[:, H:2 * H] + gh[:, H:2 * H])
            n = jnp.tanh(gi[:, 2 * H:] + r * gh[:, 2 * H:])
            h_new = (1.0 - z) * n + z * h
            return h_new, h_new

        h0 = jnp.zeros((B, H), jnp.float32)
        _, outs = jax.lax.scan(step, h0, h_seq)
        h_seq = outs
    dec = jnp.transpose(h_seq, (1, 0, 2))
    y = jax.nn.sigmoid(dec @ raw["w_proj"].T + raw["b_proj"])
    return y[:, -output_len:, :]


if __name__ == "__main__":
    # settings: output_len=4, in_var=4, hidden_dim=32, out_var=2,
    #           lstm_layer=2, dropout=0.1 (identity in eval)
    B, L = 2, 8
    in_var, hidden_dim, out_var = 4, 32, 2
    output_len, num_layers = 4, 2

    key = jax.random.PRNGKey(0)
    key, kx = jax.random.split(key)
    x_enc = jax.random.normal(kx, (B, L, in_var), jnp.float32)

    raw = init_params(key, in_var, hidden_dim, out_var, num_layers)
    kparams = prepare_kernel_params(raw, hidden_dim, out_var)

    out = baseline_gru_forward(x_enc, kparams, output_len=output_len, out_var=out_var)
    out = jax.block_until_ready(out)
    assert out.shape == (B, output_len, out_var), out.shape

    ref = reference_forward(x_enc, raw, output_len, out_var)
    # bf16 matmul operands in the kernel -> relaxed tolerance vs the f32 reference.
    max_err = float(jnp.max(jnp.abs(out - ref)))
    assert jnp.allclose(out, ref, rtol=2e-2, atol=2e-2), max_err

    print("KERNEL_OK")
</pallas_src>

<mosaic_0001>
module attributes {stable_mosaic.version = 11 : i64} {
  func.func @_fused_gru_kernel(%arg0: memref<16x4xf32, #tpu.memory_space<vmem>>, %arg1: memref<4x96xbf16, #tpu.memory_space<vmem>>, %arg2: memref<1x32x96xbf16, #tpu.memory_space<vmem>>, %arg3: memref<2x32x96xbf16, #tpu.memory_space<vmem>>, %arg4: memref<2x96xf32, #tpu.memory_space<vmem>>, %arg5: memref<2x32xf32, #tpu.memory_space<vmem>>, %arg6: memref<32x128xf32, #tpu.memory_space<vmem>>, %arg7: memref<1x128xf32, #tpu.memory_space<vmem>>, %arg8: memref<8x128xf32, #tpu.memory_space<vmem>>) attributes {dimension_semantics = [], scalar_prefetch = 0 : i64, scratch_operands = 0 : i64, tpu.core_type = #tpu.core_type<tc>} {
    %c0 = arith.constant 0 : index
    %c0_0 = arith.constant 0 : index
    %c0_1 = arith.constant 0 : index
    %0 = vector.load %arg3[%c0, %c0_0, %c0_1] : memref<2x32x96xbf16, #tpu.memory_space<vmem>>, vector<1x32x96xbf16>
    %1 = vector.shape_cast %0 : vector<1x32x96xbf16> to vector<32x96xbf16>
    %c1 = arith.constant 1 : index
    %c0_2 = arith.constant 0 : index
    %c0_3 = arith.constant 0 : index
    %2 = vector.load %arg3[%c1, %c0_2, %c0_3] : memref<2x32x96xbf16, #tpu.memory_space<vmem>>, vector<1x32x96xbf16>
    %3 = vector.shape_cast %2 : vector<1x32x96xbf16> to vector<32x96xbf16>
    %c0_4 = arith.constant 0 : index
    %c0_5 = arith.constant 0 : index
    %c0_6 = arith.constant 0 : index
    %4 = vector.load %arg2[%c0_4, %c0_5, %c0_6] : memref<1x32x96xbf16, #tpu.memory_space<vmem>>, vector<1x32x96xbf16>
    %5 = vector.shape_cast %4 : vector<1x32x96xbf16> to vector<32x96xbf16>
    %c0_7 = arith.constant 0 : index
    %c0_8 = arith.constant 0 : index
    %6 = vector.load %arg4[%c0_7, %c0_8] : memref<2x96xf32, #tpu.memory_space<vmem>>, vector<2x96xf32>
    %c0_9 = arith.constant 0 : index
    %c0_10 = arith.constant 0 : index
    %7 = vector.load %arg5[%c0_9, %c0_10] : memref<2x32xf32, #tpu.memory_space<vmem>>, vector<2x32xf32>
    %8 = vector.extract_strided_slice %6 {offsets = [0, 0], sizes = [1, 96], strides = [1, 1]} : vector<2x96xf32> to vector<1x96xf32>
    %9 = vector.shape_cast %8 : vector<1x96xf32> to vector<1x96xf32>
    %10 = vector.broadcast %9 : vector<1x96xf32> to vector<2x96xf32>
    %11 = vector.extract_strided_slice %6 {offsets = [1, 0], sizes = [1, 96], strides = [1, 1]} : vector<2x96xf32> to vector<1x96xf32>
    %12 = vector.shape_cast %11 : vector<1x96xf32> to vector<1x96xf32>
    %13 = vector.broadcast %12 : vector<1x96xf32> to vector<2x96xf32>
    %14 = vector.extract_strided_slice %7 {offsets = [0, 0], sizes = [1, 32], strides = [1, 1]} : vector<2x32xf32> to vector<1x32xf32>
    %15 = vector.shape_cast %14 : vector<1x32xf32> to vector<1x32xf32>
    %16 = vector.broadcast %15 : vector<1x32xf32> to vector<2x32xf32>
    %17 = vector.extract_strided_slice %7 {offsets = [1, 0], sizes = [1, 32], strides = [1, 1]} : vector<2x32xf32> to vector<1x32xf32>
    %18 = vector.shape_cast %17 : vector<1x32xf32> to vector<1x32xf32>
    %19 = vector.broadcast %18 : vector<1x32xf32> to vector<2x32xf32>
    %c0_11 = arith.constant 0 : index
    %c0_12 = arith.constant 0 : index
    %20 = vector.load %arg0[%c0_11, %c0_12] : memref<16x4xf32, #tpu.memory_space<vmem>>, vector<16x4xf32>
    %21 = arith.truncf %20 : vector<16x4xf32> to vector<16x4xbf16>
    %c0_13 = arith.constant 0 : index
    %c0_14 = arith.constant 0 : index
    %22 = vector.load %arg1[%c0_13, %c0_14] : memref<4x96xbf16, #tpu.memory_space<vmem>>, vector<4x96xbf16>
    %cst = arith.constant dense<0.000000e+00> : vector<16x96xf32>
    %23 = tpu.matmul %21, %22, %cst {dimension_numbers = #tpu.dot_dimension_numbers<[1], [0], [0], [1], [0, 0, 1, 1], [], []>} : vector<16x4xbf16>, vector<4x96xbf16>, vector<16x96xf32> -> vector<16x96xf32>
    %24 = vector.extract_strided_slice %6 {offsets = [0, 0], sizes = [1, 96], strides = [1, 1]} : vector<2x96xf32> to vector<1x96xf32>
    %25 = vector.broadcast %24 : vector<1x96xf32> to vector<16x96xf32>
    %26 = arith.addf %23, %25 : vector<16x96xf32>
    %cst_15 = arith.constant 0.000000e+00 : f32
    %27 = vector.broadcast %cst_15 : f32 to vector<2x32xf32>
    %cst_16 = arith.constant 0.000000e+00 : f32
    %28 = vector.broadcast %cst_16 : f32 to vector<2x32xf32>
    %cst_17 = arith.constant 0.000000e+00 : bf16
    %29 = vector.broadcast %cst_17 : bf16 to vector<2x32xbf16>
    %cst_18 = arith.constant 0.000000e+00 : bf16
    %30 = vector.broadcast %cst_18 : bf16 to vector<2x32xbf16>
    %31 = vector.extract_strided_slice %26 {offsets = [0, 0], sizes = [2, 96], strides = [1, 1]} : vector<16x96xf32> to vector<2x96xf32>
    %cst_19 = arith.constant dense<0.000000e+00> : vector<2x96xf32>
    %32 = tpu.matmul %29, %1, %cst_19 {dimension_numbers = #tpu.dot_dimension_numbers<[1], [0], [0], [1], [0, 0, 1, 1], [], []>} : vector<2x32xbf16>, vector<32x96xbf16>, vector<2x96xf32> -> vector<2x96xf32>
    %33 = vector.extract_strided_slice %31 {offsets = [0, 0], sizes = [2, 32], strides = [1, 1]} : vector<2x96xf32> to vector<2x32xf32>
    %34 = vector.extract_strided_slice %32 {offsets = [0, 0], sizes = [2, 32], strides = [1, 1]} : vector<2x96xf32> to vector<2x32xf32>
    %35 = arith.addf %33, %34 : vector<2x32xf32>
    %36 = arith.negf %35 : vector<2x32xf32>
    %37 = math.exp %36 : vector<2x32xf32>
    %cst_20 = arith.constant 1.000000e+00 : f32
    %38 = vector.broadcast %cst_20 : f32 to vector<2x32xf32>
    %39 = arith.addf %38, %37 : vector<2x32xf32>
    %40 = arith.divf %38, %39 : vector<2x32xf32>
    %41 = vector.extract_strided_slice %31 {offsets = [0, 32], sizes = [2, 32], strides = [1, 1]} : vector<2x96xf32> to vector<2x32xf32>
    %42 = vector.extract_strided_slice %32 {offsets = [0, 32], sizes = [2, 32], strides = [1, 1]} : vector<2x96xf32> to vector<2x32xf32>
    %43 = arith.addf %41, %42 : vector<2x32xf32>
    %44 = arith.negf %43 : vector<2x32xf32>
    %45 = math.exp %44 : vector<2x32xf32>
    %cst_21 = arith.constant 1.000000e+00 : f32
    %46 = vector.broadcast %cst_21 : f32 to vector<2x32xf32>
    %47 = arith.addf %46, %45 : vector<2x32xf32>
    %48 = arith.divf %46, %47 : vector<2x32xf32>
    %49 = vector.extract_strided_slice %31 {offsets = [0, 64], sizes = [2, 32], strides = [1, 1]} : vector<2x96xf32> to vector<2x32xf32>
    %50 = vector.extract_strided_slice %32 {offsets = [0, 64], sizes = [2, 32], strides = [1, 1]} : vector<2x96xf32> to vector<2x32xf32>
    %51 = arith.addf %50, %16 : vector<2x32xf32>
    %52 = arith.mulf %40, %51 : vector<2x32xf32>
    %53 = arith.addf %49, %52 : vector<2x32xf32>
    %54 = math.tanh %53 : vector<2x32xf32>
    %55 = arith.subf %27, %54 : vector<2x32xf32>
    %56 = arith.mulf %48, %55 : vector<2x32xf32>
    %57 = arith.addf %54, %56 : vector<2x32xf32>
    %58 = arith.truncf %57 : vector<2x32xf32> to vector<2x32xbf16>
    %cst_22 = arith.constant dense<0.000000e+00> : vector<2x96xf32>
    %59 = tpu.matmul %58, %5, %cst_22 {dimension_numbers = #tpu.dot_dimension_numbers<[1], [0], [0], [1], [0, 0, 1, 1], [], []>} : vector<2x32xbf16>, vector<32x96xbf16>, vector<2x96xf32> -> vector<2x96xf32>
    %60 = arith.addf %59, %13 : vector<2x96xf32>
    %cst_23 = arith.constant dense<0.000000e+00> : vector<2x96xf32>
    %61 = tpu.matmul %30, %3, %cst_23 {dimension_numbers = #tpu.dot_dimension_numbers<[1], [0], [0], [1], [0, 0, 1, 1], [], []>} : vector<2x32xbf16>, vector<32x96xbf16>, vector<2x96xf32> -> vector<2x96xf32>
    %62 = vector.extract_strided_slice %60 {offsets = [0, 0], sizes = [2, 32], strides = [1, 1]} : vector<2x96xf32> to vector<2x32xf32>
    %63 = vector.extract_strided_slice %61 {offsets = [0, 0], sizes = [2, 32], strides = [1, 1]} : vector<2x96xf32> to vector<2x32xf32>
    %64 = arith.addf %62, %63 : vector<2x32xf32>
    %65 = arith.negf %64 : vector<2x32xf32>
    %66 = math.exp %65 : vector<2x32xf32>
    %cst_24 = arith.constant 1.000000e+00 : f32
    %67 = vector.broadcast %cst_24 : f32 to vector<2x32xf32>
    %68 = arith.addf %67, %66 : vector<2x32xf32>
    %69 = arith.divf %67, %68 : vector<2x32xf32>
    %70 = vector.extract_strided_slice %60 {offsets = [0, 32], sizes = [2, 32], strides = [1, 1]} : vector<2x96xf32> to vector<2x32xf32>
    %71 = vector.extract_strided_slice %61 {offsets = [0, 32], sizes = [2, 32], strides = [1, 1]} : vector<2x96xf32> to vector<2x32xf32>
    %72 = arith.addf %70, %71 : vector<2x32xf32>
    %73 = arith.negf %72 : vector<2x32xf32>
    %74 = math.exp %73 : vector<2x32xf32>
    %cst_25 = arith.constant 1.000000e+00 : f32
    %75 = vector.broadcast %cst_25 : f32 to vector<2x32xf32>
    %76 = arith.addf %75, %74 : vector<2x32xf32>
    %77 = arith.divf %75, %76 : vector<2x32xf32>
    %78 = vector.extract_strided_slice %60 {offsets = [0, 64], sizes = [2, 32], strides = [1, 1]} : vector<2x96xf32> to vector<2x32xf32>
    %79 = vector.extract_strided_slice %61 {offsets = [0, 64], sizes = [2, 32], strides = [1, 1]} : vector<2x96xf32> to vector<2x32xf32>
    %80 = arith.addf %79, %19 : vector<2x32xf32>
    %81 = arith.mulf %69, %80 : vector<2x32xf32>
    %82 = arith.addf %78, %81 : vector<2x32xf32>
    %83 = math.tanh %82 : vector<2x32xf32>
    %84 = arith.subf %28, %83 : vector<2x32xf32>
    %85 = arith.mulf %77, %84 : vector<2x32xf32>
    %86 = arith.addf %83, %85 : vector<2x32xf32>
    %87 = arith.truncf %86 : vector<2x32xf32> to vector<2x32xbf16>
    %88 = vector.extract_strided_slice %26 {offsets = [2, 0], sizes = [2, 96], strides = [1, 1]} : vector<16x96xf32> to vector<2x96xf32>
    %cst_26 = arith.constant dense<0.000000e+00> : vector<2x96xf32>
    %89 = tpu.matmul %58, %1, %cst_26 {dimension_numbers = #tpu.dot_dimension_numbers<[1], [0], [0], [1], [0, 0, 1, 1], [], []>} : vector<2x32xbf16>, vector<32x96xbf16>, vector<2x96xf32> -> vector<2x96xf32>
    %90 = vector.extract_strided_slice %88 {offsets = [0, 0], sizes = [2, 32], strides = [1, 1]} : vector<2x96xf32> to vector<2x32xf32>
    %91 = vector.extract_strided_slice %89 {offsets = [0, 0], sizes = [2, 32], strides = [1, 1]} : vector<2x96xf32> to vector<2x32xf32>
    %92 = arith.addf %90, %91 : vector<2x32xf32>
    %93 = arith.negf %92 : vector<2x32xf32>
    %94 = math.exp %93 : vector<2x32xf32>
    %cst_27 = arith.constant 1.000000e+00 : f32
    %95 = vector.broadcast %cst_27 : f32 to vector<2x32xf32>
    %96 = arith.addf %95, %94 : vector<2x32xf32>
    %97 = arith.divf %95, %96 : vector<2x32xf32>
    %98 = vector.extract_strided_slice %88 {offsets = [0, 32], sizes = [2, 32], strides = [1, 1]} : vector<2x96xf32> to vector<2x32xf32>
    %99 = vector.extract_strided_slice %89 {offsets = [0, 32], sizes = [2, 32], strides = [1, 1]} : vector<2x96xf32> to vector<2x32xf32>
    %100 = arith.addf %98, %99 : vector<2x32xf32>
    %101 = arith.negf %100 : vector<2x32xf32>
    %102 = math.exp %101 : vector<2x32xf32>
    %cst_28 = arith.constant 1.000000e+00 : f32
    %103 = vector.broadcast %cst_28 : f32 to vector<2x32xf32>
    %104 = arith.addf %103, %102 : vector<2x32xf32>
    %105 = arith.divf %103, %104 : vector<2x32xf32>
    %106 = vector.extract_strided_slice %88 {offsets = [0, 64], sizes = [2, 32], strides = [1, 1]} : vector<2x96xf32> to vector<2x32xf32>
    %107 = vector.extract_strided_slice %89 {offsets = [0, 64], sizes = [2, 32], strides = [1, 1]} : vector<2x96xf32> to vector<2x32xf32>
    %108 = arith.addf %107, %16 : vector<2x32xf32>
    %109 = arith.mulf %97, %108 : vector<2x32xf32>
    %110 = arith.addf %106, %109 : vector<2x32xf32>
    %111 = math.tanh %110 : vector<2x32xf32>
    %112 = arith.subf %57, %111 : vector<2x32xf32>
    %113 = arith.mulf %105, %112 : vector<2x32xf32>
    %114 = arith.addf %111, %113 : vector<2x32xf32>
    %115 = arith.truncf %114 : vector<2x32xf32> to vector<2x32xbf16>
    %cst_29 = arith.constant dense<0.000000e+00> : vector<2x96xf32>
    %116 = tpu.matmul %115, %5, %cst_29 {dimension_numbers = #tpu.dot_dimension_numbers<[1], [0], [0], [1], [0, 0, 1, 1], [], []>} : vector<2x32xbf16>, vector<32x96xbf16>, vector<2x96xf32> -> vector<2x96xf32>
    %117 = arith.addf %116, %13 : vector<2x96xf32>
    %cst_30 = arith.constant dense<0.000000e+00> : vector<2x96xf32>
    %118 = tpu.matmul %87, %3, %cst_30 {dimension_numbers = #tpu.dot_dimension_numbers<[1], [0], [0], [1], [0, 0, 1, 1], [], []>} : vector<2x32xbf16>, vector<32x96xbf16>, vector<2x96xf32> -> vector<2x96xf32>
    %119 = vector.extract_strided_slice %117 {offsets = [0, 0], sizes = [2, 32], strides = [1, 1]} : vector<2x96xf32> to vector<2x32xf32>
    %120 = vector.extract_strided_slice %118 {offsets = [0, 0], sizes = [2, 32], strides = [1, 1]} : vector<2x96xf32> to vector<2x32xf32>
    %121 = arith.addf %119, %120 : vector<2x32xf32>
    %122 = arith.negf %121 : vector<2x32xf32>
    %123 = math.exp %122 : vector<2x32xf32>
    %cst_31 = arith.constant 1.000000e+00 : f32
    %124 = vector.broadcast %cst_31 : f32 to vector<2x32xf32>
    %125 = arith.addf %124, %123 : vector<2x32xf32>
    %126 = arith.divf %124, %125 : vector<2x32xf32>
    %127 = vector.extract_strided_slice %117 {offsets = [0, 32], sizes = [2, 32], strides = [1, 1]} : vector<2x96xf32> to vector<2x32xf32>
    %128 = vector.extract_strided_slice %118 {offsets = [0, 32], sizes = [2, 32], strides = [1, 1]} : vector<2x96xf32> to vector<2x32xf32>
    %129 = arith.addf %127, %128 : vector<2x32xf32>
    %130 = arith.negf %129 : vector<2x32xf32>
    %131 = math.exp %130 : vector<2x32xf32>
    %cst_32 = arith.constant 1.000000e+00 : f32
    %132 = vector.broadcast %cst_32 : f32 to vector<2x32xf32>
    %133 = arith.addf %132, %131 : vector<2x32xf32>
    %134 = arith.divf %132, %133 : vector<2x32xf32>
    %135 = vector.extract_strided_slice %117 {offsets = [0, 64], sizes = [2, 32], strides = [1, 1]} : vector<2x96xf32> to vector<2x32xf32>
    %136 = vector.extract_strided_slice %118 {offsets = [0, 64], sizes = [2, 32], strides = [1, 1]} : vector<2x96xf32> to vector<2x32xf32>
    %137 = arith.addf %136, %19 : vector<2x32xf32>
    %138 = arith.mulf %126, %137 : vector<2x32xf32>
    %139 = arith.addf %135, %138 : vector<2x32xf32>
    %140 = math.tanh %139 : vector<2x32xf32>
    %141 = arith.subf %86, %140 : vector<2x32xf32>
    %142 = arith.mulf %134, %141 : vector<2x32xf32>
    %143 = arith.addf %140, %142 : vector<2x32xf32>
    %144 = arith.truncf %143 : vector<2x32xf32> to vector<2x32xbf16>
    %145 = vector.extract_strided_slice %26 {offsets = [4, 0], sizes = [2, 96], strides = [1, 1]} : vector<16x96xf32> to vector<2x96xf32>
    %cst_33 = arith.constant dense<0.000000e+00> : vector<2x96xf32>
    %146 = tpu.matmul %115, %1, %cst_33 {dimension_numbers = #tpu.dot_dimension_numbers<[1], [0], [0], [1], [0, 0, 1, 1], [], []>} : vector<2x32xbf16>, vector<32x96xbf16>, vector<2x96xf32> -> vector<2x96xf32>
    %147 = vector.extract_strided_slice %145 {offsets = [0, 0], sizes = [2, 32], strides = [1, 1]} : vector<2x96xf32> to vector<2x32xf32>
    %148 = vector.extract_strided_slice %146 {offsets = [0, 0], sizes = [2, 32], strides = [1, 1]} : vector<2x96xf32> to vector<2x32xf32>
    %149 = arith.addf %147, %148 : vector<2x32xf32>
    %150 = arith.negf %149 : vector<2x32xf32>
    %151 = math.exp %150 : vector<2x32xf32>
    %cst_34 = arith.constant 1.000000e+00 : f32
    %152 = vector.broadcast %cst_34 : f32 to vector<2x32xf32>
    %153 = arith.addf %152, %151 : vector<2x32xf32>
    %154 = arith.divf %152, %153 : vector<2x32xf32>
    %155 = vector.extract_strided_slice %145 {offsets = [0, 32], sizes = [2, 32], strides = [1, 1]} : vector<2x96xf32> to vector<2x32xf32>
    %156 = vector.extract_strided_slice %146 {offsets = [0, 32], sizes = [2, 32], strides = [1, 1]} : vector<2x96xf32> to vector<2x32xf32>
    %157 = arith.addf %155, %156 : vector<2x32xf32>
    %158 = arith.negf %157 : vector<2x32xf32>
    %159 = math.exp %158 : vector<2x32xf32>
    %cst_35 = arith.constant 1.000000e+00 : f32
    %160 = vector.broadcast %cst_35 : f32 to vector<2x32xf32>
    %161 = arith.addf %160, %159 : vector<2x32xf32>
    %162 = arith.divf %160, %161 : vector<2x32xf32>
    %163 = vector.extract_strided_slice %145 {offsets = [0, 64], sizes = [2, 32], strides = [1, 1]} : vector<2x96xf32> to vector<2x32xf32>
    %164 = vector.extract_strided_slice %146 {offsets = [0, 64], sizes = [2, 32], strides = [1, 1]} : vector<2x96xf32> to vector<2x32xf32>
    %165 = arith.addf %164, %16 : vector<2x32xf32>
    %166 = arith.mulf %154, %165 : vector<2x32xf32>
    %167 = arith.addf %163, %166 : vector<2x32xf32>
    %168 = math.tanh %167 : vector<2x32xf32>
    %169 = arith.subf %114, %168 : vector<2x32xf32>
    %170 = arith.mulf %162, %169 : vector<2x32xf32>
    %171 = arith.addf %168, %170 : vector<2x32xf32>
    %172 = arith.truncf %171 : vector<2x32xf32> to vector<2x32xbf16>
    %cst_36 = arith.constant dense<0.000000e+00> : vector<2x96xf32>
    %173 = tpu.matmul %172, %5, %cst_36 {dimension_numbers = #tpu.dot_dimension_numbers<[1], [0], [0], [1], [0, 0, 1, 1], [], []>} : vector<2x32xbf16>, vector<32x96xbf16>, vector<2x96xf32> -> vector<2x96xf32>
    %174 = arith.addf %173, %13 : vector<2x96xf32>
    %cst_37 = arith.constant dense<0.000000e+00> : vector<2x96xf32>
    %175 = tpu.matmul %144, %3, %cst_37 {dimension_numbers = #tpu.dot_dimension_numbers<[1], [0], [0], [1], [0, 0, 1, 1], [], []>} : vector<2x32xbf16>, vector<32x96xbf16>, vector<2x96xf32> -> vector<2x96xf32>
    %176 = vector.extract_strided_slice %174 {offsets = [0, 0], sizes = [2, 32], strides = [1, 1]} : vector<2x96xf32> to vector<2x32xf32>
    %177 = vector.extract_strided_slice %175 {offsets = [0, 0], sizes = [2, 32], strides = [1, 1]} : vector<2x96xf32> to vector<2x32xf32>
    %178 = arith.addf %176, %177 : vector<2x32xf32>
    %179 = arith.negf %178 : vector<2x32xf32>
    %180 = math.exp %179 : vector<2x32xf32>
    %cst_38 = arith.constant 1.000000e+00 : f32
    %181 = vector.broadcast %cst_38 : f32 to vector<2x32xf32>
    %182 = arith.addf %181, %180 : vector<2x32xf32>
    %183 = arith.divf %181, %182 : vector<2x32xf32>
    %184 = vector.extract_strided_slice %174 {offsets = [0, 32], sizes = [2, 32], strides = [1, 1]} : vector<2x96xf32> to vector<2x32xf32>
    %185 = vector.extract_strided_slice %175 {offsets = [0, 32], sizes = [2, 32], strides = [1, 1]} : vector<2x96xf32> to vector<2x32xf32>
    %186 = arith.addf %184, %185 : vector<2x32xf32>
    %187 = arith.negf %186 : vector<2x32xf32>
    %188 = math.exp %187 : vector<2x32xf32>
    %cst_39 = arith.constant 1.000000e+00 : f32
    %189 = vector.broadcast %cst_39 : f32 to vector<2x32xf32>
    %190 = arith.addf %189, %188 : vector<2x32xf32>
    %191 = arith.divf %189, %190 : vector<2x32xf32>
    %192 = vector.extract_strided_slice %174 {offsets = [0, 64], sizes = [2, 32], strides = [1, 1]} : vector<2x96xf32> to vector<2x32xf32>
    %193 = vector.extract_strided_slice %175 {offsets = [0, 64], sizes = [2, 32], strides = [1, 1]} : vector<2x96xf32> to vector<2x32xf32>
    %194 = arith.addf %193, %19 : vector<2x32xf32>
    %195 = arith.mulf %183, %194 : vector<2x32xf32>
    %196 = arith.addf %192, %195 : vector<2x32xf32>
    %197 = math.tanh %196 : vector<2x32xf32>
    %198 = arith.subf %143, %197 : vector<2x32xf32>
    %199 = arith.mulf %191, %198 : vector<2x32xf32>
    %200 = arith.addf %197, %199 : vector<2x32xf32>
    %201 = arith.truncf %200 : vector<2x32xf32> to vector<2x32xbf16>
    %202 = vector.extract_strided_slice %26 {offsets = [6, 0], sizes = [2, 96], strides = [1, 1]} : vector<16x96xf32> to vector<2x96xf32>
    %cst_40 = arith.constant dense<0.000000e+00> : vector<2x96xf32>
    %203 = tpu.matmul %172, %1, %cst_40 {dimension_numbers = #tpu.dot_dimension_numbers<[1], [0], [0], [1], [0, 0, 1, 1], [], []>} : vector<2x32xbf16>, vector<32x96xbf16>, vector<2x96xf32> -> vector<2x96xf32>
    %204 = vector.extract_strided_slice %202 {offsets = [0, 0], sizes = [2, 32], strides = [1, 1]} : vector<2x96xf32> to vector<2x32xf32>
    %205 = vector.extract_strided_slice %203 {offsets = [0, 0], sizes = [2, 32], strides = [1, 1]} : vector<2x96xf32> to vector<2x32xf32>
    %206 = arith.addf %204, %205 : vector<2x32xf32>
    %207 = arith.negf %206 : vector<2x32xf32>
    %208 = math.exp %207 : vector<2x32xf32>
    %cst_41 = arith.constant 1.000000e+00 : f32
    %209 = vector.broadcast %cst_41 : f32 to vector<2x32xf32>
    %210 = arith.addf %209, %208 : vector<2x32xf32>
    %211 = arith.divf %209, %210 : vector<2x32xf32>
    %212 = vector.extract_strided_slice %202 {offsets = [0, 32], sizes = [2, 32], strides = [1, 1]} : vector<2x96xf32> to vector<2x32xf32>
    %213 = vector.extract_strided_slice %203 {offsets = [0, 32], sizes = [2, 32], strides = [1, 1]} : vector<2x96xf32> to vector<2x32xf32>
    %214 = arith.addf %212, %213 : vector<2x32xf32>
    %215 = arith.negf %214 : vector<2x32xf32>
    %216 = math.exp %215 : vector<2x32xf32>
    %cst_42 = arith.constant 1.000000e+00 : f32
    %217 = vector.broadcast %cst_42 : f32 to vector<2x32xf32>
    %218 = arith.addf %217, %216 : vector<2x32xf32>
    %219 = arith.divf %217, %218 : vector<2x32xf32>
    %220 = vector.extract_strided_slice %202 {offsets = [0, 64], sizes = [2, 32], strides = [1, 1]} : vector<2x96xf32> to vector<2x32xf32>
    %221 = vector.extract_strided_slice %203 {offsets = [0, 64], sizes = [2, 32], strides = [1, 1]} : vector<2x96xf32> to vector<2x32xf32>
    %222 = arith.addf %221, %16 : vector<2x32xf32>
    %223 = arith.mulf %211, %222 : vector<2x32xf32>
    %224 = arith.addf %220, %223 : vector<2x32xf32>
    %225 = math.tanh %224 : vector<2x32xf32>
    %226 = arith.subf %171, %225 : vector<2x32xf32>
    %227 = arith.mulf %219, %226 : vector<2x32xf32>
    %228 = arith.addf %225, %227 : vector<2x32xf32>
    %229 = arith.truncf %228 : vector<2x32xf32> to vector<2x32xbf16>
    %cst_43 = arith.constant dense<0.000000e+00> : vector<2x96xf32>
    %230 = tpu.matmul %229, %5, %cst_43 {dimension_numbers = #tpu.dot_dimension_numbers<[1], [0], [0], [1], [0, 0, 1, 1], [], []>} : vector<2x32xbf16>, vector<32x96xbf16>, vector<2x96xf32> -> vector<2x96xf32>
    %231 = arith.addf %230, %13 : vector<2x96xf32>
    %cst_44 = arith.constant dense<0.000000e+00> : vector<2x96xf32>
    %232 = tpu.matmul %201, %3, %cst_44 {dimension_numbers = #tpu.dot_dimension_numbers<[1], [0], [0], [1], [0, 0, 1, 1], [], []>} : vector<2x32xbf16>, vector<32x96xbf16>, vector<2x96xf32> -> vector<2x96xf32>
    %233 = vector.extract_strided_slice %231 {offsets = [0, 0], sizes = [2, 32], strides = [1, 1]} : vector<2x96xf32> to vector<2x32xf32>
    %234 = vector.extract_strided_slice %232 {offsets = [0, 0], sizes = [2, 32], strides = [1, 1]} : vector<2x96xf32> to vector<2x32xf32>
    %235 = arith.addf %233, %234 : vector<2x32xf32>
    %236 = arith.negf %235 : vector<2x32xf32>
    %237 = math.exp %236 : vector<2x32xf32>
    %cst_45 = arith.constant 1.000000e+00 : f32
    %238 = vector.broadcast %cst_45 : f32 to vector<2x32xf32>
    %239 = arith.addf %238, %237 : vector<2x32xf32>
    %240 = arith.divf %238, %239 : vector<2x32xf32>
    %241 = vector.extract_strided_slice %231 {offsets = [0, 32], sizes = [2, 32], strides = [1, 1]} : vector<2x96xf32> to vector<2x32xf32>
    %242 = vector.extract_strided_slice %232 {offsets = [0, 32], sizes = [2, 32], strides = [1, 1]} : vector<2x96xf32> to vector<2x32xf32>
    %243 = arith.addf %241, %242 : vector<2x32xf32>
    %244 = arith.negf %243 : vector<2x32xf32>
    %245 = math.exp %244 : vector<2x32xf32>
    %cst_46 = arith.constant 1.000000e+00 : f32
    %246 = vector.broadcast %cst_46 : f32 to vector<2x32xf32>
    %247 = arith.addf %246, %245 : vector<2x32xf32>
    %248 = arith.divf %246, %247 : vector<2x32xf32>
    %249 = vector.extract_strided_slice %231 {offsets = [0, 64], sizes = [2, 32], strides = [1, 1]} : vector<2x96xf32> to vector<2x32xf32>
    %250 = vector.extract_strided_slice %232 {offsets = [0, 64], sizes = [2, 32], strides = [1, 1]} : vector<2x96xf32> to vector<2x32xf32>
    %251 = arith.addf %250, %19 : vector<2x32xf32>
    %252 = arith.mulf %240, %251 : vector<2x32xf32>
    %253 = arith.addf %249, %252 : vector<2x32xf32>
    %254 = math.tanh %253 : vector<2x32xf32>
    %255 = arith.subf %200, %254 : vector<2x32xf32>
    %256 = arith.mulf %248, %255 : vector<2x32xf32>
    %257 = arith.addf %254, %256 : vector<2x32xf32>
    %258 = arith.truncf %257 : vector<2x32xf32> to vector<2x32xbf16>
    %259 = vector.extract_strided_slice %26 {offsets = [8, 0], sizes = [2, 96], strides = [1, 1]} : vector<16x96xf32> to vector<2x96xf32>
    %cst_47 = arith.constant dense<0.000000e+00> : vector<2x96xf32>
    %260 = tpu.matmul %229, %1, %cst_47 {dimension_numbers = #tpu.dot_dimension_numbers<[1], [0], [0], [1], [0, 0, 1, 1], [], []>} : vector<2x32xbf16>, vector<32x96xbf16>, vector<2x96xf32> -> vector<2x96xf32>
    %261 = vector.extract_strided_slice %259 {offsets = [0, 0], sizes = [2, 32], strides = [1, 1]} : vector<2x96xf32> to vector<2x32xf32>
    %262 = vector.extract_strided_slice %260 {offsets = [0, 0], sizes = [2, 32], strides = [1, 1]} : vector<2x96xf32> to vector<2x32xf32>
    %263 = arith.addf %261, %262 : vector<2x32xf32>
    %264 = arith.negf %263 : vector<2x32xf32>
    %265 = math.exp %264 : vector<2x32xf32>
    %cst_48 = arith.constant 1.000000e+00 : f32
    %266 = vector.broadcast %cst_48 : f32 to vector<2x32xf32>
    %267 = arith.addf %266, %265 : vector<2x32xf32>
    %268 = arith.divf %266, %267 : vector<2x32xf32>
    %269 = vector.extract_strided_slice %259 {offsets = [0, 32], sizes = [2, 32], strides = [1, 1]} : vector<2x96xf32> to vector<2x32xf32>
    %270 = vector.extract_strided_slice %260 {offsets = [0, 32], sizes = [2, 32], strides = [1, 1]} : vector<2x96xf32> to vector<2x32xf32>
    %271 = arith.addf %269, %270 : vector<2x32xf32>
    %272 = arith.negf %271 : vector<2x32xf32>
    %273 = math.exp %272 : vector<2x32xf32>
    %cst_49 = arith.constant 1.000000e+00 : f32
    %274 = vector.broadcast %cst_49 : f32 to vector<2x32xf32>
    %275 = arith.addf %274, %273 : vector<2x32xf32>
    %276 = arith.divf %274, %275 : vector<2x32xf32>
    %277 = vector.extract_strided_slice %259 {offsets = [0, 64], sizes = [2, 32], strides = [1, 1]} : vector<2x96xf32> to vector<2x32xf32>
    %278 = vector.extract_strided_slice %260 {offsets = [0, 64], sizes = [2, 32], strides = [1, 1]} : vector<2x96xf32> to vector<2x32xf32>
    %279 = arith.addf %278, %16 : vector<2x32xf32>
    %280 = arith.mulf %268, %279 : vector<2x32xf32>
    %281 = arith.addf %277, %280 : vector<2x32xf32>
    %282 = math.tanh %281 : vector<2x32xf32>
    %283 = arith.subf %228, %282 : vector<2x32xf32>
    %284 = arith.mulf %276, %283 : vector<2x32xf32>
    %285 = arith.addf %282, %284 : vector<2x32xf32>
    %286 = arith.truncf %285 : vector<2x32xf32> to vector<2x32xbf16>
    %cst_50 = arith.constant dense<0.000000e+00> : vector<2x96xf32>
    %287 = tpu.matmul %286, %5, %cst_50 {dimension_numbers = #tpu.dot_dimension_numbers<[1], [0], [0], [1], [0, 0, 1, 1], [], []>} : vector<2x32xbf16>, vector<32x96xbf16>, vector<2x96xf32> -> vector<2x96xf32>
    %288 = arith.addf %287, %13 : vector<2x96xf32>
    %cst_51 = arith.constant dense<0.000000e+00> : vector<2x96xf32>
    %289 = tpu.matmul %258, %3, %cst_51 {dimension_numbers = #tpu.dot_dimension_numbers<[1], [0], [0], [1], [0, 0, 1, 1], [], []>} : vector<2x32xbf16>, vector<32x96xbf16>, vector<2x96xf32> -> vector<2x96xf32>
    %290 = vector.extract_strided_slice %288 {offsets = [0, 0], sizes = [2, 32], strides = [1, 1]} : vector<2x96xf32> to vector<2x32xf32>
    %291 = vector.extract_strided_slice %289 {offsets = [0, 0], sizes = [2, 32], strides = [1, 1]} : vector<2x96xf32> to vector<2x32xf32>
    %292 = arith.addf %290, %291 : vector<2x32xf32>
    %293 = arith.negf %292 : vector<2x32xf32>
    %294 = math.exp %293 : vector<2x32xf32>
    %cst_52 = arith.constant 1.000000e+00 : f32
    %295 = vector.broadcast %cst_52 : f32 to vector<2x32xf32>
    %296 = arith.addf %295, %294 : vector<2x32xf32>
    %297 = arith.divf %295, %296 : vector<2x32xf32>
    %298 = vector.extract_strided_slice %288 {offsets = [0, 32], sizes = [2, 32], strides = [1, 1]} : vector<2x96xf32> to vector<2x32xf32>
    %299 = vector.extract_strided_slice %289 {offsets = [0, 32], sizes = [2, 32], strides = [1, 1]} : vector<2x96xf32> to vector<2x32xf32>
    %300 = arith.addf %298, %299 : vector<2x32xf32>
    %301 = arith.negf %300 : vector<2x32xf32>
    %302 = math.exp %301 : vector<2x32xf32>
    %cst_53 = arith.constant 1.000000e+00 : f32
    %303 = vector.broadcast %cst_53 : f32 to vector<2x32xf32>
    %304 = arith.addf %303, %302 : vector<2x32xf32>
    %305 = arith.divf %303, %304 : vector<2x32xf32>
    %306 = vector.extract_strided_slice %288 {offsets = [0, 64], sizes = [2, 32], strides = [1, 1]} : vector<2x96xf32> to vector<2x32xf32>
    %307 = vector.extract_strided_slice %289 {offsets = [0, 64], sizes = [2, 32], strides = [1, 1]} : vector<2x96xf32> to vector<2x32xf32>
    %308 = arith.addf %307, %19 : vector<2x32xf32>
    %309 = arith.mulf %297, %308 : vector<2x32xf32>
    %310 = arith.addf %306, %309 : vector<2x32xf32>
    %311 = math.tanh %310 : vector<2x32xf32>
    %312 = arith.subf %257, %311 : vector<2x32xf32>
    %313 = arith.mulf %305, %312 : vector<2x32xf32>
    %314 = arith.addf %311, %313 : vector<2x32xf32>
    %315 = arith.truncf %314 : vector<2x32xf32> to vector<2x32xbf16>
    %316 = vector.extract_strided_slice %26 {offsets = [10, 0], sizes = [2, 96], strides = [1, 1]} : vector<16x96xf32> to vector<2x96xf32>
    %cst_54 = arith.constant dense<0.000000e+00> : vector<2x96xf32>
    %317 = tpu.matmul %286, %1, %cst_54 {dimension_numbers = #tpu.dot_dimension_numbers<[1], [0], [0], [1], [0, 0, 1, 1], [], []>} : vector<2x32xbf16>, vector<32x96xbf16>, vector<2x96xf32> -> vector<2x96xf32>
    %318 = vector.extract_strided_slice %316 {offsets = [0, 0], sizes = [2, 32], strides = [1, 1]} : vector<2x96xf32> to vector<2x32xf32>
    %319 = vector.extract_strided_slice %317 {offsets = [0, 0], sizes = [2, 32], strides = [1, 1]} : vector<2x96xf32> to vector<2x32xf32>
    %320 = arith.addf %318, %319 : vector<2x32xf32>
    %321 = arith.negf %320 : vector<2x32xf32>
    %322 = math.exp %321 : vector<2x32xf32>
    %cst_55 = arith.constant 1.000000e+00 : f32
    %323 = vector.broadcast %cst_55 : f32 to vector<2x32xf32>
    %324 = arith.addf %323, %322 : vector<2x32xf32>
    %325 = arith.divf %323, %324 : vector<2x32xf32>
    %326 = vector.extract_strided_slice %316 {offsets = [0, 32], sizes = [2, 32], strides = [1, 1]} : vector<2x96xf32> to vector<2x32xf32>
    %327 = vector.extract_strided_slice %317 {offsets = [0, 32], sizes = [2, 32], strides = [1, 1]} : vector<2x96xf32> to vector<2x32xf32>
    %328 = arith.addf %326, %327 : vector<2x32xf32>
    %329 = arith.negf %328 : vector<2x32xf32>
    %330 = math.exp %329 : vector<2x32xf32>
    %cst_56 = arith.constant 1.000000e+00 : f32
    %331 = vector.broadcast %cst_56 : f32 to vector<2x32xf32>
    %332 = arith.addf %331, %330 : vector<2x32xf32>
    %333 = arith.divf %331, %332 : vector<2x32xf32>
    %334 = vector.extract_strided_slice %316 {offsets = [0, 64], sizes = [2, 32], strides = [1, 1]} : vector<2x96xf32> to vector<2x32xf32>
    %335 = vector.extract_strided_slice %317 {offsets = [0, 64], sizes = [2, 32], strides = [1, 1]} : vector<2x96xf32> to vector<2x32xf32>
    %336 = arith.addf %335, %16 : vector<2x32xf32>
    %337 = arith.mulf %325, %336 : vector<2x32xf32>
    %338 = arith.addf %334, %337 : vector<2x32xf32>
    %339 = math.tanh %338 : vector<2x32xf32>
    %340 = arith.subf %285, %339 : vector<2x32xf32>
    %341 = arith.mulf %333, %340 : vector<2x32xf32>
    %342 = arith.addf %339, %341 : vector<2x32xf32>
    %343 = arith.truncf %342 : vector<2x32xf32> to vector<2x32xbf16>
    %cst_57 = arith.constant dense<0.000000e+00> : vector<2x96xf32>
    %344 = tpu.matmul %343, %5, %cst_57 {dimension_numbers = #tpu.dot_dimension_numbers<[1], [0], [0], [1], [0, 0, 1, 1], [], []>} : vector<2x32xbf16>, vector<32x96xbf16>, vector<2x96xf32> -> vector<2x96xf32>
    %345 = arith.addf %344, %13 : vector<2x96xf32>
    %cst_58 = arith.constant dense<0.000000e+00> : vector<2x96xf32>
    %346 = tpu.matmul %315, %3, %cst_58 {dimension_numbers = #tpu.dot_dimension_numbers<[1], [0], [0], [1], [0, 0, 1, 1], [], []>} : vector<2x32xbf16>, vector<32x96xbf16>, vector<2x96xf32> -> vector<2x96xf32>
    %347 = vector.extract_strided_slice %345 {offsets = [0, 0], sizes = [2, 32], strides = [1, 1]} : vector<2x96xf32> to vector<2x32xf32>
    %348 = vector.extract_strided_slice %346 {offsets = [0, 0], sizes = [2, 32], strides = [1, 1]} : vector<2x96xf32> to vector<2x32xf32>
    %349 = arith.addf %347, %348 : vector<2x32xf32>
    %350 = arith.negf %349 : vector<2x32xf32>
    %351 = math.exp %350 : vector<2x32xf32>
    %cst_59 = arith.constant 1.000000e+00 : f32
    %352 = vector.broadcast %cst_59 : f32 to vector<2x32xf32>
    %353 = arith.addf %352, %351 : vector<2x32xf32>
    %354 = arith.divf %352, %353 : vector<2x32xf32>
    %355 = vector.extract_strided_slice %345 {offsets = [0, 32], sizes = [2, 32], strides = [1, 1]} : vector<2x96xf32> to vector<2x32xf32>
    %356 = vector.extract_strided_slice %346 {offsets = [0, 32], sizes = [2, 32], strides = [1, 1]} : vector<2x96xf32> to vector<2x32xf32>
    %357 = arith.addf %355, %356 : vector<2x32xf32>
    %358 = arith.negf %357 : vector<2x32xf32>
    %359 = math.exp %358 : vector<2x32xf32>
    %cst_60 = arith.constant 1.000000e+00 : f32
    %360 = vector.broadcast %cst_60 : f32 to vector<2x32xf32>
    %361 = arith.addf %360, %359 : vector<2x32xf32>
    %362 = arith.divf %360, %361 : vector<2x32xf32>
    %363 = vector.extract_strided_slice %345 {offsets = [0, 64], sizes = [2, 32], strides = [1, 1]} : vector<2x96xf32> to vector<2x32xf32>
    %364 = vector.extract_strided_slice %346 {offsets = [0, 64], sizes = [2, 32], strides = [1, 1]} : vector<2x96xf32> to vector<2x32xf32>
    %365 = arith.addf %364, %19 : vector<2x32xf32>
    %366 = arith.mulf %354, %365 : vector<2x32xf32>
    %367 = arith.addf %363, %366 : vector<2x32xf32>
    %368 = math.tanh %367 : vector<2x32xf32>
    %369 = arith.subf %314, %368 : vector<2x32xf32>
    %370 = arith.mulf %362, %369 : vector<2x32xf32>
    %371 = arith.addf %368, %370 : vector<2x32xf32>
    %372 = arith.truncf %371 : vector<2x32xf32> to vector<2x32xbf16>
    %373 = vector.extract_strided_slice %26 {offsets = [12, 0], sizes = [2, 96], strides = [1, 1]} : vector<16x96xf32> to vector<2x96xf32>
    %cst_61 = arith.constant dense<0.000000e+00> : vector<2x96xf32>
    %374 = tpu.matmul %343, %1, %cst_61 {dimension_numbers = #tpu.dot_dimension_numbers<[1], [0], [0], [1], [0, 0, 1, 1], [], []>} : vector<2x32xbf16>, vector<32x96xbf16>, vector<2x96xf32> -> vector<2x96xf32>
    %375 = vector.extract_strided_slice %373 {offsets = [0, 0], sizes = [2, 32], strides = [1, 1]} : vector<2x96xf32> to vector<2x32xf32>
    %376 = vector.extract_strided_slice %374 {offsets = [0, 0], sizes = [2, 32], strides = [1, 1]} : vector<2x96xf32> to vector<2x32xf32>
    %377 = arith.addf %375, %376 : vector<2x32xf32>
    %378 = arith.negf %377 : vector<2x32xf32>
    %379 = math.exp %378 : vector<2x32xf32>
    %cst_62 = arith.constant 1.000000e+00 : f32
    %380 = vector.broadcast %cst_62 : f32 to vector<2x32xf32>
    %381 = arith.addf %380, %379 : vector<2x32xf32>
    %382 = arith.divf %380, %381 : vector<2x32xf32>
    %383 = vector.extract_strided_slice %373 {offsets = [0, 32], sizes = [2, 32], strides = [1, 1]} : vector<2x96xf32> to vector<2x32xf32>
    %384 = vector.extract_strided_slice %374 {offsets = [0, 32], sizes = [2, 32], strides = [1, 1]} : vector<2x96xf32> to vector<2x32xf32>
    %385 = arith.addf %383, %384 : vector<2x32xf32>
    %386 = arith.negf %385 : vector<2x32xf32>
    %387 = math.exp %386 : vector<2x32xf32>
    %cst_63 = arith.constant 1.000000e+00 : f32
    %388 = vector.broadcast %cst_63 : f32 to vector<2x32xf32>
    %389 = arith.addf %388, %387 : vector<2x32xf32>
    %390 = arith.divf %388, %389 : vector<2x32xf32>
    %391 = vector.extract_strided_slice %373 {offsets = [0, 64], sizes = [2, 32], strides = [1, 1]} : vector<2x96xf32> to vector<2x32xf32>
    %392 = vector.extract_strided_slice %374 {offsets = [0, 64], sizes = [2, 32], strides = [1, 1]} : vector<2x96xf32> to vector<2x32xf32>
    %393 = arith.addf %392, %16 : vector<2x32xf32>
    %394 = arith.mulf %382, %393 : vector<2x32xf32>
    %395 = arith.addf %391, %394 : vector<2x32xf32>
    %396 = math.tanh %395 : vector<2x32xf32>
    %397 = arith.subf %342, %396 : vector<2x32xf32>
    %398 = arith.mulf %390, %397 : vector<2x32xf32>
    %399 = arith.addf %396, %398 : vector<2x32xf32>
    %400 = arith.truncf %399 : vector<2x32xf32> to vector<2x32xbf16>
    %cst_64 = arith.constant dense<0.000000e+00> : vector<2x96xf32>
    %401 = tpu.matmul %400, %5, %cst_64 {dimension_numbers = #tpu.dot_dimension_numbers<[1], [0], [0], [1], [0, 0, 1, 1], [], []>} : vector<2x32xbf16>, vector<32x96xbf16>, vector<2x96xf32> -> vector<2x96xf32>
    %402 = arith.addf %401, %13 : vector<2x96xf32>
    %cst_65 = arith.constant dense<0.000000e+00> : vector<2x96xf32>
    %403 = tpu.matmul %372, %3, %cst_65 {dimension_numbers = #tpu.dot_dimension_numbers<[1], [0], [0], [1], [0, 0, 1, 1], [], []>} : vector<2x32xbf16>, vector<32x96xbf16>, vector<2x96xf32> -> vector<2x96xf32>
    %404 = vector.extract_strided_slice %402 {offsets = [0, 0], sizes = [2, 32], strides = [1, 1]} : vector<2x96xf32> to vector<2x32xf32>
    %405 = vector.extract_strided_slice %403 {offsets = [0, 0], sizes = [2, 32], strides = [1, 1]} : vector<2x96xf32> to vector<2x32xf32>
    %406 = arith.addf %404, %405 : vector<2x32xf32>
    %407 = arith.negf %406 : vector<2x32xf32>
    %408 = math.exp %407 : vector<2x32xf32>
    %cst_66 = arith.constant 1.000000e+00 : f32
    %409 = vector.broadcast %cst_66 : f32 to vector<2x32xf32>
    %410 = arith.addf %409, %408 : vector<2x32xf32>
    %411 = arith.divf %409, %410 : vector<2x32xf32>
    %412 = vector.extract_strided_slice %402 {offsets = [0, 32], sizes = [2, 32], strides = [1, 1]} : vector<2x96xf32> to vector<2x32xf32>
    %413 = vector.extract_strided_slice %403 {offsets = [0, 32], sizes = [2, 32], strides = [1, 1]} : vector<2x96xf32> to vector<2x32xf32>
    %414 = arith.addf %412, %413 : vector<2x32xf32>
    %415 = arith.negf %414 : vector<2x32xf32>
    %416 = math.exp %415 : vector<2x32xf32>
    %cst_67 = arith.constant 1.000000e+00 : f32
    %417 = vector.broadcast %cst_67 : f32 to vector<2x32xf32>
    %418 = arith.addf %417, %416 : vector<2x32xf32>
    %419 = arith.divf %417, %418 : vector<2x32xf32>
    %420 = vector.extract_strided_slice %402 {offsets = [0, 64], sizes = [2, 32], strides = [1, 1]} : vector<2x96xf32> to vector<2x32xf32>
    %421 = vector.extract_strided_slice %403 {offsets = [0, 64], sizes = [2, 32], strides = [1, 1]} : vector<2x96xf32> to vector<2x32xf32>
    %422 = arith.addf %421, %19 : vector<2x32xf32>
    %423 = arith.mulf %411, %422 : vector<2x32xf32>
    %424 = arith.addf %420, %423 : vector<2x32xf32>
    %425 = math.tanh %424 : vector<2x32xf32>
    %426 = arith.subf %371, %425 : vector<2x32xf32>
    %427 = arith.mulf %419, %426 : vector<2x32xf32>
    %428 = arith.addf %425, %427 : vector<2x32xf32>
    %429 = arith.truncf %428 : vector<2x32xf32> to vector<2x32xbf16>
    %430 = vector.extract_strided_slice %26 {offsets = [14, 0], sizes = [2, 96], strides = [1, 1]} : vector<16x96xf32> to vector<2x96xf32>
    %cst_68 = arith.constant dense<0.000000e+00> : vector<2x96xf32>
    %431 = tpu.matmul %400, %1, %cst_68 {dimension_numbers = #tpu.dot_dimension_numbers<[1], [0], [0], [1], [0, 0, 1, 1], [], []>} : vector<2x32xbf16>, vector<32x96xbf16>, vector<2x96xf32> -> vector<2x96xf32>
    %432 = vector.extract_strided_slice %430 {offsets = [0, 0], sizes = [2, 32], strides = [1, 1]} : vector<2x96xf32> to vector<2x32xf32>
    %433 = vector.extract_strided_slice %431 {offsets = [0, 0], sizes = [2, 32], strides = [1, 1]} : vector<2x96xf32> to vector<2x32xf32>
    %434 = arith.addf %432, %433 : vector<2x32xf32>
    %435 = arith.negf %434 : vector<2x32xf32>
    %436 = math.exp %435 : vector<2x32xf32>
    %cst_69 = arith.constant 1.000000e+00 : f32
    %437 = vector.broadcast %cst_69 : f32 to vector<2x32xf32>
    %438 = arith.addf %437, %436 : vector<2x32xf32>
    %439 = arith.divf %437, %438 : vector<2x32xf32>
    %440 = vector.extract_strided_slice %430 {offsets = [0, 32], sizes = [2, 32], strides = [1, 1]} : vector<2x96xf32> to vector<2x32xf32>
    %441 = vector.extract_strided_slice %431 {offsets = [0, 32], sizes = [2, 32], strides = [1, 1]} : vector<2x96xf32> to vector<2x32xf32>
    %442 = arith.addf %440, %441 : vector<2x32xf32>
    %443 = arith.negf %442 : vector<2x32xf32>
    %444 = math.exp %443 : vector<2x32xf32>
    %cst_70 = arith.constant 1.000000e+00 : f32
    %445 = vector.broadcast %cst_70 : f32 to vector<2x32xf32>
    %446 = arith.addf %445, %444 : vector<2x32xf32>
    %447 = arith.divf %445, %446 : vector<2x32xf32>
    %448 = vector.extract_strided_slice %430 {offsets = [0, 64], sizes = [2, 32], strides = [1, 1]} : vector<2x96xf32> to vector<2x32xf32>
    %449 = vector.extract_strided_slice %431 {offsets = [0, 64], sizes = [2, 32], strides = [1, 1]} : vector<2x96xf32> to vector<2x32xf32>
    %450 = arith.addf %449, %16 : vector<2x32xf32>
    %451 = arith.mulf %439, %450 : vector<2x32xf32>
    %452 = arith.addf %448, %451 : vector<2x32xf32>
    %453 = math.tanh %452 : vector<2x32xf32>
    %454 = arith.subf %399, %453 : vector<2x32xf32>
    %455 = arith.mulf %447, %454 : vector<2x32xf32>
    %456 = arith.addf %453, %455 : vector<2x32xf32>
    %457 = arith.truncf %456 : vector<2x32xf32> to vector<2x32xbf16>
    %cst_71 = arith.constant dense<0.000000e+00> : vector<2x96xf32>
    %458 = tpu.matmul %457, %5, %cst_71 {dimension_numbers = #tpu.dot_dimension_numbers<[1], [0], [0], [1], [0, 0, 1, 1], [], []>} : vector<2x32xbf16>, vector<32x96xbf16>, vector<2x96xf32> -> vector<2x96xf32>
    %459 = arith.addf %458, %13 : vector<2x96xf32>
    %cst_72 = arith.constant dense<0.000000e+00> : vector<2x96xf32>
    %460 = tpu.matmul %429, %3, %cst_72 {dimension_numbers = #tpu.dot_dimension_numbers<[1], [0], [0], [1], [0, 0, 1, 1], [], []>} : vector<2x32xbf16>, vector<32x96xbf16>, vector<2x96xf32> -> vector<2x96xf32>
    %461 = vector.extract_strided_slice %459 {offsets = [0, 0], sizes = [2, 32], strides = [1, 1]} : vector<2x96xf32> to vector<2x32xf32>
    %462 = vector.extract_strided_slice %460 {offsets = [0, 0], sizes = [2, 32], strides = [1, 1]} : vector<2x96xf32> to vector<2x32xf32>
    %463 = arith.addf %461, %462 : vector<2x32xf32>
    %464 = arith.negf %463 : vector<2x32xf32>
    %465 = math.exp %464 : vector<2x32xf32>
    %cst_73 = arith.constant 1.000000e+00 : f32
    %466 = vector.broadcast %cst_73 : f32 to vector<2x32xf32>
    %467 = arith.addf %466, %465 : vector<2x32xf32>
    %468 = arith.divf %466, %467 : vector<2x32xf32>
    %469 = vector.extract_strided_slice %459 {offsets = [0, 32], sizes = [2, 32], strides = [1, 1]} : vector<2x96xf32> to vector<2x32xf32>
    %470 = vector.extract_strided_slice %460 {offsets = [0, 32], sizes = [2, 32], strides = [1, 1]} : vector<2x96xf32> to vector<2x32xf32>
    %471 = arith.addf %469, %470 : vector<2x32xf32>
    %472 = arith.negf %471 : vector<2x32xf32>
    %473 = math.exp %472 : vector<2x32xf32>
    %cst_74 = arith.constant 1.000000e+00 : f32
    %474 = vector.broadcast %cst_74 : f32 to vector<2x32xf32>
    %475 = arith.addf %474, %473 : vector<2x32xf32>
    %476 = arith.divf %474, %475 : vector<2x32xf32>
    %477 = vector.extract_strided_slice %459 {offsets = [0, 64], sizes = [2, 32], strides = [1, 1]} : vector<2x96xf32> to vector<2x32xf32>
    %478 = vector.extract_strided_slice %460 {offsets = [0, 64], sizes = [2, 32], strides = [1, 1]} : vector<2x96xf32> to vector<2x32xf32>
    %479 = arith.addf %478, %19 : vector<2x32xf32>
    %480 = arith.mulf %468, %479 : vector<2x32xf32>
    %481 = arith.addf %477, %480 : vector<2x32xf32>
    %482 = math.tanh %481 : vector<2x32xf32>
    %483 = arith.subf %428, %482 : vector<2x32xf32>
    %484 = arith.mulf %476, %483 : vector<2x32xf32>
    %485 = arith.addf %482, %484 : vector<2x32xf32>
    %486 = arith.truncf %485 : vector<2x32xf32> to vector<2x32xbf16>
    %cst_75 = arith.constant dense<0.000000e+00> : vector<2x96xf32>
    %487 = tpu.matmul %457, %1, %cst_75 {dimension_numbers = #tpu.dot_dimension_numbers<[1], [0], [0], [1], [0, 0, 1, 1], [], []>} : vector<2x32xbf16>, vector<32x96xbf16>, vector<2x96xf32> -> vector<2x96xf32>
    %488 = vector.extract_strided_slice %10 {offsets = [0, 0], sizes = [2, 32], strides = [1, 1]} : vector<2x96xf32> to vector<2x32xf32>
    %489 = vector.extract_strided_slice %487 {offsets = [0, 0], sizes = [2, 32], strides = [1, 1]} : vector<2x96xf32> to vector<2x32xf32>
    %490 = arith.addf %488, %489 : vector<2x32xf32>
    %491 = arith.negf %490 : vector<2x32xf32>
    %492 = math.exp %491 : vector<2x32xf32>
    %cst_76 = arith.constant 1.000000e+00 : f32
    %493 = vector.broadcast %cst_76 : f32 to vector<2x32xf32>
    %494 = arith.addf %493, %492 : vector<2x32xf32>
    %495 = arith.divf %493, %494 : vector<2x32xf32>
    %496 = vector.extract_strided_slice %10 {offsets = [0, 32], sizes = [2, 32], strides = [1, 1]} : vector<2x96xf32> to vector<2x32xf32>
    %497 = vector.extract_strided_slice %487 {offsets = [0, 32], sizes = [2, 32], strides = [1, 1]} : vector<2x96xf32> to vector<2x32xf32>
    %498 = arith.addf %496, %497 : vector<2x32xf32>
    %499 = arith.negf %498 : vector<2x32xf32>
    %500 = math.exp %499 : vector<2x32xf32>
    %cst_77 = arith.constant 1.000000e+00 : f32
    %501 = vector.broadcast %cst_77 : f32 to vector<2x32xf32>
    %502 = arith.addf %501, %500 : vector<2x32xf32>
    %503 = arith.divf %501, %502 : vector<2x32xf32>
    %504 = vector.extract_strided_slice %10 {offsets = [0, 64], sizes = [2, 32], strides = [1, 1]} : vector<2x96xf32> to vector<2x32xf32>
    %505 = vector.extract_strided_slice %487 {offsets = [0, 64], sizes = [2, 32], strides = [1, 1]} : vector<2x96xf32> to vector<2x32xf32>
    %506 = arith.addf %505, %16 : vector<2x32xf32>
    %507 = arith.mulf %495, %506 : vector<2x32xf32>
    %508 = arith.addf %504, %507 : vector<2x32xf32>
    %509 = math.tanh %508 : vector<2x32xf32>
    %510 = arith.subf %456, %509 : vector<2x32xf32>
    %511 = arith.mulf %503, %510 : vector<2x32xf32>
    %512 = arith.addf %509, %511 : vector<2x32xf32>
    %513 = arith.truncf %512 : vector<2x32xf32> to vector<2x32xbf16>
    %cst_78 = arith.constant dense<0.000000e+00> : vector<2x96xf32>
    %514 = tpu.matmul %513, %5, %cst_78 {dimension_numbers = #tpu.dot_dimension_numbers<[1], [0], [0], [1], [0, 0, 1, 1], [], []>} : vector<2x32xbf16>, vector<32x96xbf16>, vector<2x96xf32> -> vector<2x96xf32>
    %515 = arith.addf %514, %13 : vector<2x96xf32>
    %cst_79 = arith.constant dense<0.000000e+00> : vector<2x96xf32>
    %516 = tpu.matmul %486, %3, %cst_79 {dimension_numbers = #tpu.dot_dimension_numbers<[1], [0], [0], [1], [0, 0, 1, 1], [], []>} : vector<2x32xbf16>, vector<32x96xbf16>, vector<2x96xf32> -> vector<2x96xf32>
    %517 = vector.extract_strided_slice %515 {offsets = [0, 0], sizes = [2, 32], strides = [1, 1]} : vector<2x96xf32> to vector<2x32xf32>
    %518 = vector.extract_strided_slice %516 {offsets = [0, 0], sizes = [2, 32], strides = [1, 1]} : vector<2x96xf32> to vector<2x32xf32>
    %519 = arith.addf %517, %518 : vector<2x32xf32>
    %520 = arith.negf %519 : vector<2x32xf32>
    %521 = math.exp %520 : vector<2x32xf32>
    %cst_80 = arith.constant 1.000000e+00 : f32
    %522 = vector.broadcast %cst_80 : f32 to vector<2x32xf32>
    %523 = arith.addf %522, %521 : vector<2x32xf32>
    %524 = arith.divf %522, %523 : vector<2x32xf32>
    %525 = vector.extract_strided_slice %515 {offsets = [0, 32], sizes = [2, 32], strides = [1, 1]} : vector<2x96xf32> to vector<2x32xf32>
    %526 = vector.extract_strided_slice %516 {offsets = [0, 32], sizes = [2, 32], strides = [1, 1]} : vector<2x96xf32> to vector<2x32xf32>
    %527 = arith.addf %525, %526 : vector<2x32xf32>
    %528 = arith.negf %527 : vector<2x32xf32>
    %529 = math.exp %528 : vector<2x32xf32>
    %cst_81 = arith.constant 1.000000e+00 : f32
    %530 = vector.broadcast %cst_81 : f32 to vector<2x32xf32>
    %531 = arith.addf %530, %529 : vector<2x32xf32>
    %532 = arith.divf %530, %531 : vector<2x32xf32>
    %533 = vector.extract_strided_slice %515 {offsets = [0, 64], sizes = [2, 32], strides = [1, 1]} : vector<2x96xf32> to vector<2x32xf32>
    %534 = vector.extract_strided_slice %516 {offsets = [0, 64], sizes = [2, 32], strides = [1, 1]} : vector<2x96xf32> to vector<2x32xf32>
    %535 = arith.addf %534, %19 : vector<2x32xf32>
    %536 = arith.mulf %524, %535 : vector<2x32xf32>
    %537 = arith.addf %533, %536 : vector<2x32xf32>
    %538 = math.tanh %537 : vector<2x32xf32>
    %539 = arith.subf %485, %538 : vector<2x32xf32>
    %540 = arith.mulf %532, %539 : vector<2x32xf32>
    %541 = arith.addf %538, %540 : vector<2x32xf32>
    %542 = arith.truncf %541 : vector<2x32xf32> to vector<2x32xbf16>
    %cst_82 = arith.constant dense<0.000000e+00> : vector<2x96xf32>
    %543 = tpu.matmul %513, %1, %cst_82 {dimension_numbers = #tpu.dot_dimension_numbers<[1], [0], [0], [1], [0, 0, 1, 1], [], []>} : vector<2x32xbf16>, vector<32x96xbf16>, vector<2x96xf32> -> vector<2x96xf32>
    %544 = vector.extract_strided_slice %10 {offsets = [0, 0], sizes = [2, 32], strides = [1, 1]} : vector<2x96xf32> to vector<2x32xf32>
    %545 = vector.extract_strided_slice %543 {offsets = [0, 0], sizes = [2, 32], strides = [1, 1]} : vector<2x96xf32> to vector<2x32xf32>
    %546 = arith.addf %544, %545 : vector<2x32xf32>
    %547 = arith.negf %546 : vector<2x32xf32>
    %548 = math.exp %547 : vector<2x32xf32>
    %cst_83 = arith.constant 1.000000e+00 : f32
    %549 = vector.broadcast %cst_83 : f32 to vector<2x32xf32>
    %550 = arith.addf %549, %548 : vector<2x32xf32>
    %551 = arith.divf %549, %550 : vector<2x32xf32>
    %552 = vector.extract_strided_slice %10 {offsets = [0, 32], sizes = [2, 32], strides = [1, 1]} : vector<2x96xf32> to vector<2x32xf32>
    %553 = vector.extract_strided_slice %543 {offsets = [0, 32], sizes = [2, 32], strides = [1, 1]} : vector<2x96xf32> to vector<2x32xf32>
    %554 = arith.addf %552, %553 : vector<2x32xf32>
    %555 = arith.negf %554 : vector<2x32xf32>
    %556 = math.exp %555 : vector<2x32xf32>
    %cst_84 = arith.constant 1.000000e+00 : f32
    %557 = vector.broadcast %cst_84 : f32 to vector<2x32xf32>
    %558 = arith.addf %557, %556 : vector<2x32xf32>
    %559 = arith.divf %557, %558 : vector<2x32xf32>
    %560 = vector.extract_strided_slice %10 {offsets = [0, 64], sizes = [2, 32], strides = [1, 1]} : vector<2x96xf32> to vector<2x32xf32>
    %561 = vector.extract_strided_slice %543 {offsets = [0, 64], sizes = [2, 32], strides = [1, 1]} : vector<2x96xf32> to vector<2x32xf32>
    %562 = arith.addf %561, %16 : vector<2x32xf32>
    %563 = arith.mulf %551, %562 : vector<2x32xf32>
    %564 = arith.addf %560, %563 : vector<2x32xf32>
    %565 = math.tanh %564 : vector<2x32xf32>
    %566 = arith.subf %512, %565 : vector<2x32xf32>
    %567 = arith.mulf %559, %566 : vector<2x32xf32>
    %568 = arith.addf %565, %567 : vector<2x32xf32>
    %569 = arith.truncf %568 : vector<2x32xf32> to vector<2x32xbf16>
    %cst_85 = arith.constant dense<0.000000e+00> : vector<2x96xf32>
    %570 = tpu.matmul %569, %5, %cst_85 {dimension_numbers = #tpu.dot_dimension_numbers<[1], [0], [0], [1], [0, 0, 1, 1], [], []>} : vector<2x32xbf16>, vector<32x96xbf16>, vector<2x96xf32> -> vector<2x96xf32>
    %571 = arith.addf %570, %13 : vector<2x96xf32>
    %cst_86 = arith.constant dense<0.000000e+00> : vector<2x96xf32>
    %572 = tpu.matmul %542, %3, %cst_86 {dimension_numbers = #tpu.dot_dimension_numbers<[1], [0], [0], [1], [0, 0, 1, 1], [], []>} : vector<2x32xbf16>, vector<32x96xbf16>, vector<2x96xf32> -> vector<2x96xf32>
    %573 = vector.extract_strided_slice %571 {offsets = [0, 0], sizes = [2, 32], strides = [1, 1]} : vector<2x96xf32> to vector<2x32xf32>
    %574 = vector.extract_strided_slice %572 {offsets = [0, 0], sizes = [2, 32], strides = [1, 1]} : vector<2x96xf32> to vector<2x32xf32>
    %575 = arith.addf %573, %574 : vector<2x32xf32>
    %576 = arith.negf %575 : vector<2x32xf32>
    %577 = math.exp %576 : vector<2x32xf32>
    %cst_87 = arith.constant 1.000000e+00 : f32
    %578 = vector.broadcast %cst_87 : f32 to vector<2x32xf32>
    %579 = arith.addf %578, %577 : vector<2x32xf32>
    %580 = arith.divf %578, %579 : vector<2x32xf32>
    %581 = vector.extract_strided_slice %571 {offsets = [0, 32], sizes = [2, 32], strides = [1, 1]} : vector<2x96xf32> to vector<2x32xf32>
    %582 = vector.extract_strided_slice %572 {offsets = [0, 32], sizes = [2, 32], strides = [1, 1]} : vector<2x96xf32> to vector<2x32xf32>
    %583 = arith.addf %581, %582 : vector<2x32xf32>
    %584 = arith.negf %583 : vector<2x32xf32>
    %585 = math.exp %584 : vector<2x32xf32>
    %cst_88 = arith.constant 1.000000e+00 : f32
    %586 = vector.broadcast %cst_88 : f32 to vector<2x32xf32>
    %587 = arith.addf %586, %585 : vector<2x32xf32>
    %588 = arith.divf %586, %587 : vector<2x32xf32>
    %589 = vector.extract_strided_slice %571 {offsets = [0, 64], sizes = [2, 32], strides = [1, 1]} : vector<2x96xf32> to vector<2x32xf32>
    %590 = vector.extract_strided_slice %572 {offsets = [0, 64], sizes = [2, 32], strides = [1, 1]} : vector<2x96xf32> to vector<2x32xf32>
    %591 = arith.addf %590, %19 : vector<2x32xf32>
    %592 = arith.mulf %580, %591 : vector<2x32xf32>
    %593 = arith.addf %589, %592 : vector<2x32xf32>
    %594 = math.tanh %593 : vector<2x32xf32>
    %595 = arith.subf %541, %594 : vector<2x32xf32>
    %596 = arith.mulf %588, %595 : vector<2x32xf32>
    %597 = arith.addf %594, %596 : vector<2x32xf32>
    %598 = arith.truncf %597 : vector<2x32xf32> to vector<2x32xbf16>
    %cst_89 = arith.constant dense<0.000000e+00> : vector<2x96xf32>
    %599 = tpu.matmul %569, %1, %cst_89 {dimension_numbers = #tpu.dot_dimension_numbers<[1], [0], [0], [1], [0, 0, 1, 1], [], []>} : vector<2x32xbf16>, vector<32x96xbf16>, vector<2x96xf32> -> vector<2x96xf32>
    %600 = vector.extract_strided_slice %10 {offsets = [0, 0], sizes = [2, 32], strides = [1, 1]} : vector<2x96xf32> to vector<2x32xf32>
    %601 = vector.extract_strided_slice %599 {offsets = [0, 0], sizes = [2, 32], strides = [1, 1]} : vector<2x96xf32> to vector<2x32xf32>
    %602 = arith.addf %600, %601 : vector<2x32xf32>
    %603 = arith.negf %602 : vector<2x32xf32>
    %604 = math.exp %603 : vector<2x32xf32>
    %cst_90 = arith.constant 1.000000e+00 : f32
    %605 = vector.broadcast %cst_90 : f32 to vector<2x32xf32>
    %606 = arith.addf %605, %604 : vector<2x32xf32>
    %607 = arith.divf %605, %606 : vector<2x32xf32>
    %608 = vector.extract_strided_slice %10 {offsets = [0, 32], sizes = [2, 32], strides = [1, 1]} : vector<2x96xf32> to vector<2x32xf32>
    %609 = vector.extract_strided_slice %599 {offsets = [0, 32], sizes = [2, 32], strides = [1, 1]} : vector<2x96xf32> to vector<2x32xf32>
    %610 = arith.addf %608, %609 : vector<2x32xf32>
    %611 = arith.negf %610 : vector<2x32xf32>
    %612 = math.exp %611 : vector<2x32xf32>
    %cst_91 = arith.constant 1.000000e+00 : f32
    %613 = vector.broadcast %cst_91 : f32 to vector<2x32xf32>
    %614 = arith.addf %613, %612 : vector<2x32xf32>
    %615 = arith.divf %613, %614 : vector<2x32xf32>
    %616 = vector.extract_strided_slice %10 {offsets = [0, 64], sizes = [2, 32], strides = [1, 1]} : vector<2x96xf32> to vector<2x32xf32>
    %617 = vector.extract_strided_slice %599 {offsets = [0, 64], sizes = [2, 32], strides = [1, 1]} : vector<2x96xf32> to vector<2x32xf32>
    %618 = arith.addf %617, %16 : vector<2x32xf32>
    %619 = arith.mulf %607, %618 : vector<2x32xf32>
    %620 = arith.addf %616, %619 : vector<2x32xf32>
    %621 = math.tanh %620 : vector<2x32xf32>
    %622 = arith.subf %568, %621 : vector<2x32xf32>
    %623 = arith.mulf %615, %622 : vector<2x32xf32>
    %624 = arith.addf %621, %623 : vector<2x32xf32>
    %625 = arith.truncf %624 : vector<2x32xf32> to vector<2x32xbf16>
    %cst_92 = arith.constant dense<0.000000e+00> : vector<2x96xf32>
    %626 = tpu.matmul %625, %5, %cst_92 {dimension_numbers = #tpu.dot_dimension_numbers<[1], [0], [0], [1], [0, 0, 1, 1], [], []>} : vector<2x32xbf16>, vector<32x96xbf16>, vector<2x96xf32> -> vector<2x96xf32>
    %627 = arith.addf %626, %13 : vector<2x96xf32>
    %cst_93 = arith.constant dense<0.000000e+00> : vector<2x96xf32>
    %628 = tpu.matmul %598, %3, %cst_93 {dimension_numbers = #tpu.dot_dimension_numbers<[1], [0], [0], [1], [0, 0, 1, 1], [], []>} : vector<2x32xbf16>, vector<32x96xbf16>, vector<2x96xf32> -> vector<2x96xf32>
    %629 = vector.extract_strided_slice %627 {offsets = [0, 0], sizes = [2, 32], strides = [1, 1]} : vector<2x96xf32> to vector<2x32xf32>
    %630 = vector.extract_strided_slice %628 {offsets = [0, 0], sizes = [2, 32], strides = [1, 1]} : vector<2x96xf32> to vector<2x32xf32>
    %631 = arith.addf %629, %630 : vector<2x32xf32>
    %632 = arith.negf %631 : vector<2x32xf32>
    %633 = math.exp %632 : vector<2x32xf32>
    %cst_94 = arith.constant 1.000000e+00 : f32
    %634 = vector.broadcast %cst_94 : f32 to vector<2x32xf32>
    %635 = arith.addf %634, %633 : vector<2x32xf32>
    %636 = arith.divf %634, %635 : vector<2x32xf32>
    %637 = vector.extract_strided_slice %627 {offsets = [0, 32], sizes = [2, 32], strides = [1, 1]} : vector<2x96xf32> to vector<2x32xf32>
    %638 = vector.extract_strided_slice %628 {offsets = [0, 32], sizes = [2, 32], strides = [1, 1]} : vector<2x96xf32> to vector<2x32xf32>
    %639 = arith.addf %637, %638 : vector<2x32xf32>
    %640 = arith.negf %639 : vector<2x32xf32>
    %641 = math.exp %640 : vector<2x32xf32>
    %cst_95 = arith.constant 1.000000e+00 : f32
    %642 = vector.broadcast %cst_95 : f32 to vector<2x32xf32>
    %643 = arith.addf %642, %641 : vector<2x32xf32>
    %644 = arith.divf %642, %643 : vector<2x32xf32>
    %645 = vector.extract_strided_slice %627 {offsets = [0, 64], sizes = [2, 32], strides = [1, 1]} : vector<2x96xf32> to vector<2x32xf32>
    %646 = vector.extract_strided_slice %628 {offsets = [0, 64], sizes = [2, 32], strides = [1, 1]} : vector<2x96xf32> to vector<2x32xf32>
    %647 = arith.addf %646, %19 : vector<2x32xf32>
    %648 = arith.mulf %636, %647 : vector<2x32xf32>
    %649 = arith.addf %645, %648 : vector<2x32xf32>
    %650 = math.tanh %649 : vector<2x32xf32>
    %651 = arith.subf %597, %650 : vector<2x32xf32>
    %652 = arith.mulf %644, %651 : vector<2x32xf32>
    %653 = arith.addf %650, %652 : vector<2x32xf32>
    %654 = arith.truncf %653 : vector<2x32xf32> to vector<2x32xbf16>
    %cst_96 = arith.constant dense<0.000000e+00> : vector<2x96xf32>
    %655 = tpu.matmul %625, %1, %cst_96 {dimension_numbers = #tpu.dot_dimension_numbers<[1], [0], [0], [1], [0, 0, 1, 1], [], []>} : vector<2x32xbf16>, vector<32x96xbf16>, vector<2x96xf32> -> vector<2x96xf32>
    %656 = vector.extract_strided_slice %10 {offsets = [0, 0], sizes = [2, 32], strides = [1, 1]} : vector<2x96xf32> to vector<2x32xf32>
    %657 = vector.extract_strided_slice %655 {offsets = [0, 0], sizes = [2, 32], strides = [1, 1]} : vector<2x96xf32> to vector<2x32xf32>
    %658 = arith.addf %656, %657 : vector<2x32xf32>
    %659 = arith.negf %658 : vector<2x32xf32>
    %660 = math.exp %659 : vector<2x32xf32>
    %cst_97 = arith.constant 1.000000e+00 : f32
    %661 = vector.broadcast %cst_97 : f32 to vector<2x32xf32>
    %662 = arith.addf %661, %660 : vector<2x32xf32>
    %663 = arith.divf %661, %662 : vector<2x32xf32>
    %664 = vector.extract_strided_slice %10 {offsets = [0, 32], sizes = [2, 32], strides = [1, 1]} : vector<2x96xf32> to vector<2x32xf32>
    %665 = vector.extract_strided_slice %655 {offsets = [0, 32], sizes = [2, 32], strides = [1, 1]} : vector<2x96xf32> to vector<2x32xf32>
    %666 = arith.addf %664, %665 : vector<2x32xf32>
    %667 = arith.negf %666 : vector<2x32xf32>
    %668 = math.exp %667 : vector<2x32xf32>
    %cst_98 = arith.constant 1.000000e+00 : f32
    %669 = vector.broadcast %cst_98 : f32 to vector<2x32xf32>
    %670 = arith.addf %669, %668 : vector<2x32xf32>
    %671 = arith.divf %669, %670 : vector<2x32xf32>
    %672 = vector.extract_strided_slice %10 {offsets = [0, 64], sizes = [2, 32], strides = [1, 1]} : vector<2x96xf32> to vector<2x32xf32>
    %673 = vector.extract_strided_slice %655 {offsets = [0, 64], sizes = [2, 32], strides = [1, 1]} : vector<2x96xf32> to vector<2x32xf32>
    %674 = arith.addf %673, %16 : vector<2x32xf32>
    %675 = arith.mulf %663, %674 : vector<2x32xf32>
    %676 = arith.addf %672, %675 : vector<2x32xf32>
    %677 = math.tanh %676 : vector<2x32xf32>
    %678 = arith.subf %624, %677 : vector<2x32xf32>
    %679 = arith.mulf %671, %678 : vector<2x32xf32>
    %680 = arith.addf %677, %679 : vector<2x32xf32>
    %681 = arith.truncf %680 : vector<2x32xf32> to vector<2x32xbf16>
    %cst_99 = arith.constant dense<0.000000e+00> : vector<2x96xf32>
    %682 = tpu.matmul %681, %5, %cst_99 {dimension_numbers = #tpu.dot_dimension_numbers<[1], [0], [0], [1], [0, 0, 1, 1], [], []>} : vector<2x32xbf16>, vector<32x96xbf16>, vector<2x96xf32> -> vector<2x96xf32>
    %683 = arith.addf %682, %13 : vector<2x96xf32>
    %cst_100 = arith.constant dense<0.000000e+00> : vector<2x96xf32>
    %684 = tpu.matmul %654, %3, %cst_100 {dimension_numbers = #tpu.dot_dimension_numbers<[1], [0], [0], [1], [0, 0, 1, 1], [], []>} : vector<2x32xbf16>, vector<32x96xbf16>, vector<2x96xf32> -> vector<2x96xf32>
    %685 = vector.extract_strided_slice %683 {offsets = [0, 0], sizes = [2, 32], strides = [1, 1]} : vector<2x96xf32> to vector<2x32xf32>
    %686 = vector.extract_strided_slice %684 {offsets = [0, 0], sizes = [2, 32], strides = [1, 1]} : vector<2x96xf32> to vector<2x32xf32>
    %687 = arith.addf %685, %686 : vector<2x32xf32>
    %688 = arith.negf %687 : vector<2x32xf32>
    %689 = math.exp %688 : vector<2x32xf32>
    %cst_101 = arith.constant 1.000000e+00 : f32
    %690 = vector.broadcast %cst_101 : f32 to vector<2x32xf32>
    %691 = arith.addf %690, %689 : vector<2x32xf32>
    %692 = arith.divf %690, %691 : vector<2x32xf32>
    %693 = vector.extract_strided_slice %683 {offsets = [0, 32], sizes = [2, 32], strides = [1, 1]} : vector<2x96xf32> to vector<2x32xf32>
    %694 = vector.extract_strided_slice %684 {offsets = [0, 32], sizes = [2, 32], strides = [1, 1]} : vector<2x96xf32> to vector<2x32xf32>
    %695 = arith.addf %693, %694 : vector<2x32xf32>
    %696 = arith.negf %695 : vector<2x32xf32>
    %697 = math.exp %696 : vector<2x32xf32>
    %cst_102 = arith.constant 1.000000e+00 : f32
    %698 = vector.broadcast %cst_102 : f32 to vector<2x32xf32>
    %699 = arith.addf %698, %697 : vector<2x32xf32>
    %700 = arith.divf %698, %699 : vector<2x32xf32>
    %701 = vector.extract_strided_slice %683 {offsets = [0, 64], sizes = [2, 32], strides = [1, 1]} : vector<2x96xf32> to vector<2x32xf32>
    %702 = vector.extract_strided_slice %684 {offsets = [0, 64], sizes = [2, 32], strides = [1, 1]} : vector<2x96xf32> to vector<2x32xf32>
    %703 = arith.addf %702, %19 : vector<2x32xf32>
    %704 = arith.mulf %692, %703 : vector<2x32xf32>
    %705 = arith.addf %701, %704 : vector<2x32xf32>
    %706 = math.tanh %705 : vector<2x32xf32>
    %707 = arith.subf %653, %706 : vector<2x32xf32>
    %708 = arith.mulf %700, %707 : vector<2x32xf32>
    %709 = arith.addf %706, %708 : vector<2x32xf32>
    %710 = tpu.concatenate %541, %597, %653, %709 in 0 : vector<2x32xf32>, vector<2x32xf32>, vector<2x32xf32>, vector<2x32xf32> -> vector<8x32xf32>
    %c0_103 = arith.constant 0 : index
    %c0_104 = arith.constant 0 : index
    %711 = vector.load %arg6[%c0_103, %c0_104] : memref<32x128xf32, #tpu.memory_space<vmem>>, vector<32x128xf32>
    %cst_105 = arith.constant dense<0.000000e+00> : vector<8x128xf32>
    %712 = tpu.matmul %710, %711, %cst_105 {dimension_numbers = #tpu.dot_dimension_numbers<[1], [0], [0], [1], [0, 0, 1, 1], [], []>} : vector<8x32xf32>, vector<32x128xf32>, vector<8x128xf32> -> vector<8x128xf32>
    %c0_106 = arith.constant 0 : index
    %c0_107 = arith.constant 0 : index
    %713 = vector.load %arg7[%c0_106, %c0_107] : memref<1x128xf32, #tpu.memory_space<vmem>>, vector<1x128xf32>
    %714 = vector.broadcast %713 : vector<1x128xf32> to vector<8x128xf32>
    %715 = arith.addf %712, %714 : vector<8x128xf32>
    %716 = arith.negf %715 : vector<8x128xf32>
    %717 = math.exp %716 : vector<8x128xf32>
    %cst_108 = arith.constant 1.000000e+00 : f32
    %718 = vector.broadcast %cst_108 : f32 to vector<8x128xf32>
    %719 = arith.addf %718, %717 : vector<8x128xf32>
    %720 = arith.divf %718, %719 : vector<8x128xf32>
    %c0_109 = arith.constant 0 : index
    %c0_110 = arith.constant 0 : index
    %721 = vector.load %arg8[%c0_109, %c0_110] : memref<8x128xf32, #tpu.memory_space<vmem>>, vector<8x128xf32>
    tpu.vector_store %arg8[%c0_109, %c0_110], %720 {strides = array<i32>} : memref<8x128xf32, #tpu.memory_space<vmem>>, vector<8x128xf32>,
    return
  }
}

</mosaic_0001>

<bundles_post_ra>
// kernel: baseline_gru_forward.1
= control target key start
LH: loop header
LB: loop body
LE: loop exit
PB: predicated region body
PF: predicated region fallthrough
CT: control target
= control target key end

     0   :  { %13 = vsyncpa [#allocation3], 0  ;;  %s4224_s0 = inlined_call_operand.vmem [shape: f32[16,4], index: 0, kind: input, shape index: {}]   ;;  %s4225_s1 = inlined_call_operand.vmem [shape: bf16[4,96], index: 1, kind: input, shape index: {}]   ;;  %s4226_s2 = inlined_call_operand.vmem [shape: bf16[1,32,96], index: 2, kind: input, shape index: {}]   ;;  %s4227_s3 = inlined_call_operand.vmem [shape: bf16[2,32,96], index: 3, kind: input, shape index: {}]   ;;  %s4228_s4 = inlined_call_operand.hbm [shape: f32[2,96], index: 4, kind: input, shape index: {}]   ;;  %s4229_s5 = inlined_call_operand.hbm [shape: f32[2,32], index: 5, kind: input, shape index: {}]   ;;  %s4230_s6 = inlined_call_operand.hbm [shape: f32[32,128], index: 6, kind: input, shape index: {}]   ;;  %s4231_s7 = inlined_call_operand.hbm [shape: f32[1,128], index: 7, kind: input, shape index: {}]   ;;  %s4232_s8 = inlined_call_operand.vmem [shape: f32[8,128], index: 8, kind: output, shape index: {}]  }
   0x1   :  { %14 = vsyncpa [#allocation5], 0 }
   0x2   :  { %15 = vsyncpa [#allocation8], 0  ;;  %s3473_s27 = smov [#allocation4]   ;;  %s3474_s29 = smov [#allocation2]  }
   0x3   :  { %s40_s28 = sshll.u32 %s3473_s27, 4  ;;  %s30_s30 = sshll.u32 %s3474_s29, 4  ;;  %s41_s28 = int_to_ptr.vmem [resolvable:$true] %s40_s28  ;;  %s31_s30 = int_to_ptr.vmem [resolvable:$true] %s30_s30 }
   0x4   :  { %s3379_s11 = scalar_lea.hbm %s4229_s5, 32 }
   0x5   :  { %p3380_p0 = scmp.ne.s32.totalorder %s4229_s5, %s3379_s11  ;;  %p3383_p1 = scmp.lt.u32.totalorder %s3379_s11, %s4229_s5 }
   0x7   :  { %p3385_p2 = pnand %p3383_p1, %p3380_p0 }
   0x9   :  { %3388 = shalt.err (!%p3385_p2)
}
   0xa   :  { %s3389_s16 = scalar_lea.vmem %s41_s28, 32  ;;  %p3394_p4 = scmp.lt.s32.totalorder %s41_s28, %s41_s28 }
   0xb   :  { %p3390_p3 = scmp.ne.s32.totalorder %s41_s28, %s3389_s16  ;;  %p3395_p5 = scmp.lt.s32.totalorder %s3389_s16, %s3389_s16 }
   0xd   :  { %p3396_p6 = por %p3395_p5, %p3394_p4 }
   0xf   :  { %p3397_p7 = pnand %p3396_p6, %p3390_p3 }
  0x11   :  { %3400 = shalt.err (!%p3397_p7)
}
  0x12   :  { %43 = dma.hbm_to_vmem [thread:$0]  %s4229_s5, 32, %s41_s28, [#allocation5]  }
  0x13   :  { %s3401_s21 = scalar_lea.hbm %s4228_s4, 32 }
  0x14   :  { %p3402_p8 = scmp.ne.s32.totalorder %s4228_s4, %s3401_s21  ;;  %p3405_p9 = scmp.lt.u32.totalorder %s3401_s21, %s4228_s4 }
  0x16   :  { %p3407_p10 = pnand %p3405_p9, %p3402_p8 }
  0x18   :  { %3410 = shalt.err (!%p3407_p10)
}
  0x19   :  { %s3411_s26 = scalar_lea.vmem %s31_s30, 32  ;;  %p3416_p12 = scmp.lt.s32.totalorder %s31_s30, %s31_s30 }
  0x1a   :  { %p3412_p11 = scmp.ne.s32.totalorder %s31_s30, %s3411_s26  ;;  %p3417_p13 = scmp.lt.s32.totalorder %s3411_s26, %s3411_s26 }
  0x1c   :  { %p3418_p0 = por %p3417_p13, %p3416_p12 }
  0x1e   :  { %p3419_p1 = pnand %p3418_p0, %p3412_p11 }
  0x20   :  { %3422 = shalt.err (!%p3419_p1)
}
  0x21   :  { %33 = dma.hbm_to_vmem [thread:$0]  %s4228_s4, 32, %s31_s30, [#allocation3]  }
  0x22   :  { %s3475_s28 = smov [#allocation6]   ;;  %s3423_s11 = scalar_lea.hbm %s4230_s6, 512 }
  0x23   :  { %s49_s29 = sshll.u32 %s3475_s28, 4  ;;  %p3424_p2 = scmp.ne.s32.totalorder %s4230_s6, %s3423_s11  ;;  %s50_s29 = int_to_ptr.vmem [resolvable:$true] %s49_s29 }
  0x24   :  { %p3427_p3 = scmp.lt.u32.totalorder %s3423_s11, %s4230_s6 }
  0x26   :  { %p3429_p4 = pnand %p3427_p3, %p3424_p2 }
  0x28   :  { %3432 = shalt.err (!%p3429_p4)
}
  0x29   :  { %s3433_s16 = scalar_lea.vmem %s50_s29, 512  ;;  %p3438_p6 = scmp.lt.s32.totalorder %s50_s29, %s50_s29 }
  0x2a   :  { %p3434_p5 = scmp.ne.s32.totalorder %s50_s29, %s3433_s16  ;;  %p3439_p7 = scmp.lt.s32.totalorder %s3433_s16, %s3433_s16 }
  0x2c   :  { %p3440_p8 = por %p3439_p7, %p3438_p6 }
  0x2e   :  { %p3441_p9 = pnand %p3440_p8, %p3434_p5 }
  0x30   :  { %3444 = shalt.err (!%p3441_p9)
}
  0x31   :  { %s3476_s4 = smov 128   ;;  %s3477_s30 = smov 8  }
  0x32   :  { %55 = dma.hbm_to_vmem [thread:$0]  %s4230_s6, 512, %s50_s29, [#allocation5], %s3476_s4, %s3476_s4, %s3477_s30  }
  0x33   :  { %s3478_s19 = smov [#allocation7]   ;;  %s3445_s23 = scalar_lea.hbm %s4231_s7, 16 }
  0x34   :  { %s62_s20 = sshll.u32 %s3478_s19, 4  ;;  %p3446_p10 = scmp.ne.s32.totalorder %s4231_s7, %s3445_s23  ;;  %s63_s20 = int_to_ptr.vmem [resolvable:$true] %s62_s20 }
  0x35   :  { %p3449_p11 = scmp.lt.u32.totalorder %s3445_s23, %s4231_s7 }
  0x37   :  { %p3451_p12 = pnand %p3449_p11, %p3446_p10 }
  0x39   :  { %3454 = shalt.err (!%p3451_p12)
}
  0x3a   :  { %s3455_s27 = scalar_lea.vmem %s63_s20, 16  ;;  %s3459_s6 = scalar_lea.vmem %s63_s20, 32 }
  0x3b   :  { %p3456_p13 = scmp.ne.s32.totalorder %s63_s20, %s3455_s27  ;;  %p3460_p0 = scmp.lt.s32.totalorder %s63_s20, %s63_s20 }
  0x3c   :  { %p3461_p1 = scmp.lt.s32.totalorder %s3459_s6, %s3455_s27 }
  0x3e   :  { %p3462_p2 = por %p3461_p1, %p3460_p0 }
  0x40   :  { %p3463_p3 = pnand %p3462_p2, %p3456_p13 }
  0x42   :  { %3466 = shalt.err (!%p3463_p3)
}
  0x43   :  { %65 = dma.hbm_to_vmem [thread:$0]  %s4231_s7, 16, %s63_s20, [#allocation8]  }
  0x44   :  { %3467 = dma.done.wait [#allocation3], 32  }
  0x45   :  { %3468 = vsyncadd [#allocation3], 4294967264 }
  0x46   :  { %3469 = dma.done.wait [#allocation5], 544  }
  0x47   :  { %3470 = vsyncadd [#allocation5], 4294966752 }
  0x48   :  { %3471 = dma.done.wait [#allocation8], 16  }
  0x49   :  { %3472 = vsyncadd [#allocation8], 4294967280  ;;  %v3479_v0 = vmov 0.0   ;;  %v94_v1 = vlaneseq  ;;  %vm3480_vm0 = vmmov 0   ;;  %vm118_vm1 = vcmask 1041408   ;;  %v3588_v4 = vld [vmem:[%s4227_s3] sm:$0xff]  }
  0x4a   :  { %2901 = vmatprep.subr.bf16.mxu1 %v3479_v0  ;;  %2895 = vmatprep.subr.bf16.mxu0 %v3479_v0  ;;  %v109_v6 = vld [vmem:[%s4225_s1] sm:$0x3]  ;;  %v3598_v8 = vld [vmem:[%s4227_s3 + $0x8] sm:$0xff]   ;;  %vm114_vm2 = vcmask 31744   ;;  %v93_v12 = vld [vmem:[#allocation4] sm:$0x3] }
  0x4b   :  { %2897 = vmatprep.mubr.msk.bf16.mxu0 %vm3480_vm0, %v3479_v0  ;;  %2905 = vmatprep.mubr.msk.bf16.mxu1 %vm3480_vm0, %v3479_v0  ;;  %v95_v2 = vshrl.u32 %v94_v1, 7  ;;  %v120_v7 = vsel %vm118_vm1, %v109_v6, 0  ;;  %v106_v9 = vld [vmem:[%s4224_s0] sm:$0xff]  ;;  %v107_v10 = vld [vmem:[%s4224_s0 + $0x8] sm:$0xff]  ;;  %s3481_s1 = smov 64   ;;  %v3482_v17 = vmov 0  }
  0x4c   :  { %2902 = vmatpush3.bf16.msra.mxu1 %v3588_v4  ;;  %2896 = vmatpush3.bf16.msra.mxu0 %v120_v7  ;;  %v108_v11 = vpack.c.bf16 %v107_v10, %v106_v9  ;;  %v92_v13 = vld [vmem:[#allocation2] sm:$0x3]  ;;  %s3483_s0 = smov 96   ;;  %v3637_v41 = vld [vmem:[%s4227_s3 + $0x10] sm:$0xff]   ;;  %v3648_v43 = vld [vmem:[%s4227_s3 + $0x18] sm:$0xff]   ;;  %s3484_s24 = smov 32  }
  0x4d   :  { %v96_v3 = vsub.s32 1, %v95_v2  ;;  %v100_v5 = vsub.s32 0, %v95_v2  ;;  %2903 = vmatprep.subr.bf16.mxu1 %v3479_v0  ;;  %2909 = vmatprep.subr.bf16.mxu0 %v3479_v0  ;;  %v3642_v42 = vld [vmem:[%s4226_s2] sm:$0xff]   ;;  %v3654_v44 = vld [vmem:[%s4226_s2 + $0x8] sm:$0xff]   ;;  %vm175_vm3 = vcmask 261120   ;;  %vm2604_vm4 = vcmask 1043456  }
  0x4e   :  { %vm2606_vm5 = vcmask 1045504  }
  0x4f   :  { %v101_v14 = vrot.slane %v93_v12, %v100_v5  ;;  %v3607_v15 = vrot.slane %v93_v12, %v96_v3  ;;  %v3609_v16 = vrot.slane %v92_v13, %v96_v3  ;;  %2898 = vmatmul.mubr.msk.bf16.vlgmr.msra.gmra.mrb[0].mxu0 %vm114_vm2, %v108_v11  ;;  %v3625_v28 = vrot.slane %v92_v13, %v100_v5 }
  0x50   :  { %2904 = vmatpush3.bf16.msra.mxu1 %v3598_v8  ;;  %2913 = vmatprep.mubr.msk.bf16.mxu0 %vm3480_vm0, %v3479_v0 }
  0x51   :  { %227 = vrot.lane.b32.xlu0 %v101_v14, %s3481_s1  ;;  %2917 = vmatprep.subr.bf16.mxu1 %v3479_v0 }
  0x52   :  { %2910 = vmatpush3.bf16.msra.mxu0 %v3642_v42 }
  0x53   :  { %2906 = vmatmul.mubr.bf16.vlgmr.msra.gmra.mrb[0].mxu1 %v3482_v17  ;;  %2911 = vmatprep.subr.bf16.mxu0 %v3479_v0 }
  0x54   :  { %2921 = vmatprep.mubr.msk.bf16.mxu1 %vm3480_vm0, %v3479_v0  ;;  %2918 = vmatpush3.bf16.msra.mxu1 %v3637_v41 }
  0x55   :  { %2919 = vmatprep.subr.bf16.mxu1 %v3479_v0 }
  0x56   :  { %2912 = vmatpush3.bf16.msra.mxu0 %v3654_v44 }
  0x57   :  { %2925 = vmatprep.subr.bf16.mxu0 %v3479_v0 }
  0x58   :  { %2920 = vmatpush3.bf16.msra.mxu1 %v3648_v43 }
  0x59   :  { %2933 = vmatprep.subr.bf16.mxu1 %v3479_v0 }
  0x5b   :  { %2922 = vmatmul.mubr.bf16.vlgmr.msra.gmra.mrb[4].mxu1 %v3482_v17 }
  0x5c   :  { %2934 = vmatpush3.bf16.msra.mxu1 %v3642_v42  ;;  %2937 = vmatprep.mubr.msk.bf16.mxu1 %vm3480_vm0, %v3479_v0 }
  0x5d   :  { %2935 = vmatprep.subr.bf16.mxu1 %v3479_v0 }
  0x60   :  { %2936 = vmatpush3.bf16.msra.mxu1 %v3654_v44 }
  0x61   :  { %2949 = vmatprep.subr.bf16.mxu1 %v3479_v0 }
  0xc3   :  { %v3619_v19 = vpop.permute.xlu0 %227 }
 0x122   :  { %v156_v18 = vpop.f32.mrb[0].mxu0 }
 0x123   :  { %v2899_v20 = vpop.f32.mrb[1].mxu0  ;;  %v3628_v29 = vadd.f32 %v156_v18, %v3625_v28 }
 0x124   :  { %v3621_v21 = vpop.f32.mrb[2].mxu0 }
 0x125   :  { %v2900_v23 = vpop.f32.mrb[3].mxu0 }
 0x126   :  { %v213_v22 = vpop.f32.mrb[0].mxu1 }
 0x127   :  { %v230_v24 = vadd.f32 %v3619_v19, %v213_v22  ;;  %v2907_v25 = vpop.f32.mrb[1].mxu1  ;;  %v219_v30 = vadd.f32 %v213_v22, %v3628_v29 }
 0x128   :  { %v216_v26 = vpop.f32.mrb[2].mxu1 }
 0x129   :  { %232 = vrot.lane.b32.xlu0 %v230_v24, %s3481_s1  ;;  %v2908_v27 = vpop.f32.mrb[3].mxu1  ;;  %v2715_v31 = vmul.f32 -1.442695, %v219_v30 }
 0x12b   :  { %3225 = vpow2.f32 %v2715_v31 }
 0x12e   :  { %v358_v50 = vpop.f32.mrb[4].mxu1 }
 0x12f   :  { %v2923_v51 = vpop.f32.mrb[5].mxu1 }
 0x130   :  { %v361_v52 = vpop.f32.mrb[6].mxu1 }
 0x131   :  { %v2924_v53 = vpop.f32.mrb[7].mxu1 }
 0x135   :  { %v3226_v32 = vpop.eup %3225 }
 0x136   :  { %v223_v33 = vadd.f32 1.0, %v3226_v32 }
 0x138   :  { %3227 = vrcp.f32 %v223_v33 }
 0x142   :  { %v3228_v34 = vpop.eup %3227 }
 0x19b   :  { %v233_v35 = vpop.permute.xlu0 %232 }
 0x19c   :  { %v235_v36 = vmul.f32 %v3228_v34, %v233_v35 }
 0x19e   :  { %237 = vrot.lane.b32.xlu1 %v235_v36, %s3481_s1 }
 0x210   :  { %v238_v37 = vpop.permute.xlu1 %237 }
 0x211   :  { %v240_v38 = vadd.f32 %v238_v37, %v3628_v29 }
 0x213   :  { %3229 = vtanh.f32 %v240_v38 }
 0x21d   :  { %v3230_v39 = vpop.eup %3229 }
 0x21e   :  { %v242_v40 = vsub.f32 0.0, %v3230_v39 }
 0x220   :  { %244 = vrot.lane.b32.xlu1 %v242_v40, %s3483_s0 }
 0x292   :  { %v245_v45 = vpop.permute.xlu1 %244 }
 0x293   :  { %v247_v46 = vmul.f32 %v3228_v34, %v245_v45 }
 0x295   :  { %249 = vrot.lane.b32.xlu0 %v247_v46, %s3484_s24 }
 0x307   :  { %v250_v47 = vpop.permute.xlu0 %249 }
 0x308   :  { %v3669_v48 = vadd.f32 %v3230_v39, %v250_v47 }
 0x30a   :  { %v253_v49 = vpack.c.bf16 %v3669_v48, %v3669_v48 }
 0x30c   :  { %255 = vrot.lane.b32.xlu1 %v253_v49, %s3481_s1 }
 0x310   :  { %372 = vrot.lane.b32.xlu1 %v3607_v15, %s3481_s1 }
 0x37e   :  { %v256_v54 = vpop.permute.xlu1 %255 }
 0x37f   :  { %2914 = vmatmul.mubr.msk.bf16.vlgmr.msra.gmra.mrb[4].mxu0 %vm175_vm3, %v256_v54 }
 0x380   :  { %2926 = vmatpush3.bf16.msra.mxu0 %v3588_v4  ;;  %2929 = vmatprep.mubr.msk.bf16.mxu0 %vm3480_vm0, %v3479_v0 }
 0x381   :  { %2927 = vmatprep.subr.bf16.mxu0 %v3479_v0 }
 0x382   :  { %v3681_v55 = vpop.permute.xlu1 %372 }
 0x383   :  { %v375_v56 = vadd.f32 %v3681_v55, %v358_v50 }
 0x384   :  { %2928 = vmatpush3.bf16.msra.mxu0 %v3598_v8 }
 0x385   :  { %377 = vrot.lane.b32.xlu1 %v375_v56, %s3481_s1  ;;  %2941 = vmatprep.subr.bf16.mxu0 %v3479_v0 }
 0x387   :  { %2930 = vmatmul.mubr.msk.bf16.vlgmr.msra.gmra.mrb[8].mxu0 %vm175_vm3, %v256_v54 }
 0x388   :  { %2942 = vmatpush3.bf16.msra.mxu0 %v3637_v41  ;;  %2945 = vmatprep.mubr.msk.bf16.mxu0 %vm3480_vm0, %v3479_v0 }
 0x389   :  { %2943 = vmatprep.subr.bf16.mxu0 %v3479_v0 }
 0x38c   :  { %2944 = vmatpush3.bf16.msra.mxu0 %v3648_v43 }
 0x38d   :  { %2957 = vmatprep.subr.bf16.mxu0 %v3479_v0 }
 0x3f7   :  { %v378_v11 = vpop.permute.xlu1 %377 }
 0x452   :  { %v306_v57 = vpop.f32.mrb[4].mxu0 }
 0x453   :  { %v307_v58 = vadd.f32 %v306_v57, %v3609_v16  ;;  %v2915_v59 = vpop.f32.mrb[5].mxu0 }
 0x454   :  { %v309_v60 = vpop.f32.mrb[6].mxu0 }
 0x455   :  { %v364_v61 = vadd.f32 %v358_v50, %v307_v58  ;;  %v2916_v62 = vpop.f32.mrb[7].mxu0 }
 0x457   :  { %v2721_v63 = vmul.f32 -1.442695, %v364_v61 }
 0x459   :  { %3231 = vpow2.f32 %v2721_v63 }
 0x45a   :  { %v433_v1 = vpop.f32.mrb[8].mxu0 }
 0x45b   :  { %v449_v2 = vadd.f32 %v433_v1, %v3619_v19  ;;  %v2931_v3 = vpop.f32.mrb[9].mxu0  ;;  %v440_v14 = vrot.slane %v433_v1, 6 }
 0x45c   :  { %v436_v5 = vpop.f32.mrb[10].mxu0 }
 0x45d   :  { %v451_v6 = vrot.slane %v449_v2, 6  ;;  %v2932_v7 = vpop.f32.mrb[11].mxu0  ;;  %v442_v15 = vadd.f32 %v440_v14, %v3628_v29 }
 0x45f   :  { %452 = vrot.lane.b32.xlu0 %v451_v6, %s3481_s1  ;;  %v2723_v17 = vmul.f32 -1.442695, %v442_v15 }
 0x463   :  { %v3232_v9 = vpop.eup %3231 }
 0x464   :  { %v368_v10 = vadd.f32 1.0, %v3232_v9 }
 0x466   :  { %3233 = vrcp.f32 %v368_v10 }
 0x467   :  { %3235 = vpow2.f32 %v2723_v17 }
 0x470   :  { %v3234_v12 = vpop.eup %3233 }
 0x471   :  { %v380_v13 = vmul.f32 %v3234_v12, %v378_v11  ;;  %v3236_v18 = vpop.eup %3235 }
 0x472   :  { %v446_v20 = vadd.f32 1.0, %v3236_v18 }
 0x473   :  { %382 = vrot.lane.b32.xlu1 %v380_v13, %s3481_s1 }
 0x474   :  { %3237 = vrcp.f32 %v446_v20 }
 0x47e   :  { %v3238_v22 = vpop.eup %3237 }
 0x4d1   :  { %v453_v23 = vpop.permute.xlu0 %452 }
 0x4d2   :  { %v455_v24 = vmul.f32 %v3238_v22, %v453_v23 }
 0x4d4   :  { %457 = vrot.lane.b32.xlu0 %v455_v24, %s3481_s1 }
 0x4e5   :  { %v383_v25 = vpop.permute.xlu1 %382 }
 0x4e6   :  { %v385_v26 = vadd.f32 %v383_v25, %v307_v58 }
 0x4e8   :  { %3239 = vtanh.f32 %v385_v26 }
 0x4f2   :  { %v3240_v27 = vpop.eup %3239 }
 0x4f3   :  { %v387_v30 = vsub.f32 0.0, %v3240_v27 }
 0x4f5   :  { %389 = vrot.lane.b32.xlu1 %v387_v30, %s3483_s0 }
 0x546   :  { %v458_v31 = vpop.permute.xlu0 %457 }
 0x547   :  { %v460_v32 = vadd.f32 %v458_v31, %v3628_v29 }
 0x549   :  { %3241 = vtanh.f32 %v460_v32 }
 0x553   :  { %v3242_v33 = vpop.eup %3241 }
 0x554   :  { %v463_v34 = vrot.slane %v3242_v33, 2 }
 0x556   :  { %v465_v35 = vsub.f32 %v3669_v48, %v463_v34 }
 0x558   :  { %v467_v36 = vrot.slane %v465_v35, 6 }
 0x55a   :  { %468 = vrot.lane.b32.xlu0 %v467_v36, %s3483_s0 }
 0x567   :  { %v390_v37 = vpop.permute.xlu1 %389 }
 0x568   :  { %v392_v38 = vmul.f32 %v3234_v12, %v390_v37 }
 0x56a   :  { %394 = vrot.lane.b32.xlu1 %v392_v38, %s3484_s24 }
 0x5cc   :  { %v469_v39 = vpop.permute.xlu0 %468 }
 0x5cd   :  { %v471_v40 = vmul.f32 %v3238_v22, %v469_v39 }
 0x5cf   :  { %473 = vrot.lane.b32.xlu0 %v471_v40, %s3484_s24 }
 0x5dc   :  { %v395_v47 = vpop.permute.xlu1 %394 }
 0x5dd   :  { %v3710_v50 = vadd.f32 %v3240_v27, %v395_v47 }
 0x5df   :  { %v398_v51 = vpack.c.bf16 %v3710_v50, %v3710_v50 }
 0x641   :  { %v474_v45 = vpop.permute.xlu0 %473 }
 0x642   :  { %v3706_v46 = vadd.f32 %v3242_v33, %v474_v45 }
 0x644   :  { %v477_v49 = vpack.c.bf16 %v3706_v46, %v3706_v46 }
 0x646   :  { %v479_v48 = vrot.slane %v477_v49, 1 }
 0x648   :  { %480 = vrot.lane.b32.xlu0 %v479_v48, %s3481_s1 }
 0x64c   :  { %526 = vrot.lane.b32.xlu0 %v398_v51, %s3481_s1 }
 0x6ba   :  { %v481_v52 = vpop.permute.xlu0 %480 }
 0x6bb   :  { %2938 = vmatmul.mubr.msk.bf16.vlgmr.msra.gmra.mrb[8].mxu1 %vm175_vm3, %v481_v52 }
 0x6bc   :  { %2950 = vmatpush3.bf16.msra.mxu1 %v3588_v4  ;;  %2953 = vmatprep.mubr.msk.bf16.mxu1 %vm3480_vm0, %v3479_v0 }
 0x6bd   :  { %2951 = vmatprep.subr.bf16.mxu1 %v3479_v0 }
 0x6be   :  { %v527_v53 = vpop.permute.xlu0 %526 }
 0x6bf   :  { %2946 = vmatmul.mubr.msk.bf16.vlgmr.msra.gmra.mrb[12].mxu0 %vm175_vm3, %v527_v53 }
 0x6c0   :  { %2952 = vmatpush3.bf16.msra.mxu1 %v3598_v8  ;;  %2958 = vmatpush3.bf16.msra.mxu0 %v3642_v42 }
 0x6c1   :  { %2959 = vmatprep.subr.bf16.mxu0 %v3479_v0  ;;  %2965 = vmatprep.subr.bf16.mxu1 %v3479_v0 }
 0x6c2   :  { %2961 = vmatprep.mubr.msk.bf16.mxu0 %vm3480_vm0, %v3479_v0 }
 0x6c3   :  { %2954 = vmatmul.mubr.msk.bf16.vlgmr.msra.gmra.mrb[12].mxu1 %vm175_vm3, %v481_v52 }
 0x6c4   :  { %2960 = vmatpush3.bf16.msra.mxu0 %v3654_v44  ;;  %2966 = vmatpush3.bf16.msra.mxu1 %v3637_v41 }
 0x6c5   :  { %2973 = vmatprep.subr.bf16.mxu0 %v3479_v0  ;;  %2967 = vmatprep.subr.bf16.mxu1 %v3479_v0 }
 0x6c6   :  { %2969 = vmatprep.mubr.msk.bf16.mxu1 %vm3480_vm0, %v3479_v0 }
 0x6c8   :  { %2968 = vmatpush3.bf16.msra.mxu1 %v3648_v43 }
 0x6c9   :  { %2981 = vmatprep.subr.bf16.mxu1 %v3479_v0 }
 0x78e   :  { %v519_v54 = vpop.f32.mrb[8].mxu1 }
 0x78f   :  { %v2939_v56 = vpop.f32.mrb[9].mxu1  ;;  %v520_v11 = vadd.f32 %v519_v54, %v3609_v16 }
 0x790   :  { %v522_v57 = vpop.f32.mrb[10].mxu1 }
 0x791   :  { %v2940_v58 = vpop.f32.mrb[11].mxu1 }
 0x792   :  { %v565_v59 = vpop.f32.mrb[12].mxu0 }
 0x793   :  { %v2947_v60 = vpop.f32.mrb[13].mxu0  ;;  %v578_v7 = vadd.f32 %v565_v59, %v3681_v55  ;;  %v571_v12 = vadd.f32 %v565_v59, %v520_v11 }
 0x794   :  { %v568_v61 = vpop.f32.mrb[14].mxu0 }
 0x795   :  { %v2948_v62 = vpop.f32.mrb[15].mxu0  ;;  %v2726_v14 = vmul.f32 -1.442695, %v571_v12 }
 0x796   :  { %v636_v63 = vpop.f32.mrb[12].mxu1 }
 0x797   :  { %v652_v1 = vadd.f32 %v636_v63, %v3619_v19  ;;  %v2955_v2 = vpop.f32.mrb[13].mxu1  ;;  %v643_v9 = vrot.slane %v636_v63, 4 }
 0x798   :  { %v639_v3 = vpop.f32.mrb[14].mxu1 }
 0x799   :  { %v654_v5 = vrot.slane %v652_v1, 4  ;;  %v2956_v6 = vpop.f32.mrb[15].mxu1  ;;  %v645_v10 = vadd.f32 %v643_v9, %v3628_v29 }
 0x79b   :  { %655 = vrot.lane.b32.xlu1 %v654_v5, %s3481_s1  ;;  %v2728_v13 = vmul.f32 -1.442695, %v645_v10 }
 0x79d   :  { %3243 = vpow2.f32 %v2728_v13 }
 0x79e   :  { %3245 = vpow2.f32 %v2726_v14 }
 0x79f   :  { %580 = vrot.lane.b32.xlu1 %v578_v7, %s3481_s1 }
 0x7a7   :  { %v3244_v15 = vpop.eup %3243 }
 0x7a8   :  { %v649_v17 = vadd.f32 1.0, %v3244_v15  ;;  %v3246_v18 = vpop.eup %3245 }
 0x7a9   :  { %v575_v20 = vadd.f32 1.0, %v3246_v18 }
 0x7aa   :  { %3247 = vrcp.f32 %v649_v17 }
 0x7ab   :  { %3249 = vrcp.f32 %v575_v20 }
 0x7b4   :  { %v3248_v22 = vpop.eup %3247 }
 0x7b5   :  { %v3250_v25 = vpop.eup %3249 }
 0x80d   :  { %v656_v23 = vpop.permute.xlu1 %655 }
 0x80e   :  { %v658_v24 = vmul.f32 %v3248_v22, %v656_v23 }
 0x810   :  { %660 = vrot.lane.b32.xlu0 %v658_v24, %s3481_s1 }
 0x811   :  { %v581_v26 = vpop.permute.xlu1 %580 }
 0x812   :  { %v583_v27 = vmul.f32 %v3250_v25, %v581_v26 }
 0x814   :  { %585 = vrot.lane.b32.xlu1 %v583_v27, %s3481_s1 }
 0x882   :  { %v661_v30 = vpop.permute.xlu0 %660 }
 0x883   :  { %v663_v31 = vadd.f32 %v661_v30, %v3628_v29 }
 0x885   :  { %3251 = vtanh.f32 %v663_v31 }
 0x886   :  { %v586_v32 = vpop.permute.xlu1 %585 }
 0x887   :  { %v588_v33 = vadd.f32 %v586_v32, %v520_v11 }
 0x889   :  { %3253 = vtanh.f32 %v588_v33 }
 0x88f   :  { %v3252_v34 = vpop.eup %3251 }
 0x890   :  { %v666_v35 = vrot.slane %v3252_v34, 2 }
 0x892   :  { %v668_v36 = vsub.f32 %v3706_v46, %v666_v35 }
 0x893   :  { %v3254_v37 = vpop.eup %3253 }
 0x894   :  { %v590_v38 = vsub.f32 %v3710_v50, %v3254_v37  ;;  %v670_v39 = vrot.slane %v668_v36, 6 }
 0x896   :  { %592 = vrot.lane.b32.xlu1 %v590_v38, %s3483_s0  ;;  %671 = vrot.lane.b32.xlu0 %v670_v39, %s3483_s0 }
 0x908   :  { %v593_v40 = vpop.permute.xlu1 %592  ;;  %v672_v45 = vpop.permute.xlu0 %671 }
 0x909   :  { %v595_v47 = vmul.f32 %v3250_v25, %v593_v40  ;;  %v674_v49 = vmul.f32 %v3248_v22, %v672_v45 }
 0x90b   :  { %597 = vrot.lane.b32.xlu1 %v595_v47, %s3484_s24  ;;  %676 = vrot.lane.b32.xlu0 %v674_v49, %s3484_s24 }
 0x97d   :  { %v677_v48 = vpop.permute.xlu0 %676  ;;  %v598_v46 = vpop.permute.xlu1 %597 }
 0x97e   :  { %v3752_v51 = vadd.f32 %v3252_v34, %v677_v48  ;;  %v3756_v52 = vadd.f32 %v3254_v37, %v598_v46 }
 0x980   :  { %v680_v50 = vpack.c.bf16 %v3752_v51, %v3752_v51  ;;  %v601_v54 = vpack.c.bf16 %v3756_v52, %v3756_v52 }
 0x982   :  { %v682_v53 = vrot.slane %v680_v50, 2 }
 0x984   :  { %683 = vrot.lane.b32.xlu0 %v682_v53, %s3481_s1 }
 0x988   :  { %729 = vrot.lane.b32.xlu0 %v601_v54, %s3481_s1 }
 0x9f6   :  { %v684_v56 = vpop.permute.xlu0 %683 }
 0x9f7   :  { %2962 = vmatmul.mubr.msk.bf16.vlgmr.msra.gmra.mrb[16].mxu0 %vm175_vm3, %v684_v56 }
 0x9f8   :  { %2974 = vmatpush3.bf16.msra.mxu0 %v3588_v4  ;;  %2977 = vmatprep.mubr.msk.bf16.mxu0 %vm3480_vm0, %v3479_v0 }
 0x9f9   :  { %2975 = vmatprep.subr.bf16.mxu0 %v3479_v0 }
 0x9fa   :  { %v730_v57 = vpop.permute.xlu0 %729 }
 0x9fb   :  { %2970 = vmatmul.mubr.msk.bf16.vlgmr.msra.gmra.mrb[16].mxu1 %vm175_vm3, %v730_v57 }
 0x9fc   :  { %2976 = vmatpush3.bf16.msra.mxu0 %v3598_v8  ;;  %2982 = vmatpush3.bf16.msra.mxu1 %v3642_v42 }
 0x9fd   :  { %2983 = vmatprep.subr.bf16.mxu1 %v3479_v0  ;;  %2989 = vmatprep.subr.bf16.mxu0 %v3479_v0 }
 0x9fe   :  { %2985 = vmatprep.mubr.msk.bf16.mxu1 %vm3480_vm0, %v3479_v0 }
 0x9ff   :  { %2978 = vmatmul.mubr.msk.bf16.vlgmr.msra.gmra.mrb[20].mxu0 %vm175_vm3, %v684_v56 }
 0xa00   :  { %2984 = vmatpush3.bf16.msra.mxu1 %v3654_v44  ;;  %2990 = vmatpush3.bf16.msra.mxu0 %v3637_v41 }
 0xa01   :  { %2997 = vmatprep.subr.bf16.mxu1 %v3479_v0  ;;  %2991 = vmatprep.subr.bf16.mxu0 %v3479_v0 }
 0xa02   :  { %2993 = vmatprep.mubr.msk.bf16.mxu0 %vm3480_vm0, %v3479_v0 }
 0xa04   :  { %2992 = vmatpush3.bf16.msra.mxu0 %v3648_v43 }
 0xa05   :  { %3005 = vmatprep.subr.bf16.mxu0 %v3479_v0 }
 0xaca   :  { %v722_v58 = vpop.f32.mrb[16].mxu0 }
 0xacb   :  { %v2963_v59 = vpop.f32.mrb[17].mxu0  ;;  %v723_v14 = vadd.f32 %v722_v58, %v3609_v16 }
 0xacc   :  { %v725_v60 = vpop.f32.mrb[18].mxu0 }
 0xacd   :  { %v2964_v61 = vpop.f32.mrb[19].mxu0 }
 0xace   :  { %v768_v62 = vpop.f32.mrb[16].mxu1 }
 0xacf   :  { %v2971_v63 = vpop.f32.mrb[17].mxu1  ;;  %v781_v11 = vadd.f32 %v768_v62, %v3681_v55  ;;  %v774_v15 = vadd.f32 %v768_v62, %v723_v14 }
 0xad0   :  { %v771_v1 = vpop.f32.mrb[18].mxu1 }
 0xad1   :  { %v2972_v2 = vpop.f32.mrb[19].mxu1  ;;  %v2731_v18 = vmul.f32 -1.442695, %v774_v15  ;;  %v3836_v15 = vadd.f32 %v3621_v21, %v3625_v28 }
 0xad2   :  { %v839_v3 = vpop.f32.mrb[20].mxu0 }
 0xad3   :  { %v855_v5 = vadd.f32 %v839_v3, %v3619_v19  ;;  %v2979_v6 = vpop.f32.mrb[21].mxu0  ;;  %v846_v12 = vrot.slane %v839_v3, 2 }
 0xad4   :  { %v842_v7 = vpop.f32.mrb[22].mxu0 }
 0xad5   :  { %v857_v9 = vrot.slane %v855_v5, 2  ;;  %v2980_v10 = vpop.f32.mrb[23].mxu0  ;;  %v848_v13 = vadd.f32 %v846_v12, %v3628_v29 }
 0xad7   :  { %858 = vrot.lane.b32.xlu1 %v857_v9, %s3481_s1  ;;  %v2733_v17 = vmul.f32 -1.442695, %v848_v13 }
 0xad9   :  { %3255 = vpow2.f32 %v2733_v17 }
 0xada   :  { %3257 = vpow2.f32 %v2731_v18 }
 0xadb   :  { %783 = vrot.lane.b32.xlu1 %v781_v11, %s3481_s1 }
 0xae3   :  { %v3256_v20 = vpop.eup %3255 }
 0xae4   :  { %v852_v22 = vadd.f32 1.0, %v3256_v20  ;;  %v3258_v23 = vpop.eup %3257 }
 0xae5   :  { %v778_v24 = vadd.f32 1.0, %v3258_v23 }
 0xae6   :  { %3259 = vrcp.f32 %v852_v22 }
 0xae7   :  { %3261 = vrcp.f32 %v778_v24 }
 0xaf0   :  { %v3260_v25 = vpop.eup %3259 }
 0xaf1   :  { %v3262_v30 = vpop.eup %3261 }
 0xb49   :  { %v859_v26 = vpop.permute.xlu1 %858 }
 0xb4a   :  { %v861_v27 = vmul.f32 %v3260_v25, %v859_v26 }
 0xb4c   :  { %863 = vrot.lane.b32.xlu0 %v861_v27, %s3481_s1 }
 0xb4d   :  { %v784_v31 = vpop.permute.xlu1 %783 }
 0xb4e   :  { %v786_v32 = vmul.f32 %v3262_v30, %v784_v31 }
 0xb50   :  { %788 = vrot.lane.b32.xlu0 %v786_v32, %s3481_s1 }
 0xbbe   :  { %v864_v33 = vpop.permute.xlu0 %863 }
 0xbbf   :  { %v866_v34 = vadd.f32 %v864_v33, %v3628_v29 }
 0xbc1   :  { %3263 = vtanh.f32 %v866_v34 }
 0xbc2   :  { %v789_v35 = vpop.permute.xlu0 %788 }
 0xbc3   :  { %v791_v36 = vadd.f32 %v789_v35, %v723_v14 }
 0xbc5   :  { %3265 = vtanh.f32 %v791_v36 }
 0xbcb   :  { %v3264_v37 = vpop.eup %3263 }
 0xbcc   :  { %v869_v38 = vrot.slane %v3264_v37, 2 }
 0xbce   :  { %v871_v39 = vsub.f32 %v3752_v51, %v869_v38 }
 0xbcf   :  { %v3266_v45 = vpop.eup %3265 }
 0xbd0   :  { %v873_v40 = vrot.slane %v871_v39, 6  ;;  %v793_v47 = vsub.f32 %v3756_v52, %v3266_v45 }
 0xbd2   :  { %874 = vrot.lane.b32.xlu1 %v873_v40, %s3483_s0 }
 0xbd6   :  { %795 = vrot.lane.b32.xlu1 %v793_v47, %s3483_s0 }
 0xc44   :  { %v875_v49 = vpop.permute.xlu1 %874 }
 0xc45   :  { %v877_v48 = vmul.f32 %v3260_v25, %v875_v49 }
 0xc47   :  { %879 = vrot.lane.b32.xlu0 %v877_v48, %s3484_s24 }
 0xc48   :  { %v796_v29 = vpop.permute.xlu1 %795 }
 0xc49   :  { %v798_v46 = vmul.f32 %v3262_v30, %v796_v29 }
 0xc4b   :  { %800 = vrot.lane.b32.xlu1 %v798_v46, %s3484_s24 }
 0xcb9   :  { %v880_v50 = vpop.permute.xlu0 %879 }
 0xcba   :  { %v3798_v53 = vadd.f32 %v3264_v37, %v880_v50 }
 0xcbc   :  { %v883_v51 = vpack.c.bf16 %v3798_v53, %v3798_v53 }
 0xcbd   :  { %v801_v54 = vpop.permute.xlu1 %800 }
 0xcbe   :  { %v885_v56 = vrot.slane %v883_v51, 3  ;;  %v3802_v57 = vadd.f32 %v3266_v45, %v801_v54 }
 0xcc0   :  { %886 = vrot.lane.b32.xlu0 %v885_v56, %s3481_s1  ;;  %v804_v52 = vpack.c.bf16 %v3802_v57, %v3802_v57 }
 0xcc4   :  { %932 = vrot.lane.b32.xlu0 %v804_v52, %s3481_s1 }
 0xd32   :  { %v887_v58 = vpop.permute.xlu0 %886 }
 0xd33   :  { %2986 = vmatmul.mubr.msk.bf16.vlgmr.msra.gmra.mrb[20].mxu1 %vm175_vm3, %v887_v58 }
 0xd34   :  { %2998 = vmatpush3.bf16.msra.mxu1 %v3588_v4  ;;  %3001 = vmatprep.mubr.msk.bf16.mxu1 %vm3480_vm0, %v3479_v0 }
 0xd35   :  { %2999 = vmatprep.subr.bf16.mxu1 %v3479_v0 }
 0xd36   :  { %v933_v59 = vpop.permute.xlu0 %932 }
 0xd37   :  { %2994 = vmatmul.mubr.msk.bf16.vlgmr.msra.gmra.mrb[24].mxu0 %vm175_vm3, %v933_v59 }
 0xd38   :  { %3000 = vmatpush3.bf16.msra.mxu1 %v3598_v8  ;;  %3006 = vmatpush3.bf16.msra.mxu0 %v3642_v42 }
 0xd39   :  { %3013 = vmatprep.subr.bf16.mxu1 %v3479_v0  ;;  %3007 = vmatprep.subr.bf16.mxu0 %v3479_v0 }
 0xd3a   :  { %3009 = vmatprep.mubr.msk.bf16.mxu0 %vm3480_vm0, %v3479_v0 }
 0xd3b   :  { %3002 = vmatmul.mubr.msk.bf16.vlgmr.msra.gmra.mrb[24].mxu1 %vm175_vm3, %v887_v58 }
 0xd3c   :  { %3014 = vmatpush3.bf16.msra.mxu1 %v3637_v41  ;;  %3017 = vmatprep.mubr.msk.bf16.mxu1 %vm3480_vm0, %v3479_v0 }
 0xd3d   :  { %3015 = vmatprep.subr.bf16.mxu1 %v3479_v0  ;;  %3008 = vmatpush3.bf16.msra.mxu0 %v3654_v44 }
 0xd3e   :  { %3021 = vmatprep.subr.bf16.mxu0 %v3479_v0 }
 0xd40   :  { %3016 = vmatpush3.bf16.msra.mxu1 %v3648_v43 }
 0xd41   :  { %3029 = vmatprep.subr.bf16.mxu1 %v3479_v0 }
 0xe06   :  { %v925_v60 = vpop.f32.mrb[20].mxu1 }
 0xe07   :  { %v2987_v61 = vpop.f32.mrb[21].mxu1  ;;  %v926_v13 = vadd.f32 %v925_v60, %v3609_v16 }
 0xe08   :  { %v928_v62 = vpop.f32.mrb[22].mxu1 }
 0xe09   :  { %v2988_v63 = vpop.f32.mrb[23].mxu1 }
 0xe0a   :  { %v971_v1 = vpop.f32.mrb[24].mxu0 }
 0xe0b   :  { %v984_v2 = vadd.f32 %v971_v1, %v3681_v55  ;;  %v2995_v3 = vpop.f32.mrb[25].mxu0  ;;  %v977_v14 = vadd.f32 %v971_v1, %v926_v13 }
 0xe0c   :  { %v974_v5 = vpop.f32.mrb[26].mxu0 }
 0xe0d   :  { %986 = vrot.lane.b32.xlu0 %v984_v2, %s3481_s1  ;;  %v2996_v6 = vpop.f32.mrb[27].mxu0  ;;  %v2736_v17 = vmul.f32 -1.442695, %v977_v14 }
 0xe0e   :  { %v1042_v7 = vpop.f32.mrb[24].mxu1 }
 0xe0f   :  { %v1055_v9 = vadd.f32 %v1042_v7, %v3619_v19  ;;  %v3003_v10 = vpop.f32.mrb[25].mxu1  ;;  %v1048_v18 = vadd.f32 %v1042_v7, %v3836_v15  ;;  %3267 = vpow2.f32 %v2736_v17 }
 0xe10   :  { %v1045_v11 = vpop.f32.mrb[26].mxu1 }
 0xe11   :  { %1057 = vrot.lane.b32.xlu1 %v1055_v9, %s3481_s1  ;;  %v3004_v12 = vpop.f32.mrb[27].mxu1  ;;  %v2738_v20 = vmul.f32 -1.442695, %v1048_v18 }
 0xe13   :  { %3269 = vpow2.f32 %v2738_v20 }
 0xe19   :  { %v3268_v22 = vpop.eup %3267 }
 0xe1a   :  { %v981_v23 = vadd.f32 1.0, %v3268_v22 }
 0xe1c   :  { %3271 = vrcp.f32 %v981_v23 }
 0xe1d   :  { %v3270_v24 = vpop.eup %3269 }
 0xe1e   :  { %v1052_v25 = vadd.f32 1.0, %v3270_v24 }
 0xe20   :  { %3273 = vrcp.f32 %v1052_v25 }
 0xe26   :  { %v3272_v26 = vpop.eup %3271 }
 0xe2a   :  { %v3274_v31 = vpop.eup %3273 }
 0xe7f   :  { %v987_v27 = vpop.permute.xlu0 %986 }
 0xe80   :  { %v989_v30 = vmul.f32 %v3272_v26, %v987_v27 }
 0xe82   :  { %991 = vrot.lane.b32.xlu0 %v989_v30, %s3481_s1 }
 0xe83   :  { %v1058_v21 = vpop.permute.xlu1 %1057 }
 0xe84   :  { %v1060_v32 = vmul.f32 %v3274_v31, %v1058_v21 }
 0xe86   :  { %1062 = vrot.lane.b32.xlu1 %v1060_v32, %s3481_s1 }
 0xef4   :  { %v992_v33 = vpop.permute.xlu0 %991 }
 0xef5   :  { %v994_v34 = vadd.f32 %v992_v33, %v926_v13 }
 0xef7   :  { %3275 = vtanh.f32 %v994_v34 }
 0xef8   :  { %v1063_v35 = vpop.permute.xlu1 %1062 }
 0xef9   :  { %v1065_v36 = vadd.f32 %v1063_v35, %v3836_v15 }
 0xefb   :  { %3277 = vtanh.f32 %v1065_v36 }
 0xf01   :  { %v3276_v37 = vpop.eup %3275 }
 0xf02   :  { %v996_v38 = vsub.f32 %v3802_v57, %v3276_v37 }
 0xf04   :  { %998 = vrot.lane.b32.xlu0 %v996_v38, %s3483_s0 }
 0xf05   :  { %v3278_v39 = vpop.eup %3277 }
 0xf06   :  { %v1068_v40 = vrot.slane %v3278_v39, 2 }
 0xf08   :  { %v1070_v45 = vsub.f32 %v3798_v53, %v1068_v40 }
 0xf0a   :  { %v1072_v47 = vrot.slane %v1070_v45, 6 }
 0xf0c   :  { %1073 = vrot.lane.b32.xlu1 %v1072_v47, %s3483_s0 }
 0xf76   :  { %v999_v49 = vpop.permute.xlu0 %998 }
 0xf77   :  { %v1001_v48 = vmul.f32 %v3272_v26, %v999_v49 }
 0xf79   :  { %1003 = vrot.lane.b32.xlu0 %v1001_v48, %s3484_s24 }
 0xf7e   :  { %v1074_v29 = vpop.permute.xlu1 %1073 }
 0xf7f   :  { %v1076_v46 = vmul.f32 %v3274_v31, %v1074_v29 }
 0xf81   :  { %1078 = vrot.lane.b32.xlu1 %v1076_v46, %s3484_s24 }
 0xfeb   :  { %v1004_v50 = vpop.permute.xlu0 %1003 }
 0xfec   :  { %v3848_v51 = vadd.f32 %v3276_v37, %v1004_v50 }
 0xfee   :  { %v1007_v54 = vpack.c.bf16 %v3848_v51, %v3848_v51 }
 0xff0   :  { %1130 = vrot.lane.b32.xlu0 %v1007_v54, %s3481_s1 }
 0xff3   :  { %v1079_v53 = vpop.permute.xlu1 %1078 }
 0xff4   :  { %v3853_v56 = vadd.f32 %v3278_v39, %v1079_v53 }
 0xff6   :  { %v1082_v57 = vpack.c.bf16 %v3853_v56, %v3853_v56 }
 0xff8   :  { %1084 = vrot.lane.b32.xlu1 %v1082_v57, %s3481_s1 }
0x1062   :  { %v1131_v52 = vpop.permute.xlu0 %1130 }
0x1063   :  { %3018 = vmatmul.mubr.msk.bf16.vlgmr.msra.gmra.mrb[28].mxu1 %vm175_vm3, %v1131_v52 }
0x1064   :  { %3030 = vmatpush3.bf16.msra.mxu1 %v3642_v42  ;;  %3033 = vmatprep.mubr.msk.bf16.mxu1 %vm3480_vm0, %v3479_v0 }
0x1065   :  { %3031 = vmatprep.subr.bf16.mxu1 %v3479_v0 }
0x1068   :  { %3032 = vmatpush3.bf16.msra.mxu1 %v3654_v44 }
0x1069   :  { %3045 = vmatprep.subr.bf16.mxu1 %v3479_v0 }
0x106a   :  { %v1085_v58 = vpop.permute.xlu1 %1084 }
0x106b   :  { %3010 = vmatmul.mubr.msk.bf16.vlgmr.msra.gmra.mrb[28].mxu0 %vm175_vm3, %v1085_v58 }
0x106c   :  { %3022 = vmatpush3.bf16.msra.mxu0 %v3588_v4  ;;  %3025 = vmatprep.mubr.msk.bf16.mxu0 %vm3480_vm0, %v3479_v0 }
0x106d   :  { %3023 = vmatprep.subr.bf16.mxu0 %v3479_v0 }
0x1070   :  { %3024 = vmatpush3.bf16.msra.mxu0 %v3598_v8 }
0x1071   :  { %3037 = vmatprep.subr.bf16.mxu0 %v3479_v0 }
0x1073   :  { %3026 = vmatmul.mubr.msk.bf16.vlgmr.msra.gmra.mrb[32].mxu0 %vm175_vm3, %v1085_v58 }
0x1074   :  { %3038 = vmatpush3.bf16.msra.mxu0 %v3637_v41  ;;  %3041 = vmatprep.mubr.msk.bf16.mxu0 %vm3480_vm0, %v3479_v0 }
0x1075   :  { %3039 = vmatprep.subr.bf16.mxu0 %v3479_v0 }
0x1078   :  { %3040 = vmatpush3.bf16.msra.mxu0 %v3648_v43 }
0x1079   :  { %3053 = vmatprep.subr.bf16.mxu0 %v3479_v0 }
0x1136   :  { %v1169_v4 = vpop.f32.mrb[28].mxu1 }
0x1137   :  { %v1182_v59 = vadd.f32 %v1169_v4, %v3681_v55  ;;  %v3019_v60 = vpop.f32.mrb[29].mxu1 }
0x1138   :  { %v1172_v8 = vpop.f32.mrb[30].mxu1 }
0x1139   :  { %1184 = vrot.lane.b32.xlu0 %v1182_v59, %s3481_s1  ;;  %v3020_v61 = vpop.f32.mrb[31].mxu1 }
0x113e   :  { %v1123_v62 = vpop.f32.mrb[28].mxu0 }
0x113f   :  { %v3011_v63 = vpop.f32.mrb[29].mxu0  ;;  %v1124_v11 = vadd.f32 %v1123_v62, %v3609_v16 }
0x1140   :  { %v1126_v1 = vpop.f32.mrb[30].mxu0 }
0x1141   :  { %v3012_v2 = vpop.f32.mrb[31].mxu0  ;;  %v1175_v12 = vadd.f32 %v1169_v4, %v1124_v11  ;;  %v3915_v4 = vld [vmem:[%s4227_s3] sm:$0xff]  }
0x1143   :  { %v2741_v13 = vmul.f32 -1.442695, %v1175_v12 }
0x1145   :  { %3279 = vpow2.f32 %v2741_v13 }
0x1146   :  { %v1240_v3 = vpop.f32.mrb[32].mxu0 }
0x1147   :  { %v1256_v5 = vadd.f32 %v1240_v3, %v3619_v19  ;;  %v3027_v6 = vpop.f32.mrb[33].mxu0  ;;  %v1247_v14 = vrot.slane %v1240_v3, 6 }
0x1148   :  { %v1243_v7 = vpop.f32.mrb[34].mxu0 }
0x1149   :  { %v1258_v9 = vrot.slane %v1256_v5, 6  ;;  %v3028_v10 = vpop.f32.mrb[35].mxu0  ;;  %v1249_v18 = vadd.f32 %v1247_v14, %v3836_v15 }
0x114b   :  { %1259 = vrot.lane.b32.xlu1 %v1258_v9, %s3481_s1  ;;  %v2743_v22 = vmul.f32 -1.442695, %v1249_v18 }
0x114f   :  { %v3280_v17 = vpop.eup %3279 }
0x1150   :  { %v1179_v20 = vadd.f32 1.0, %v3280_v17 }
0x1152   :  { %3281 = vrcp.f32 %v1179_v20 }
0x1153   :  { %3283 = vpow2.f32 %v2743_v22 }
0x115c   :  { %v3282_v23 = vpop.eup %3281 }
0x115d   :  { %v3284_v25 = vpop.eup %3283 }
0x115e   :  { %v1253_v27 = vadd.f32 1.0, %v3284_v25 }
0x1160   :  { %3285 = vrcp.f32 %v1253_v27 }
0x116a   :  { %v3286_v30 = vpop.eup %3285 }
0x11ab   :  { %v1185_v24 = vpop.permute.xlu0 %1184 }
0x11ac   :  { %v1187_v26 = vmul.f32 %v3282_v23, %v1185_v24 }
0x11ae   :  { %1189 = vrot.lane.b32.xlu0 %v1187_v26, %s3481_s1 }
0x11bd   :  { %v1260_v31 = vpop.permute.xlu1 %1259 }
0x11be   :  { %v1262_v21 = vmul.f32 %v3286_v30, %v1260_v31 }
0x11c0   :  { %1264 = vrot.lane.b32.xlu1 %v1262_v21, %s3481_s1 }
0x1220   :  { %v1190_v32 = vpop.permute.xlu0 %1189 }
0x1221   :  { %v1192_v33 = vadd.f32 %v1190_v32, %v1124_v11 }
0x1223   :  { %3287 = vtanh.f32 %v1192_v33 }
0x122d   :  { %v3288_v34 = vpop.eup %3287 }
0x122e   :  { %v1194_v35 = vsub.f32 %v3848_v51, %v3288_v34 }
0x1230   :  { %1196 = vrot.lane.b32.xlu0 %v1194_v35, %s3483_s0 }
0x1232   :  { %v1265_v36 = vpop.permute.xlu1 %1264 }
0x1233   :  { %v1267_v37 = vadd.f32 %v1265_v36, %v3836_v15 }
0x1235   :  { %3289 = vtanh.f32 %v1267_v37 }
0x123f   :  { %v3290_v38 = vpop.eup %3289 }
0x1240   :  { %v1270_v39 = vrot.slane %v3290_v38, 2 }
0x1242   :  { %v1272_v40 = vsub.f32 %v3853_v56, %v1270_v39 }
0x1244   :  { %v1274_v45 = vrot.slane %v1272_v40, 6 }
0x1246   :  { %1275 = vrot.lane.b32.xlu1 %v1274_v45, %s3483_s0 }
0x12a2   :  { %v1197_v47 = vpop.permute.xlu0 %1196 }
0x12a3   :  { %v1199_v49 = vmul.f32 %v3282_v23, %v1197_v47 }
0x12a5   :  { %1201 = vrot.lane.b32.xlu0 %v1199_v49, %s3484_s24 }
0x12b8   :  { %v1276_v48 = vpop.permute.xlu1 %1275 }
0x12b9   :  { %v1278_v29 = vmul.f32 %v3286_v30, %v1276_v48 }
0x12bb   :  { %1280 = vrot.lane.b32.xlu1 %v1278_v29, %s3484_s24 }
0x1317   :  { %v1202_v46 = vpop.permute.xlu0 %1201 }
0x1318   :  { %v3894_v50 = vadd.f32 %v3288_v34, %v1202_v46 }
0x131a   :  { %v1205_v51 = vpack.c.bf16 %v3894_v50, %v3894_v50 }
0x131c   :  { %1333 = vrot.lane.b32.xlu0 %v1205_v51, %s3481_s1 }
0x132d   :  { %v1281_v54 = vpop.permute.xlu1 %1280 }
0x132e   :  { %v3899_v53 = vadd.f32 %v3290_v38, %v1281_v54 }
0x1330   :  { %v1284_v56 = vpack.c.bf16 %v3899_v53, %v3899_v53 }
0x1332   :  { %v1286_v57 = vrot.slane %v1284_v56, 1 }
0x1334   :  { %1287 = vrot.lane.b32.xlu1 %v1286_v57, %s3481_s1  ;;  %v3964_v57 = vld [vmem:[%s4226_s2] sm:$0xff]  }
0x138e   :  { %v1334_v52 = vpop.permute.xlu0 %1333 }
0x138f   :  { %3042 = vmatmul.mubr.msk.bf16.vlgmr.msra.gmra.mrb[36].mxu0 %vm175_vm3, %v1334_v52  ;;  %v3973_v52 = vld [vmem:[%s4226_s2 + $0x8] sm:$0xff]  }
0x1390   :  { %3054 = vmatpush3.bf16.msra.mxu0 %v3642_v42  ;;  %3057 = vmatprep.mubr.msk.bf16.mxu0 %vm3480_vm0, %v3479_v0  ;;  %v3924_v42 = vld [vmem:[%s4227_s3 + $0x8] sm:$0xff]  }
0x1391   :  { %3055 = vmatprep.subr.bf16.mxu0 %v3479_v0 }
0x1394   :  { %3056 = vmatpush3.bf16.msra.mxu0 %v3654_v44 }
0x1395   :  { %3069 = vmatprep.subr.bf16.mxu0 %v3479_v0 }
0x13a6   :  { %v1288_v58 = vpop.permute.xlu1 %1287 }
0x13a7   :  { %3034 = vmatmul.mubr.msk.bf16.vlgmr.msra.gmra.mrb[32].mxu1 %vm175_vm3, %v1288_v58 }
0x13a8   :  { %3046 = vmatpush3.bf16.msra.mxu1 %v3915_v4  ;;  %3049 = vmatprep.mubr.msk.bf16.mxu1 %vm3480_vm0, %v3479_v0 }
0x13a9   :  { %3047 = vmatprep.subr.bf16.mxu1 %v3479_v0 }
0x13ac   :  { %3048 = vmatpush3.bf16.msra.mxu1 %v3924_v42 }
0x13ad   :  { %3061 = vmatprep.subr.bf16.mxu1 %v3479_v0 }
0x13af   :  { %3050 = vmatmul.mubr.msk.bf16.vlgmr.msra.gmra.mrb[36].mxu1 %vm175_vm3, %v1288_v58 }
0x13b0   :  { %3062 = vmatpush3.bf16.msra.mxu1 %v3637_v41  ;;  %3065 = vmatprep.mubr.msk.bf16.mxu1 %vm3480_vm0, %v3479_v0 }
0x13b1   :  { %3063 = vmatprep.subr.bf16.mxu1 %v3479_v0 }
0x13b4   :  { %3064 = vmatpush3.bf16.msra.mxu1 %v3648_v43 }
0x13b5   :  { %3077 = vmatprep.subr.bf16.mxu1 %v3479_v0 }
0x1462   :  { %v1372_v44 = vpop.f32.mrb[36].mxu0 }
0x1463   :  { %v1385_v59 = vadd.f32 %v1372_v44, %v3681_v55  ;;  %v3043_v60 = vpop.f32.mrb[37].mxu0 }
0x1464   :  { %v1375_v8 = vpop.f32.mrb[38].mxu0 }
0x1465   :  { %1387 = vrot.lane.b32.xlu0 %v1385_v59, %s3481_s1  ;;  %v3044_v61 = vpop.f32.mrb[39].mxu0  ;;  %v3997_v59 = vld [vmem:[%s4227_s3 + $0x18] sm:$0xff]  }
0x147a   :  { %v1326_v62 = vpop.f32.mrb[32].mxu1 }
0x147b   :  { %v3035_v63 = vpop.f32.mrb[33].mxu1  ;;  %v1327_v9 = vadd.f32 %v1326_v62, %v3609_v16 }
0x147c   :  { %v1329_v41 = vpop.f32.mrb[34].mxu1 }
0x147d   :  { %v3036_v1 = vpop.f32.mrb[35].mxu1  ;;  %v1378_v10 = vadd.f32 %v1372_v44, %v1327_v9  ;;  %v3988_v44 = vld [vmem:[%s4227_s3 + $0x10] sm:$0xff]  }
0x147f   :  { %v2746_v11 = vmul.f32 -1.442695, %v1378_v10 }
0x1481   :  { %3291 = vpow2.f32 %v2746_v11 }
0x1482   :  { %v1443_v2 = vpop.f32.mrb[36].mxu1 }
0x1483   :  { %v1459_v3 = vadd.f32 %v1443_v2, %v3619_v19  ;;  %v3051_v5 = vpop.f32.mrb[37].mxu1  ;;  %v1450_v14 = vrot.slane %v1443_v2, 4 }
0x1484   :  { %v1446_v6 = vpop.f32.mrb[38].mxu1 }
0x1485   :  { %v1461_v43 = vrot.slane %v1459_v3, 4  ;;  %v3052_v7 = vpop.f32.mrb[39].mxu1  ;;  %v1452_v17 = vadd.f32 %v1450_v14, %v3836_v15 }
0x1487   :  { %1462 = vrot.lane.b32.xlu1 %v1461_v43, %s3481_s1  ;;  %v2748_v23 = vmul.f32 -1.442695, %v1452_v17 }
0x148b   :  { %v3292_v12 = vpop.eup %3291 }
0x148c   :  { %v1382_v13 = vadd.f32 1.0, %v3292_v12 }
0x148e   :  { %3293 = vrcp.f32 %v1382_v13 }
0x148f   :  { %3295 = vpow2.f32 %v2748_v23 }
0x1498   :  { %v3294_v18 = vpop.eup %3293 }
0x1499   :  { %v3296_v24 = vpop.eup %3295 }
0x149a   :  { %v1456_v25 = vadd.f32 1.0, %v3296_v24 }
0x149c   :  { %3297 = vrcp.f32 %v1456_v25 }
0x14a6   :  { %v3298_v26 = vpop.eup %3297 }
0x14d7   :  { %v1388_v20 = vpop.permute.xlu0 %1387 }
0x14d8   :  { %v1390_v22 = vmul.f32 %v3294_v18, %v1388_v20 }
0x14da   :  { %1392 = vrot.lane.b32.xlu0 %v1390_v22, %s3481_s1 }
0x14f9   :  { %v1463_v27 = vpop.permute.xlu1 %1462 }
0x14fa   :  { %v1465_v30 = vmul.f32 %v3298_v26, %v1463_v27 }
0x14fc   :  { %1467 = vrot.lane.b32.xlu1 %v1465_v30, %s3481_s1 }
0x154c   :  { %v1393_v31 = vpop.permute.xlu0 %1392 }
0x154d   :  { %v1395_v21 = vadd.f32 %v1393_v31, %v1327_v9 }
0x154f   :  { %3299 = vtanh.f32 %v1395_v21 }
0x1559   :  { %v3300_v32 = vpop.eup %3299 }
0x155a   :  { %v1397_v33 = vsub.f32 %v3894_v50, %v3300_v32 }
0x155c   :  { %1399 = vrot.lane.b32.xlu0 %v1397_v33, %s3483_s0 }
0x156e   :  { %v1468_v34 = vpop.permute.xlu1 %1467 }
0x156f   :  { %v1470_v35 = vadd.f32 %v1468_v34, %v3836_v15 }
0x1571   :  { %3301 = vtanh.f32 %v1470_v35 }
0x157b   :  { %v3302_v36 = vpop.eup %3301 }
0x157c   :  { %v1473_v37 = vrot.slane %v3302_v36, 2 }
0x157e   :  { %v1475_v38 = vsub.f32 %v3899_v53, %v1473_v37 }
0x1580   :  { %v1477_v39 = vrot.slane %v1475_v38, 6 }
0x1582   :  { %1478 = vrot.lane.b32.xlu1 %v1477_v39, %s3483_s0 }
0x15ce   :  { %v1400_v40 = vpop.permute.xlu0 %1399 }
0x15cf   :  { %v1402_v45 = vmul.f32 %v3294_v18, %v1400_v40 }
0x15d1   :  { %1404 = vrot.lane.b32.xlu0 %v1402_v45, %s3484_s24 }
0x15f4   :  { %v1479_v47 = vpop.permute.xlu1 %1478 }
0x15f5   :  { %v1481_v49 = vmul.f32 %v3298_v26, %v1479_v47 }
0x15f7   :  { %1483 = vrot.lane.b32.xlu1 %v1481_v49, %s3484_s24 }
0x1643   :  { %v1405_v48 = vpop.permute.xlu0 %1404 }
0x1644   :  { %v3950_v29 = vadd.f32 %v3300_v32, %v1405_v48 }
0x1646   :  { %v1408_v46 = vpack.c.bf16 %v3950_v29, %v3950_v29 }
0x1648   :  { %1536 = vrot.lane.b32.xlu0 %v1408_v46, %s3481_s1 }
0x1669   :  { %v1484_v50 = vpop.permute.xlu1 %1483 }
0x166a   :  { %v3955_v51 = vadd.f32 %v3302_v36, %v1484_v50 }
0x166c   :  { %v1487_v54 = vpack.c.bf16 %v3955_v51, %v3955_v51 }
0x166e   :  { %v1489_v53 = vrot.slane %v1487_v54, 2 }
0x1670   :  { %1490 = vrot.lane.b32.xlu1 %v1489_v53, %s3481_s1 }
0x16ba   :  { %v1537_v56 = vpop.permute.xlu0 %1536 }
0x16bb   :  { %3066 = vmatmul.mubr.msk.bf16.vlgmr.msra.gmra.mrb[40].mxu1 %vm175_vm3, %v1537_v56 }
0x16bc   :  { %3078 = vmatpush3.bf16.msra.mxu1 %v3964_v57  ;;  %3081 = vmatprep.mubr.msk.bf16.mxu1 %vm3480_vm0, %v3479_v0 }
0x16bd   :  { %3079 = vmatprep.subr.bf16.mxu1 %v3479_v0 }
0x16c0   :  { %3080 = vmatpush3.bf16.msra.mxu1 %v3973_v52 }
0x16c1   :  { %3093 = vmatprep.subr.bf16.mxu1 %v3479_v0 }
0x16e2   :  { %v1491_v58 = vpop.permute.xlu1 %1490 }
0x16e3   :  { %3058 = vmatmul.mubr.msk.bf16.vlgmr.msra.gmra.mrb[40].mxu0 %vm175_vm3, %v1491_v58 }
0x16e4   :  { %3070 = vmatpush3.bf16.msra.mxu0 %v3915_v4  ;;  %3073 = vmatprep.mubr.msk.bf16.mxu0 %vm3480_vm0, %v3479_v0 }
0x16e5   :  { %3071 = vmatprep.subr.bf16.mxu0 %v3479_v0 }
0x16e8   :  { %3072 = vmatpush3.bf16.msra.mxu0 %v3924_v42 }
0x16e9   :  { %3085 = vmatprep.subr.bf16.mxu0 %v3479_v0 }
0x16eb   :  { %3074 = vmatmul.mubr.msk.bf16.vlgmr.msra.gmra.mrb[44].mxu0 %vm175_vm3, %v1491_v58 }
0x16ec   :  { %3086 = vmatpush3.bf16.msra.mxu0 %v3988_v44  ;;  %3089 = vmatprep.mubr.msk.bf16.mxu0 %vm3480_vm0, %v3479_v0 }
0x16ed   :  { %3087 = vmatprep.subr.bf16.mxu0 %v3479_v0 }
0x16f0   :  { %3088 = vmatpush3.bf16.msra.mxu0 %v3997_v59 }
0x16f1   :  { %3101 = vmatprep.subr.bf16.mxu0 %v3479_v0 }
0x178e   :  { %v1575_v60 = vpop.f32.mrb[40].mxu1 }
0x178f   :  { %v1588_v8 = vadd.f32 %v1575_v60, %v3681_v55  ;;  %v3067_v61 = vpop.f32.mrb[41].mxu1 }
0x1790   :  { %v1578_v62 = vpop.f32.mrb[42].mxu1 }
0x1791   :  { %1590 = vrot.lane.b32.xlu0 %v1588_v8, %s3481_s1  ;;  %v3068_v63 = vpop.f32.mrb[43].mxu1 }
0x17b6   :  { %v1529_v41 = vpop.f32.mrb[40].mxu0 }
0x17b7   :  { %v3059_v1 = vpop.f32.mrb[41].mxu0  ;;  %v1530_v11 = vadd.f32 %v1529_v41, %v3609_v16 }
0x17b8   :  { %v1532_v2 = vpop.f32.mrb[42].mxu0 }
0x17b9   :  { %v3060_v3 = vpop.f32.mrb[43].mxu0  ;;  %v1581_v12 = vadd.f32 %v1575_v60, %v1530_v11 }
0x17bb   :  { %v2751_v13 = vmul.f32 -1.442695, %v1581_v12 }
0x17bd   :  { %3303 = vpow2.f32 %v2751_v13 }
0x17be   :  { %v1646_v5 = vpop.f32.mrb[44].mxu0 }
0x17bf   :  { %v1662_v6 = vadd.f32 %v1646_v5, %v3619_v19  ;;  %v3075_v43 = vpop.f32.mrb[45].mxu0  ;;  %v1653_v23 = vrot.slane %v1646_v5, 2 }
0x17c0   :  { %v1649_v7 = vpop.f32.mrb[46].mxu0 }
0x17c1   :  { %v1664_v9 = vrot.slane %v1662_v6, 2  ;;  %v3076_v10 = vpop.f32.mrb[47].mxu0  ;;  %v1655_v24 = vadd.f32 %v1653_v23, %v3836_v15 }
0x17c3   :  { %1665 = vrot.lane.b32.xlu1 %v1664_v9, %s3481_s1  ;;  %v2753_v25 = vmul.f32 -1.442695, %v1655_v24 }
0x17c7   :  { %v3304_v14 = vpop.eup %3303 }
0x17c8   :  { %v1585_v17 = vadd.f32 1.0, %v3304_v14 }
0x17ca   :  { %3305 = vrcp.f32 %v1585_v17 }
0x17cb   :  { %3307 = vpow2.f32 %v2753_v25 }
0x17d4   :  { %v3306_v18 = vpop.eup %3305 }
0x17d5   :  { %v3308_v26 = vpop.eup %3307 }
0x17d6   :  { %v1659_v27 = vadd.f32 1.0, %v3308_v26 }
0x17d8   :  { %3309 = vrcp.f32 %v1659_v27 }
0x17e2   :  { %v3310_v30 = vpop.eup %3309 }
0x1803   :  { %v1591_v20 = vpop.permute.xlu0 %1590 }
0x1804   :  { %v1593_v22 = vmul.f32 %v3306_v18, %v1591_v20 }
0x1806   :  { %1595 = vrot.lane.b32.xlu0 %v1593_v22, %s3481_s1 }
0x1835   :  { %v1666_v31 = vpop.permute.xlu1 %1665 }
0x1836   :  { %v1668_v21 = vmul.f32 %v3310_v30, %v1666_v31 }
0x1838   :  { %1670 = vrot.lane.b32.xlu1 %v1668_v21, %s3481_s1 }
0x1878   :  { %v1596_v32 = vpop.permute.xlu0 %1595 }
0x1879   :  { %v1598_v33 = vadd.f32 %v1596_v32, %v1530_v11 }
0x187b   :  { %3311 = vtanh.f32 %v1598_v33 }
0x1885   :  { %v3312_v34 = vpop.eup %3311 }
0x1886   :  { %v1600_v35 = vsub.f32 %v3950_v29, %v3312_v34 }
0x1888   :  { %1602 = vrot.lane.b32.xlu0 %v1600_v35, %s3483_s0 }
0x18aa   :  { %v1671_v36 = vpop.permute.xlu1 %1670 }
0x18ab   :  { %v1673_v37 = vadd.f32 %v1671_v36, %v3836_v15 }
0x18ad   :  { %3313 = vtanh.f32 %v1673_v37 }
0x18b7   :  { %v3314_v38 = vpop.eup %3313 }
0x18b8   :  { %v1676_v39 = vrot.slane %v3314_v38, 2 }
0x18ba   :  { %v1678_v40 = vsub.f32 %v3955_v51, %v1676_v39 }
0x18bc   :  { %v1680_v45 = vrot.slane %v1678_v40, 6 }
0x18be   :  { %1681 = vrot.lane.b32.xlu1 %v1680_v45, %s3483_s0 }
0x18fa   :  { %v1603_v47 = vpop.permute.xlu0 %1602 }
0x18fb   :  { %v1605_v49 = vmul.f32 %v3306_v18, %v1603_v47 }
0x18fd   :  { %1607 = vrot.lane.b32.xlu0 %v1605_v49, %s3484_s24 }
0x1930   :  { %v1682_v48 = vpop.permute.xlu1 %1681 }
0x1931   :  { %v1684_v46 = vmul.f32 %v3310_v30, %v1682_v48 }
0x1933   :  { %1686 = vrot.lane.b32.xlu1 %v1684_v46, %s3484_s24 }
0x196f   :  { %v1608_v29 = vpop.permute.xlu0 %1607 }
0x1970   :  { %v4016_v50 = vadd.f32 %v3312_v34, %v1608_v29 }
0x1972   :  { %v1611_v15 = vpack.c.bf16 %v4016_v50, %v4016_v50 }
0x1974   :  { %1739 = vrot.lane.b32.xlu0 %v1611_v15, %s3481_s1 }
0x19a5   :  { %v1687_v51 = vpop.permute.xlu1 %1686 }
0x19a6   :  { %v4021_v54 = vadd.f32 %v3314_v38, %v1687_v51 }
0x19a8   :  { %v1690_v53 = vpack.c.bf16 %v4021_v54, %v4021_v54 }
0x19aa   :  { %v1692_v56 = vrot.slane %v1690_v53, 3 }
0x19ac   :  { %1693 = vrot.lane.b32.xlu1 %v1692_v56, %s3481_s1 }
0x19e6   :  { %v1740_v58 = vpop.permute.xlu0 %1739 }
0x19e7   :  { %3090 = vmatmul.mubr.msk.bf16.vlgmr.msra.gmra.mrb[48].mxu0 %vm175_vm3, %v1740_v58 }
0x19e8   :  { %3102 = vmatpush3.bf16.msra.mxu0 %v3964_v57  ;;  %3105 = vmatprep.mubr.msk.bf16.mxu0 %vm3480_vm0, %v3479_v0 }
0x19e9   :  { %3103 = vmatprep.subr.bf16.mxu0 %v3479_v0 }
0x19ec   :  { %3104 = vmatpush3.bf16.msra.mxu0 %v3973_v52 }
0x19ed   :  { %3117 = vmatprep.subr.bf16.mxu0 %v3479_v0 }
0x1a1e   :  { %v1694_v60 = vpop.permute.xlu1 %1693 }
0x1a1f   :  { %3082 = vmatmul.mubr.msk.bf16.vlgmr.msra.gmra.mrb[44].mxu1 %vm175_vm3, %v1694_v60 }
0x1a20   :  { %3094 = vmatpush3.bf16.msra.mxu1 %v3915_v4  ;;  %3097 = vmatprep.mubr.msk.bf16.mxu1 %vm3480_vm0, %v3479_v0 }
0x1a21   :  { %3095 = vmatprep.subr.bf16.mxu1 %v3479_v0 }
0x1a24   :  { %3096 = vmatpush3.bf16.msra.mxu1 %v3924_v42 }
0x1a25   :  { %3109 = vmatprep.subr.bf16.mxu1 %v3479_v0 }
0x1a27   :  { %3098 = vmatmul.mubr.msk.bf16.vlgmr.msra.gmra.mrb[48].mxu1 %vm175_vm3, %v1694_v60 }
0x1a28   :  { %3110 = vmatpush3.bf16.msra.mxu1 %v3988_v44  ;;  %3113 = vmatprep.mubr.msk.bf16.mxu1 %vm3480_vm0, %v3479_v0 }
0x1a29   :  { %3111 = vmatprep.subr.bf16.mxu1 %v3479_v0 }
0x1a2c   :  { %3112 = vmatpush3.bf16.msra.mxu1 %v3997_v59 }
0x1a2d   :  { %3125 = vmatprep.subr.bf16.mxu1 %v3479_v0 }
0x1aba   :  { %v1778_v8 = vpop.f32.mrb[48].mxu0 }
0x1abb   :  { %v1791_v61 = vadd.f32 %v1778_v8, %v3681_v55  ;;  %v3091_v62 = vpop.f32.mrb[49].mxu0 }
0x1abc   :  { %v1781_v63 = vpop.f32.mrb[50].mxu0 }
0x1abd   :  { %1793 = vrot.lane.b32.xlu1 %v1791_v61, %s3481_s1  ;;  %v3092_v41 = vpop.f32.mrb[51].mxu0 }
0x1af2   :  { %v1732_v1 = vpop.f32.mrb[44].mxu1 }
0x1af3   :  { %v3083_v2 = vpop.f32.mrb[45].mxu1  ;;  %v1733_v11 = vadd.f32 %v1732_v1, %v3609_v16 }
0x1af4   :  { %v1735_v3 = vpop.f32.mrb[46].mxu1 }
0x1af5   :  { %v3084_v5 = vpop.f32.mrb[47].mxu1  ;;  %v1784_v12 = vadd.f32 %v1778_v8, %v1733_v11 }
0x1af7   :  { %v2756_v13 = vmul.f32 -1.442695, %v1784_v12 }
0x1af9   :  { %3315 = vpow2.f32 %v2756_v13 }
0x1afa   :  { %v1849_v6 = vpop.f32.mrb[48].mxu1 }
0x1afb   :  { %v1862_v43 = vadd.f32 %v1849_v6, %v3619_v19  ;;  %v3099_v7 = vpop.f32.mrb[49].mxu1  ;;  %v1855_v23 = vadd.f32 %v1849_v6, %v3625_v28 }
0x1afc   :  { %v1852_v9 = vpop.f32.mrb[50].mxu1 }
0x1afd   :  { %1864 = vrot.lane.b32.xlu0 %v1862_v43, %s3481_s1  ;;  %v3100_v10 = vpop.f32.mrb[51].mxu1  ;;  %v2758_v24 = vmul.f32 -1.442695, %v1855_v23 }
0x1b03   :  { %v3316_v14 = vpop.eup %3315 }
0x1b04   :  { %v1788_v17 = vadd.f32 1.0, %v3316_v14 }
0x1b06   :  { %3317 = vrcp.f32 %v1788_v17 }
0x1b07   :  { %3319 = vpow2.f32 %v2758_v24 }
0x1b10   :  { %v3318_v18 = vpop.eup %3317 }
0x1b11   :  { %v3320_v25 = vpop.eup %3319 }
0x1b12   :  { %v1859_v26 = vadd.f32 1.0, %v3320_v25 }
0x1b14   :  { %3321 = vrcp.f32 %v1859_v26 }
0x1b1e   :  { %v3322_v27 = vpop.eup %3321 }
0x1b2f   :  { %v1794_v20 = vpop.permute.xlu1 %1793 }
0x1b30   :  { %v1796_v22 = vmul.f32 %v3318_v18, %v1794_v20 }
0x1b32   :  { %1798 = vrot.lane.b32.xlu1 %v1796_v22, %s3481_s1 }
0x1b6f   :  { %v1865_v30 = vpop.permute.xlu0 %1864 }
0x1b70   :  { %v1867_v31 = vmul.f32 %v3322_v27, %v1865_v30 }
0x1b72   :  { %1869 = vrot.lane.b32.xlu0 %v1867_v31, %s3481_s1 }
0x1ba4   :  { %v1799_v21 = vpop.permute.xlu1 %1798 }
0x1ba5   :  { %v1801_v32 = vadd.f32 %v1799_v21, %v1733_v11 }
0x1ba7   :  { %3323 = vtanh.f32 %v1801_v32 }
0x1bb1   :  { %v3324_v33 = vpop.eup %3323 }
0x1bb2   :  { %v1803_v34 = vsub.f32 %v4016_v50, %v3324_v33 }
0x1bb4   :  { %1805 = vrot.lane.b32.xlu1 %v1803_v34, %s3483_s0 }
0x1be4   :  { %v1870_v35 = vpop.permute.xlu0 %1869 }
0x1be5   :  { %v1872_v36 = vadd.f32 %v1870_v35, %v3625_v28 }
0x1be7   :  { %3325 = vtanh.f32 %v1872_v36 }
0x1bf1   :  { %v3326_v37 = vpop.eup %3325 }
0x1bf2   :  { %v1875_v38 = vrot.slane %v3326_v37, 2 }
0x1bf4   :  { %v1877_v39 = vsub.f32 %v4021_v54, %v1875_v38 }
0x1bf6   :  { %v1879_v40 = vrot.slane %v1877_v39, 6 }
0x1bf8   :  { %1880 = vrot.lane.b32.xlu0 %v1879_v40, %s3483_s0 }
0x1c26   :  { %v1806_v45 = vpop.permute.xlu1 %1805 }
0x1c27   :  { %v1808_v47 = vmul.f32 %v3318_v18, %v1806_v45 }
0x1c29   :  { %1810 = vrot.lane.b32.xlu1 %v1808_v47, %s3484_s24 }
0x1c6a   :  { %v1881_v49 = vpop.permute.xlu0 %1880 }
0x1c6b   :  { %v1883_v48 = vmul.f32 %v3322_v27, %v1881_v49 }
0x1c6d   :  { %1885 = vrot.lane.b32.xlu0 %v1883_v48, %s3484_s24 }
0x1c9b   :  { %v1811_v46 = vpop.permute.xlu1 %1810 }
0x1c9c   :  { %v4062_v29 = vadd.f32 %v3324_v33, %v1811_v46 }
0x1c9e   :  { %v1814_v50 = vpack.c.bf16 %v4062_v29, %v4062_v29 }
0x1ca0   :  { %1937 = vrot.lane.b32.xlu1 %v1814_v50, %s3481_s1 }
0x1cdf   :  { %v1886_v15 = vpop.permute.xlu0 %1885 }
0x1ce0   :  { %v4067_v51 = vadd.f32 %v3326_v37, %v1886_v15 }
0x1ce2   :  { %v1889_v54 = vpack.c.bf16 %v4067_v51, %v4067_v51 }
0x1ce4   :  { %1891 = vrot.lane.b32.xlu0 %v1889_v54, %s3481_s1 }
0x1d12   :  { %v1938_v53 = vpop.permute.xlu1 %1937 }
0x1d13   :  { %3114 = vmatmul.mubr.msk.bf16.vlgmr.msra.gmra.mrb[52].mxu1 %vm175_vm3, %v1938_v53 }
0x1d14   :  { %3126 = vmatpush3.bf16.msra.mxu1 %v3964_v57  ;;  %3129 = vmatprep.mubr.msk.bf16.mxu1 %vm3480_vm0, %v3479_v0 }
0x1d15   :  { %3127 = vmatprep.subr.bf16.mxu1 %v3479_v0 }
0x1d18   :  { %3128 = vmatpush3.bf16.msra.mxu1 %v3973_v52 }
0x1d19   :  { %3141 = vmatprep.subr.bf16.mxu1 %v3479_v0 }
0x1d56   :  { %v1892_v56 = vpop.permute.xlu0 %1891 }
0x1d57   :  { %3106 = vmatmul.mubr.msk.bf16.vlgmr.msra.gmra.mrb[52].mxu0 %vm175_vm3, %v1892_v56 }
0x1d58   :  { %3118 = vmatpush3.bf16.msra.mxu0 %v3915_v4  ;;  %3121 = vmatprep.mubr.msk.bf16.mxu0 %vm3480_vm0, %v3479_v0 }
0x1d59   :  { %3119 = vmatprep.subr.bf16.mxu0 %v3479_v0 }
0x1d5c   :  { %3120 = vmatpush3.bf16.msra.mxu0 %v3924_v42 }
0x1d5d   :  { %3133 = vmatprep.subr.bf16.mxu0 %v3479_v0 }
0x1d5f   :  { %3122 = vmatmul.mubr.msk.bf16.vlgmr.msra.gmra.mrb[56].mxu0 %vm175_vm3, %v1892_v56 }
0x1d60   :  { %3134 = vmatpush3.bf16.msra.mxu0 %v3988_v44  ;;  %3137 = vmatprep.mubr.msk.bf16.mxu0 %vm3480_vm0, %v3479_v0 }
0x1d61   :  { %3135 = vmatprep.subr.bf16.mxu0 %v3479_v0 }
0x1d64   :  { %3136 = vmatpush3.bf16.msra.mxu0 %v3997_v59 }
0x1d65   :  { %3149 = vmatprep.subr.bf16.mxu0 %v3479_v0 }
0x1de6   :  { %v1976_v58 = vpop.f32.mrb[52].mxu1 }
0x1de7   :  { %v1989_v60 = vadd.f32 %v1976_v58, %v3681_v55  ;;  %v3115_v8 = vpop.f32.mrb[53].mxu1 }
0x1de8   :  { %v1979_v61 = vpop.f32.mrb[54].mxu1 }
0x1de9   :  { %1991 = vrot.lane.b32.xlu1 %v1989_v60, %s3481_s1  ;;  %v3116_v62 = vpop.f32.mrb[55].mxu1 }
0x1e2a   :  { %v1930_v63 = vpop.f32.mrb[52].mxu0 }
0x1e2b   :  { %v3107_v41 = vpop.f32.mrb[53].mxu0  ;;  %v1931_v43 = vadd.f32 %v1930_v63, %v3609_v16 }
0x1e2c   :  { %v1933_v1 = vpop.f32.mrb[54].mxu0 }
0x1e2d   :  { %v3108_v2 = vpop.f32.mrb[55].mxu0  ;;  %v1982_v10 = vadd.f32 %v1976_v58, %v1931_v43 }
0x1e2f   :  { %v2761_v11 = vmul.f32 -1.442695, %v1982_v10 }
0x1e31   :  { %3327 = vpow2.f32 %v2761_v11 }
0x1e32   :  { %v2047_v3 = vpop.f32.mrb[56].mxu0 }
0x1e33   :  { %v2060_v5 = vadd.f32 %v2047_v3, %v3619_v19  ;;  %v3123_v6 = vpop.f32.mrb[57].mxu0  ;;  %v2053_v20 = vadd.f32 %v2047_v3, %v3625_v28 }
0x1e34   :  { %v2050_v7 = vpop.f32.mrb[58].mxu0 }
0x1e35   :  { %2062 = vrot.lane.b32.xlu0 %v2060_v5, %s3481_s1  ;;  %v3124_v9 = vpop.f32.mrb[59].mxu0  ;;  %v2763_v22 = vmul.f32 -1.442695, %v2053_v20 }
0x1e3b   :  { %v3328_v12 = vpop.eup %3327 }
0x1e3c   :  { %v1986_v13 = vadd.f32 1.0, %v3328_v12 }
0x1e3e   :  { %3329 = vrcp.f32 %v1986_v13 }
0x1e3f   :  { %3331 = vpow2.f32 %v2763_v22 }
0x1e48   :  { %v3330_v14 = vpop.eup %3329 }
0x1e49   :  { %v3332_v23 = vpop.eup %3331 }
0x1e4a   :  { %v2057_v24 = vadd.f32 1.0, %v3332_v23 }
0x1e4c   :  { %3333 = vrcp.f32 %v2057_v24 }
0x1e56   :  { %v3334_v25 = vpop.eup %3333 }
0x1e5b   :  { %v1992_v17 = vpop.permute.xlu1 %1991 }
0x1e5c   :  { %v1994_v18 = vmul.f32 %v3330_v14, %v1992_v17 }
0x1e5e   :  { %1996 = vrot.lane.b32.xlu1 %v1994_v18, %s3481_s1 }
0x1ea7   :  { %v2063_v26 = vpop.permute.xlu0 %2062 }
0x1ea8   :  { %v2065_v27 = vmul.f32 %v3334_v25, %v2063_v26 }
0x1eaa   :  { %2067 = vrot.lane.b32.xlu0 %v2065_v27, %s3481_s1 }
0x1ed0   :  { %v1997_v30 = vpop.permute.xlu1 %1996 }
0x1ed1   :  { %v1999_v31 = vadd.f32 %v1997_v30, %v1931_v43 }
0x1ed3   :  { %3335 = vtanh.f32 %v1999_v31 }
0x1edd   :  { %v3336_v21 = vpop.eup %3335 }
0x1ede   :  { %v2001_v32 = vsub.f32 %v4062_v29, %v3336_v21 }
0x1ee0   :  { %2003 = vrot.lane.b32.xlu1 %v2001_v32, %s3483_s0 }
0x1f1c   :  { %v2068_v33 = vpop.permute.xlu0 %2067 }
0x1f1d   :  { %v2070_v34 = vadd.f32 %v2068_v33, %v3625_v28 }
0x1f1f   :  { %3337 = vtanh.f32 %v2070_v34 }
0x1f29   :  { %v3338_v35 = vpop.eup %3337 }
0x1f2a   :  { %v2072_v36 = vsub.f32 %v4067_v51, %v3338_v35 }
0x1f2c   :  { %2074 = vrot.lane.b32.xlu0 %v2072_v36, %s3483_s0 }
0x1f52   :  { %v2004_v37 = vpop.permute.xlu1 %2003 }
0x1f53   :  { %v2006_v38 = vmul.f32 %v3330_v14, %v2004_v37 }
0x1f55   :  { %2008 = vrot.lane.b32.xlu1 %v2006_v38, %s3484_s24 }
0x1f9e   :  { %v2075_v39 = vpop.permute.xlu0 %2074 }
0x1f9f   :  { %v2077_v40 = vmul.f32 %v3334_v25, %v2075_v39 }
0x1fa1   :  { %2079 = vrot.lane.b32.xlu0 %v2077_v40, %s3484_s24 }
0x1fc7   :  { %v2009_v45 = vpop.permute.xlu1 %2008 }
0x1fc8   :  { %v4108_v47 = vadd.f32 %v3336_v21, %v2009_v45 }
0x1fca   :  { %v2012_v49 = vpack.c.bf16 %v4108_v47, %v4108_v47 }
0x1fcc   :  { %2131 = vrot.lane.b32.xlu1 %v2012_v49, %s3481_s1 }
0x2013   :  { %v2080_v48 = vpop.permute.xlu0 %2079 }
0x2014   :  { %v4113_v46 = vadd.f32 %v3338_v35, %v2080_v48 }
0x2016   :  { %v2083_v29 = vpack.c.bf16 %v4113_v46, %v4113_v46 }
0x2018   :  { %2085 = vrot.lane.b32.xlu0 %v2083_v29, %s3481_s1 }
0x203e   :  { %v2132_v50 = vpop.permute.xlu1 %2131 }
0x203f   :  { %3138 = vmatmul.mubr.msk.bf16.vlgmr.msra.gmra.mrb[60].mxu0 %vm175_vm3, %v2132_v50 }
0x2040   :  { %3150 = vmatpush3.bf16.msra.mxu0 %v3964_v57  ;;  %3153 = vmatprep.mubr.msk.bf16.mxu0 %vm3480_vm0, %v3479_v0 }
0x2041   :  { %3151 = vmatprep.subr.bf16.mxu0 %v3479_v0 }
0x2044   :  { %3152 = vmatpush3.bf16.msra.mxu0 %v3973_v52 }
0x2045   :  { %3165 = vmatprep.subr.bf16.mxu0 %v3479_v0 }
0x208a   :  { %v2086_v15 = vpop.permute.xlu0 %2085 }
0x208b   :  { %3130 = vmatmul.mubr.msk.bf16.vlgmr.msra.gmra.mrb[56].mxu1 %vm175_vm3, %v2086_v15 }
0x208c   :  { %3142 = vmatpush3.bf16.msra.mxu1 %v3915_v4  ;;  %3145 = vmatprep.mubr.msk.bf16.mxu1 %vm3480_vm0, %v3479_v0 }
0x208d   :  { %3143 = vmatprep.subr.bf16.mxu1 %v3479_v0 }
0x2090   :  { %3144 = vmatpush3.bf16.msra.mxu1 %v3924_v42 }
0x2091   :  { %3157 = vmatprep.subr.bf16.mxu1 %v3479_v0 }
0x2093   :  { %3146 = vmatmul.mubr.msk.bf16.vlgmr.msra.gmra.mrb[60].mxu1 %vm175_vm3, %v2086_v15 }
0x2094   :  { %3158 = vmatpush3.bf16.msra.mxu1 %v3988_v44  ;;  %3161 = vmatprep.mubr.msk.bf16.mxu1 %vm3480_vm0, %v3479_v0 }
0x2095   :  { %3159 = vmatprep.subr.bf16.mxu1 %v3479_v0 }
0x2098   :  { %3160 = vmatpush3.bf16.msra.mxu1 %v3997_v59 }
0x2099   :  { %3173 = vmatprep.subr.bf16.mxu1 %v3479_v0 }
0x2112   :  { %v2170_v51 = vpop.f32.mrb[60].mxu0 }
0x2113   :  { %v2183_v54 = vadd.f32 %v2170_v51, %v3681_v55  ;;  %v3139_v53 = vpop.f32.mrb[61].mxu0 }
0x2114   :  { %v2173_v56 = vpop.f32.mrb[62].mxu0 }
0x2115   :  { %2185 = vrot.lane.b32.xlu1 %v2183_v54, %s3481_s1  ;;  %v3140_v58 = vpop.f32.mrb[63].mxu0 }
0x215e   :  { %v2124_v60 = vpop.f32.mrb[56].mxu1 }
0x215f   :  { %v3131_v8 = vpop.f32.mrb[57].mxu1  ;;  %v2125_v61 = vadd.f32 %v2124_v60, %v3609_v16 }
0x2160   :  { %v2127_v62 = vpop.f32.mrb[58].mxu1 }
0x2161   :  { %v3132_v63 = vpop.f32.mrb[59].mxu1  ;;  %v2176_v41 = vadd.f32 %v2170_v51, %v2125_v61 }
0x2163   :  { %v2766_v5 = vmul.f32 -1.442695, %v2176_v41 }
0x2165   :  { %3339 = vpow2.f32 %v2766_v5 }
0x2166   :  { %v2241_v1 = vpop.f32.mrb[60].mxu1 }
0x2167   :  { %v2254_v2 = vadd.f32 %v2241_v1, %v3619_v19  ;;  %v3147_v3 = vpop.f32.mrb[61].mxu1  ;;  %v2247_v13 = vadd.f32 %v2241_v1, %v3625_v28 }
0x2168   :  { %v2244_v6 = vpop.f32.mrb[62].mxu1 }
0x2169   :  { %2256 = vrot.lane.b32.xlu0 %v2254_v2, %s3481_s1  ;;  %v3148_v43 = vpop.f32.mrb[63].mxu1  ;;  %v2768_v14 = vmul.f32 -1.442695, %v2247_v13 }
0x216f   :  { %v3340_v7 = vpop.eup %3339 }
0x2170   :  { %v2180_v9 = vadd.f32 1.0, %v3340_v7 }
0x2172   :  { %3341 = vrcp.f32 %v2180_v9 }
0x2173   :  { %3343 = vpow2.f32 %v2768_v14 }
0x217c   :  { %v3342_v10 = vpop.eup %3341 }
0x217d   :  { %v3344_v17 = vpop.eup %3343 }
0x217e   :  { %v2251_v18 = vadd.f32 1.0, %v3344_v17 }
0x2180   :  { %3345 = vrcp.f32 %v2251_v18 }
0x2187   :  { %v2186_v11 = vpop.permute.xlu1 %2185 }
0x2188   :  { %v2188_v12 = vmul.f32 %v3342_v10, %v2186_v11 }
0x218a   :  { %2190 = vrot.lane.b32.xlu1 %v2188_v12, %s3481_s1  ;;  %v3346_v20 = vpop.eup %3345 }
0x21db   :  { %v2257_v22 = vpop.permute.xlu0 %2256 }
0x21dc   :  { %v2259_v23 = vmul.f32 %v3346_v20, %v2257_v22 }
0x21de   :  { %2261 = vrot.lane.b32.xlu0 %v2259_v23, %s3481_s1 }
0x21fc   :  { %v2191_v24 = vpop.permute.xlu1 %2190 }
0x21fd   :  { %v2193_v25 = vadd.f32 %v2191_v24, %v2125_v61 }
0x21ff   :  { %3347 = vtanh.f32 %v2193_v25 }
0x2209   :  { %v3348_v26 = vpop.eup %3347 }
0x220a   :  { %v2195_v27 = vsub.f32 %v4108_v47, %v3348_v26 }
0x220c   :  { %2197 = vrot.lane.b32.xlu1 %v2195_v27, %s3483_s0 }
0x2250   :  { %v2262_v30 = vpop.permute.xlu0 %2261 }
0x2251   :  { %v2264_v31 = vadd.f32 %v2262_v30, %v3625_v28 }
0x2253   :  { %3349 = vtanh.f32 %v2264_v31 }
0x225d   :  { %v3350_v21 = vpop.eup %3349 }
0x225e   :  { %v2266_v32 = vsub.f32 %v4113_v46, %v3350_v21 }
0x2260   :  { %2268 = vrot.lane.b32.xlu0 %v2266_v32, %s3483_s0 }
0x227e   :  { %v2198_v33 = vpop.permute.xlu1 %2197 }
0x227f   :  { %v2200_v34 = vmul.f32 %v3342_v10, %v2198_v33 }
0x2281   :  { %2202 = vrot.lane.b32.xlu1 %v2200_v34, %s3484_s24 }
0x22d2   :  { %v2269_v35 = vpop.permute.xlu0 %2268 }
0x22d3   :  { %v2271_v36 = vmul.f32 %v3346_v20, %v2269_v35 }
0x22d5   :  { %2273 = vrot.lane.b32.xlu0 %v2271_v36, %s3484_s24 }
0x22f3   :  { %v2203_v37 = vpop.permute.xlu1 %2202 }
0x22f4   :  { %v4154_v38 = vadd.f32 %v3348_v26, %v2203_v37 }
0x22f6   :  { %v2206_v39 = vpack.c.bf16 %v4154_v38, %v4154_v38 }
0x22f8   :  { %2325 = vrot.lane.b32.xlu1 %v2206_v39, %s3481_s1 }
0x2347   :  { %v2274_v40 = vpop.permute.xlu0 %2273 }
0x2348   :  { %v4159_v45 = vadd.f32 %v3350_v21, %v2274_v40 }
0x234a   :  { %v2277_v49 = vpack.c.bf16 %v4159_v45, %v4159_v45 }
0x234c   :  { %2279 = vrot.lane.b32.xlu0 %v2277_v49, %s3481_s1 }
0x236a   :  { %v2326_v48 = vpop.permute.xlu1 %2325 }
0x236b   :  { %3162 = vmatmul.mubr.msk.bf16.vlgmr.msra.gmra.mrb[64].mxu1 %vm175_vm3, %v2326_v48 }
0x236c   :  { %3174 = vmatpush3.bf16.msra.mxu1 %v3964_v57  ;;  %3177 = vmatprep.mubr.msk.bf16.mxu1 %vm3480_vm0, %v3479_v0 }
0x236d   :  { %3175 = vmatprep.subr.bf16.mxu1 %v3479_v0 }
0x2370   :  { %3176 = vmatpush3.bf16.msra.mxu1 %v3973_v52 }
0x23be   :  { %v2280_v46 = vpop.permute.xlu0 %2279 }
0x23bf   :  { %3154 = vmatmul.mubr.msk.bf16.vlgmr.msra.gmra.mrb[64].mxu0 %vm175_vm3, %v2280_v46 }
0x23c0   :  { %3166 = vmatpush3.bf16.msra.mxu0 %v3915_v4  ;;  %3169 = vmatprep.mubr.msk.bf16.mxu0 %vm3480_vm0, %v3479_v0 }
0x23c1   :  { %3167 = vmatprep.subr.bf16.mxu0 %v3479_v0 }
0x23c4   :  { %3168 = vmatpush3.bf16.msra.mxu0 %v3924_v42 }
0x23c5   :  { %3181 = vmatprep.subr.bf16.mxu0 %v3479_v0 }
0x23c7   :  { %3170 = vmatmul.mubr.msk.bf16.vlgmr.msra.gmra.mrb[68].mxu0 %vm175_vm3, %v2280_v46 }
0x23c8   :  { %3182 = vmatpush3.bf16.msra.mxu0 %v3988_v44  ;;  %3185 = vmatprep.mubr.msk.bf16.mxu0 %vm3480_vm0, %v3479_v0 }
0x23c9   :  { %3183 = vmatprep.subr.bf16.mxu0 %v3479_v0 }
0x23cc   :  { %3184 = vmatpush3.bf16.msra.mxu0 %v3997_v59 }
0x243e   :  { %v2364_v4 = vpop.f32.mrb[64].mxu1 }
0x243f   :  { %v2377_v57 = vadd.f32 %v2364_v4, %v3681_v55  ;;  %v3163_v52 = vpop.f32.mrb[65].mxu1 }
0x2440   :  { %v2367_v29 = vpop.f32.mrb[66].mxu1 }
0x2441   :  { %2379 = vrot.lane.b32.xlu1 %v2377_v57, %s3481_s1  ;;  %v3164_v42 = vpop.f32.mrb[67].mxu1 }
0x2492   :  { %v2318_v50 = vpop.f32.mrb[64].mxu0 }
0x2493   :  { %v2319_v15 = vadd.f32 %v2318_v50, %v3609_v16  ;;  %v3155_v51 = vpop.f32.mrb[65].mxu0 }
0x2494   :  { %v2321_v44 = vpop.f32.mrb[66].mxu0 }
0x2495   :  { %v2370_v54 = vadd.f32 %v2364_v4, %v2319_v15  ;;  %v3156_v53 = vpop.f32.mrb[67].mxu0  ;;  %v2608_v44 = vld [vmem:[#allocation6] sm:$0xff] }
0x2496   :  { %v2610_v53 = vld [vmem:[#allocation6 + $0x10] sm:$0xff] }
0x2497   :  { %v2771_v56 = vmul.f32 -1.442695, %v2370_v54  ;;  %v2609_v54 = vld [vmem:[#allocation6 + $0x8] sm:$0xff] }
0x2499   :  { %3351 = vpow2.f32 %v2771_v56  ;;  %v3485_v56 = vmov 0.0|0.0  }
0x249a   :  { %v2435_v58 = vpop.f32.mrb[68].mxu0  ;;  %3200 = vmatprep.subr.bf16.mxu1 %v3485_v56 }
0x249b   :  { %v2448_v59 = vadd.f32 %v2435_v58, %v3619_v19  ;;  %v3171_v60 = vpop.f32.mrb[69].mxu0  ;;  %v2441_v3 = vadd.f32 %v2435_v58, %v3625_v28  ;;  %v3201_v58 = vpack.c.bf16 %v2609_v54, %v2608_v44 }
0x249c   :  { %v2438_v8 = vpop.f32.mrb[70].mxu0 }
0x249d   :  { %2450 = vrot.lane.b32.xlu0 %v2448_v59, %s3481_s1  ;;  %v3172_v61 = vpop.f32.mrb[71].mxu0  ;;  %v2773_v5 = vmul.f32 -1.442695, %v2441_v3  ;;  %v2611_v59 = vld [vmem:[#allocation6 + $0x18] sm:$0xff] }
0x249e   :  { %v3204_v60 = vpack.c.bf16 %v2611_v59, %v2610_v53 }
0x24a3   :  { %v3352_v62 = vpop.eup %3351 }
0x24a4   :  { %v2374_v63 = vadd.f32 1.0, %v3352_v62  ;;  %v2595_v62 = vrot.slane %v4154_v38, 6 }
0x24a6   :  { %3353 = vrcp.f32 %v2374_v63  ;;  %v2603_v3 = vsel %vm118_vm1, %v4108_v47, %v2595_v62 }
0x24a7   :  { %3355 = vpow2.f32 %v2773_v5 }
0x24b0   :  { %v3354_v41 = vpop.eup %3353 }
0x24b1   :  { %v3356_v6 = vpop.eup %3355 }
0x24b2   :  { %v2445_v43 = vadd.f32 1.0, %v3356_v6 }
0x24b3   :  { %v2380_v1 = vpop.permute.xlu1 %2379 }
0x24b4   :  { %v2382_v2 = vmul.f32 %v3354_v41, %v2380_v1  ;;  %3357 = vrcp.f32 %v2445_v43 }
0x24b6   :  { %2384 = vrot.lane.b32.xlu1 %v2382_v2, %s3481_s1 }
0x24be   :  { %v3358_v19 = vpop.eup %3357 }
0x250f   :  { %v2451_v7 = vpop.permute.xlu0 %2450 }
0x2510   :  { %v2453_v9 = vmul.f32 %v3358_v19, %v2451_v7 }
0x2512   :  { %2455 = vrot.lane.b32.xlu0 %v2453_v9, %s3481_s1 }
0x2528   :  { %v2385_v10 = vpop.permute.xlu1 %2384 }
0x2529   :  { %v2387_v11 = vadd.f32 %v2385_v10, %v2319_v15 }
0x252b   :  { %3359 = vtanh.f32 %v2387_v11 }
0x2535   :  { %v3360_v12 = vpop.eup %3359 }
0x2536   :  { %v2389_v13 = vsub.f32 %v4154_v38, %v3360_v12 }
0x2538   :  { %2391 = vrot.lane.b32.xlu1 %v2389_v13, %s3483_s0 }
0x2584   :  { %v2456_v14 = vpop.permute.xlu0 %2455 }
0x2585   :  { %v2458_v17 = vadd.f32 %v2456_v14, %v3625_v28 }
0x2587   :  { %3361 = vtanh.f32 %v2458_v17 }
0x2591   :  { %v3362_v18 = vpop.eup %3361 }
0x2592   :  { %v2460_v20 = vsub.f32 %v4159_v45, %v3362_v18 }
0x2594   :  { %2462 = vrot.lane.b32.xlu0 %v2460_v20, %s3483_s0 }
0x25aa   :  { %v2392_v22 = vpop.permute.xlu1 %2391 }
0x25ab   :  { %v2394_v23 = vmul.f32 %v3354_v41, %v2392_v22 }
0x25ad   :  { %2396 = vrot.lane.b32.xlu1 %v2394_v23, %s3484_s24 }
0x2606   :  { %v2463_v24 = vpop.permute.xlu0 %2462 }
0x2607   :  { %v2465_v25 = vmul.f32 %v3358_v19, %v2463_v24  ;;  %v2777_v19 = vld [vmem:[#allocation7] ss:$0 sm:$0xff] }
0x2609   :  { %2467 = vrot.lane.b32.xlu0 %v2465_v25, %s3484_s24 }
0x261f   :  { %v2397_v26 = vpop.permute.xlu1 %2396 }
0x2620   :  { %v4198_v27 = vadd.f32 %v3360_v12, %v2397_v26 }
0x2622   :  { %v2400_v28 = vpack.c.bf16 %v4198_v27, %v4198_v27  ;;  %v2598_v63 = vrot.slane %v4198_v27, 4 }
0x2624   :  { %2519 = vrot.lane.b32.xlu1 %v2400_v28, %s3481_s1  ;;  %v2605_v5 = vsel %vm2604_vm4, %v2603_v3, %v2598_v63 }
0x267b   :  { %v2468_v30 = vpop.permute.xlu0 %2467 }
0x267c   :  { %v2470_v31 = vadd.f32 %v3362_v18, %v2468_v30 }
0x267e   :  { %v2471_v21 = vpack.c.bf16 %v2470_v31, %v2470_v31 }
0x2680   :  { %2473 = vrot.lane.b32.xlu0 %v2471_v21, %s3481_s1 }
0x2696   :  { %v2520_v32 = vpop.permute.xlu1 %2519 }
0x2697   :  { %3186 = vmatmul.mubr.msk.bf16.vlgmr.msra.gmra.mrb[72].mxu0 %vm175_vm3, %v2520_v32 }
0x26f2   :  { %v2474_v33 = vpop.permute.xlu0 %2473 }
0x26f3   :  { %3178 = vmatmul.mubr.msk.bf16.vlgmr.msra.gmra.mrb[68].mxu1 %vm175_vm3, %v2474_v33 }
0x26f4   :  { %3197 = vmatprep.mubr.msk.f32.mxu1 %vm3480_vm0, %v3479_v0  ;;  %3202 = vmatpush3.bf16.msra.mxu1 %v3201_v58 }
0x26f5   :  { %3203 = vmatprep.subr.bf16.mxu1 %v3485_v56 }
0x26f8   :  { %3205 = vmatpush3.bf16.msra.mxu1 %v3204_v60 }
0x276a   :  { %v2558_v34 = vpop.f32.mrb[72].mxu0 }
0x276b   :  { %v2571_v35 = vadd.f32 %v2558_v34, %v3681_v55  ;;  %v3187_v36 = vpop.f32.mrb[73].mxu0 }
0x276c   :  { %v2561_v37 = vpop.f32.mrb[74].mxu0 }
0x276d   :  { %2573 = vrot.lane.b32.xlu1 %v2571_v35, %s3481_s1  ;;  %v3188_v39 = vpop.f32.mrb[75].mxu0 }
0x27c6   :  { %v2512_v40 = vpop.f32.mrb[68].mxu1 }
0x27c7   :  { %v2513_v45 = vadd.f32 %v2512_v40, %v3609_v16  ;;  %v3179_v49 = vpop.f32.mrb[69].mxu1 }
0x27c8   :  { %v2515_v48 = vpop.f32.mrb[70].mxu1 }
0x27c9   :  { %v2564_v46 = vadd.f32 %v2558_v34, %v2513_v45  ;;  %v3180_v4 = vpop.f32.mrb[71].mxu1 }
0x27cb   :  { %v2776_v57 = vmul.f32 -1.442695, %v2564_v46 }
0x27cd   :  { %3363 = vpow2.f32 %v2776_v57 }
0x27d7   :  { %v3364_v52 = vpop.eup %3363 }
0x27d8   :  { %v2568_v29 = vadd.f32 1.0, %v3364_v52 }
0x27da   :  { %3365 = vrcp.f32 %v2568_v29 }
0x27df   :  { %v2574_v42 = vpop.permute.xlu1 %2573 }
0x27e4   :  { %v3366_v0 = vpop.eup %3365 }
0x27e5   :  { %v2576_v55 = vmul.f32 %v3366_v0, %v2574_v42 }
0x27e7   :  { %2578 = vrot.lane.b32.xlu0 %v2576_v55, %s3481_s1 }
0x2859   :  { %v2579_v50 = vpop.permute.xlu0 %2578 }
0x285a   :  { %v2581_v15 = vadd.f32 %v2579_v50, %v2513_v45 }
0x285c   :  { %3367 = vtanh.f32 %v2581_v15 }
0x2866   :  { %v3368_v51 = vpop.eup %3367 }
0x2867   :  { %v2583_v16 = vsub.f32 %v4198_v27, %v3368_v51 }
0x2869   :  { %2585 = vrot.lane.b32.xlu1 %v2583_v16, %s3483_s0 }
0x28db   :  { %v2586_v8 = vpop.permute.xlu1 %2585 }
0x28dc   :  { %v2588_v61 = vmul.f32 %v3366_v0, %v2586_v8 }
0x28de   :  { %2590 = vrot.lane.b32.xlu0 %v2588_v61, %s3484_s24 }
0x2950   :  { %v2591_v41 = vpop.permute.xlu0 %2590 }
0x2951   :  { %v2593_v1 = vadd.f32 %v3368_v51, %v2591_v41 }
0x2953   :  { %v2601_v2 = vrot.slane %v2593_v1, 2 }
0x2955   :  { %v2607_v6 = vsel %vm2606_vm5, %v2605_v5, %v2601_v2 }
0x2956   :  { %2620 = vrot.lane.b32.xlu1 %v2607_v6, %s3481_s1 }
0x29c8   :  { %v2621_v43 = vpop.permute.xlu1 %2620 }
0x29c9   :  { %3198 = vmatmul.mubr.msk.f32.vlgmr.msra.gmra.mrb[72].mxu1 %vm175_vm3, %v2621_v43 }
0x2a9c   :  { %v2690_v7 = vpop.f32.mrb[72].mxu1 }
0x2a9d   :  { %v2691_v38 = vadd.f32 %v2777_v19, %v2690_v7  ;;  %v3199_v9 = vpop.f32.mrb[73].mxu1 }
0x2a9f   :  { %v2779_v10 = vmul.f32 -1.442695, %v2691_v38 }
0x2aa1   :  { %3369 = vpow2.f32 %v2779_v10 }
0x2aab   :  { %v3370_v11 = vpop.eup %3369 }
0x2aac   :  { %v2697_v12 = vadd.f32 1.0, %v3370_v11 }
0x2aae   :  { %3371 = vrcp.f32 %v2697_v12 }
0x2ab8   :  { %v3372_v13 = vpop.eup %3371 }
0x2ab9   :  { %2700 = vst [vmem:[%s4232_s8] sm:$0xff] %v3372_v13 }
0x2aba   :  { %2705 = vsyncpa [#allocation3], 1 }
0x2abb   :  { %2706 = vsyncpa [#allocation5], 1 }
0x2abc   :  { %2707 = vsyncpa [#allocation8], 1 }

</bundles_post_ra>
